<compile_context>
chip_gen: v5e
topology: v5e:2x2
jax: 0.10.0
libtpu: 0.0.40
codegen_flags: <defaults>
</compile_context>

<pallas_src>
import numpy as np
import jax
import jax.numpy as jnp
from jax import lax
from jax.experimental import pallas as pl
from jax.experimental.pallas import tpu as pltpu


# ----------------------------------------------------------------------------
# Pallas kernel
# ----------------------------------------------------------------------------
def _pool2x2(acc, eh_ref, sw_ref):
    # acc: (OH, OW*C). eh[s]: (OH/2, OH) selects rows 2p+s; sw[s]: (OW*C, OW/2*C)
    # selects cols (2q+s, c). 2x2 maxpool = max over the four selections.
    hmax = jnp.maximum(
        jnp.dot(eh_ref[0], acc, preferred_element_type=jnp.float32),
        jnp.dot(eh_ref[1], acc, preferred_element_type=jnp.float32),
    )
    return jnp.maximum(
        jnp.dot(hmax, sw_ref[0], preferred_element_type=jnp.float32),
        jnp.dot(hmax, sw_ref[1], preferred_element_type=jnp.float32),
    )


def _lenet_fused_kernel(x_ref, wb1_ref, b1t_ref, eh1_ref, sw1_ref,
                        wb2_ref, b2t_ref, eh2_ref, sw2_ref,
                        w1r_ref, b1p_ref, w2_ref, b2p_ref, w3_ref, b3p_ref,
                        o_ref, p1s_ref, p2s_ref, h1s_ref):
    # x_ref  : (TB, 32, 96)   batch tile of images laid out (h, w*c)
    # wb1_ref: (5, 96, 168)   banded (W*Cin, OW*Cout) matrix per kernel row
    # wb2_ref: (5, 84, 160)
    # eh*/sw*: 0/1 maxpool selection matrices
    # w1r_ref: (5, 80, 120)   fc1 weight split per flattened conv row
    # o_ref  : (TB, 10)
    tb = x_ref.shape[0]
    oh1 = eh1_ref.shape[2]          # 28
    oh2 = eh2_ref.shape[2]          # 10
    k1 = wb1_ref.shape[0]           # 5
    k2 = wb2_ref.shape[0]           # 5
    nr = w1r_ref.shape[0]           # 5

    for b in range(tb):
        # ---- conv1 (banded matmuls on the (H, W*C) slab) + bias + ReLU ----
        acc = jnp.dot(x_ref[b, 0:oh1, :], wb1_ref[0],
                      preferred_element_type=jnp.float32)
        for i in range(1, k1):
            acc += jnp.dot(x_ref[b, i:i + oh1, :], wb1_ref[i],
                           preferred_element_type=jnp.float32)
        acc = jnp.maximum(acc + b1t_ref[...], 0.0)
        p1s_ref[...] = _pool2x2(acc, eh1_ref, sw1_ref)      # (14, 84) lanes=(w,c)

        # ---- conv2 + bias + ReLU ----
        acc2 = jnp.dot(p1s_ref[0:oh2, :], wb2_ref[0],
                       preferred_element_type=jnp.float32)
        for i in range(1, k2):
            acc2 += jnp.dot(p1s_ref[i:i + oh2, :], wb2_ref[i],
                            preferred_element_type=jnp.float32)
        acc2 = jnp.maximum(acc2 + b2t_ref[...], 0.0)
        p2s_ref[...] = _pool2x2(acc2, eh2_ref, sw2_ref)     # (5, 80) lanes=(w,c)

        # ---- fc1 with the Flatten folded into per-row weight slabs ----
        h1 = jnp.dot(p2s_ref[0:1, :], w1r_ref[0],
                     preferred_element_type=jnp.float32)
        for r in range(1, nr):
            h1 += jnp.dot(p2s_ref[r:r + 1, :], w1r_ref[r],
                          preferred_element_type=jnp.float32)
        h1s_ref[b:b + 1, :] = h1

    # ---- fc1-ReLU -> fc2-ReLU -> fc3 on the whole batch tile ----
    h = jnp.maximum(h1s_ref[...] + b1p_ref[...], 0.0)
    h = jnp.maximum(jnp.dot(h, w2_ref[...], preferred_element_type=jnp.float32)
                    + b2p_ref[...], 0.0)
    h = jnp.dot(h, w3_ref[...], preferred_element_type=jnp.float32) + b3p_ref[...]
    o_ref[...] = h.astype(o_ref.dtype)


# ----------------------------------------------------------------------------
# pallas_call wrapper
# ----------------------------------------------------------------------------
def _lenet_pallas(xs, kp, tb):
    bp = xs.shape[0]
    c3 = lambda t: (0, 0, 0)
    c2 = lambda t: (0, 0)
    return pl.pallas_call(
        _lenet_fused_kernel,
        out_shape=jax.ShapeDtypeStruct((bp, 10), jnp.float32),
        grid=(bp // tb,),
        in_specs=[
            pl.BlockSpec((tb,) + xs.shape[1:], lambda t: (t, 0, 0)),
            pl.BlockSpec(kp["wb1"].shape, c3),
            pl.BlockSpec(kp["b1t"].shape, c2),
            pl.BlockSpec(kp["eh1"].shape, c3),
            pl.BlockSpec(kp["sw1"].shape, c3),
            pl.BlockSpec(kp["wb2"].shape, c3),
            pl.BlockSpec(kp["b2t"].shape, c2),
            pl.BlockSpec(kp["eh2"].shape, c3),
            pl.BlockSpec(kp["sw2"].shape, c3),
            pl.BlockSpec(kp["w1r"].shape, c3),
            pl.BlockSpec(kp["b1p"].shape, c2),
            pl.BlockSpec(kp["w2p"].shape, c2),
            pl.BlockSpec(kp["b2p"].shape, c2),
            pl.BlockSpec(kp["w3p"].shape, c2),
            pl.BlockSpec(kp["b3p"].shape, c2),
        ],
        out_specs=pl.BlockSpec((tb, 10), lambda t: (t, 0)),
        scratch_shapes=[
            pltpu.VMEM(kp["sw1"].shape[1:][::-1][::-1][:0] or (14, 84), jnp.float32)
            if False else pltpu.VMEM((14, 84), jnp.float32),   # pooled conv1
            pltpu.VMEM((5, 80), jnp.float32),                  # pooled conv2
            pltpu.VMEM((tb, kp["w1r"].shape[2]), jnp.float32), # fc1 pre-activation
        ],
        compiler_params=pltpu.CompilerParams(
            dimension_semantics=("parallel",)),
    )(xs, kp["wb1"], kp["b1t"], kp["eh1"], kp["sw1"],
      kp["wb2"], kp["b2t"], kp["eh2"], kp["sw2"],
      kp["w1r"], kp["b1p"], kp["w2p"], kp["b2p"], kp["w3p"], kp["b3p"])


def _forward(x_nchw, kp):
    x = x_nchw.astype(jnp.float32)
    B, C, H, W = x.shape
    # Layout plumbing only: NCHW -> lane-dense (B, H, W*C) slab for conv1.
    xs = jnp.transpose(x, (0, 2, 3, 1)).reshape(B, H, W * C)
    if B % 8 == 0:
        tb, bp = 8, B
    elif B <= 8:
        tb, bp = B, B
    else:
        tb = 8
        bp = ((B + 7) // 8) * 8
        xs = jnp.pad(xs, ((0, bp - B), (0, 0), (0, 0)))
    out = _lenet_pallas(xs, kp, tb)
    return out[:B]


my_model_forward = jax.jit(_forward)


# ----------------------------------------------------------------------------
# Parameter construction (torch layouts -> kernel layouts; init-time only)
# ----------------------------------------------------------------------------
def init_torch_params(key):
    """PyTorch-layout parameters with torch-default uniform init."""
    def u(k, shape, fan_in):
        bound = 1.0 / np.sqrt(float(fan_in))
        return jax.random.uniform(k, shape, jnp.float32, -bound, bound)

    ks = jax.random.split(key, 10)
    return {
        "conv1_w": u(ks[0], (6, 3, 5, 5), 3 * 5 * 5),
        "conv1_b": u(ks[1], (6,), 3 * 5 * 5),
        "conv2_w": u(ks[2], (16, 6, 5, 5), 6 * 5 * 5),
        "conv2_b": u(ks[3], (16,), 6 * 5 * 5),
        "fc1_w": u(ks[4], (120, 400), 400),
        "fc1_b": u(ks[5], (120,), 400),
        "fc2_w": u(ks[6], (84, 120), 120),
        "fc2_b": u(ks[7], (84,), 120),
        "fc3_w": u(ks[8], (10, 84), 84),
        "fc3_b": u(ks[9], (10,), 84),
    }


def build_kernel_params(tp):
    w1 = np.asarray(tp["conv1_w"], np.float32)   # (6, 3, 5, 5)
    b1 = np.asarray(tp["conv1_b"], np.float32)
    w2 = np.asarray(tp["conv2_w"], np.float32)   # (16, 6, 5, 5)
    b2 = np.asarray(tp["conv2_b"], np.float32)

    K = 5
    # conv1: banded matrices on the (H, W*Cin) slab (lane index = w*3 + ci):
    #   acc[oh, ow*6+co] += slab[oh+i, :] @ WB1[i]
    OW1, C1 = 28, 6
    wb1 = np.zeros((K, 32 * 3, OW1 * C1), np.float32)
    for i in range(K):
        for ci in range(3):
            for ow in range(OW1):
                for j in range(K):
                    wb1[i, (ow + j) * 3 + ci, ow * C1:(ow + 1) * C1] = w1[:, ci, i, j]
    b1t = np.tile(b1, OW1)[None, :]              # (1, 168)

    # conv2: banded matrices; input lanes are (w, ci) with Cin=6
    OW2, C2 = 10, 16
    wb2 = np.zeros((K, 14 * 6, OW2 * C2), np.float32)
    for i in range(K):
        for ci in range(6):
            for ow in range(OW2):
                for j in range(K):
                    wb2[i, (ow + j) * 6 + ci, ow * C2:(ow + 1) * C2] = w2[:, ci, i, j]
    b2t = np.tile(b2, OW2)[None, :]              # (1, 160)

    def pool_selectors(hp, cout):
        eh = np.zeros((2, hp, 2 * hp), np.float32)
        sw = np.zeros((2, 2 * hp * cout, hp * cout), np.float32)
        for s in range(2):
            for p in range(hp):
                eh[s, p, 2 * p + s] = 1.0
                for c in range(cout):
                    sw[s, (2 * p + s) * cout + c, p * cout + c] = 1.0
        return eh, sw

    eh1, sw1 = pool_selectors(14, C1)            # (2,14,28), (2,168,84)
    eh2, sw2 = pool_selectors(5, C2)             # (2,5,10),  (2,160,80)

    # fc1 rows permuted to consume the (h, w, c)-ordered pooled conv2 output,
    # then split per conv row -> torch's NCHW Flatten never runs at runtime.
    fc1_w = np.asarray(tp["fc1_w"], np.float32)  # (120, 400), torch col = c*25+h*5+w
    perm = np.zeros(400, np.int64)
    for h in range(5):
        for w in range(5):
            for c in range(16):
                perm[h * 80 + w * 16 + c] = c * 25 + h * 5 + w
    w1r = fc1_w[:, perm].T.reshape(5, 80, 120)   # (5, 80, 120)

    kp = {
        "wb1": wb1, "b1t": b1t, "eh1": eh1, "sw1": sw1,
        "wb2": wb2, "b2t": b2t, "eh2": eh2, "sw2": sw2,
        "w1r": w1r, "b1p": np.asarray(tp["fc1_b"], np.float32)[None, :],
        "w2p": np.asarray(tp["fc2_w"], np.float32).T,
        "b2p": np.asarray(tp["fc2_b"], np.float32)[None, :],
        "w3p": np.asarray(tp["fc3_w"], np.float32).T,
        "b3p": np.asarray(tp["fc3_b"], np.float32)[None, :],
    }
    return jax.tree_util.tree_map(jnp.asarray, kp)


# ----------------------------------------------------------------------------
# Pure-JAX reference (torch semantics) for a correctness check
# ----------------------------------------------------------------------------
def reference_forward(x, tp):
    dn1 = lax.conv_dimension_numbers(x.shape, tp["conv1_w"].shape,
                                     ("NCHW", "OIHW", "NCHW"))
    y = lax.conv_general_dilated(x, tp["conv1_w"], (1, 1), "VALID",
                                 dimension_numbers=dn1)
    y = jax.nn.relu(y + tp["conv1_b"][None, :, None, None])
    y = lax.reduce_window(y, -jnp.inf, lax.max, (1, 1, 2, 2), (1, 1, 2, 2), "VALID")
    dn2 = lax.conv_dimension_numbers(y.shape, tp["conv2_w"].shape,
                                     ("NCHW", "OIHW", "NCHW"))
    y = lax.conv_general_dilated(y, tp["conv2_w"], (1, 1), "VALID",
                                 dimension_numbers=dn2)
    y = jax.nn.relu(y + tp["conv2_b"][None, :, None, None])
    y = lax.reduce_window(y, -jnp.inf, lax.max, (1, 1, 2, 2), (1, 1, 2, 2), "VALID")
    y = y.reshape(y.shape[0], -1)
    y = jax.nn.relu(y @ tp["fc1_w"].T + tp["fc1_b"])
    y = jax.nn.relu(y @ tp["fc2_w"].T + tp["fc2_b"])
    return y @ tp["fc3_w"].T + tp["fc3_b"]


if __name__ == "__main__":
    key = jax.random.PRNGKey(0)
    k_x, k_p = jax.random.split(key)

    # CIFAR-10 geometry is required by the architecture (fc1 expects 16*5*5).
    x = jax.random.normal(k_x, (2, 3, 32, 32), jnp.float32)
    torch_params = init_torch_params(k_p)
    kernel_params = build_kernel_params(torch_params)

    logits = my_model_forward(x, kernel_params)
    jax.block_until_ready(logits)
    assert logits.shape == (2, 10)

    ref = reference_forward(x, torch_params)
    err = float(jnp.max(jnp.abs(logits - ref)))
    assert err < 5e-2, f"kernel mismatch vs reference: max abs err {err}"
    print("KERNEL_OK")
</pallas_src>

<mosaic_0001>
module attributes {stable_mosaic.version = 11 : i64} {
  func.func @_lenet_fused_kernel(%arg0: i32, %arg1: memref<2x32x96xf32, #tpu.memory_space<vmem>>, %arg2: memref<5x96x168xf32, #tpu.memory_space<vmem>>, %arg3: memref<1x168xf32, #tpu.memory_space<vmem>>, %arg4: memref<2x14x28xf32, #tpu.memory_space<vmem>>, %arg5: memref<2x168x84xf32, #tpu.memory_space<vmem>>, %arg6: memref<5x84x160xf32, #tpu.memory_space<vmem>>, %arg7: memref<1x160xf32, #tpu.memory_space<vmem>>, %arg8: memref<2x5x10xf32, #tpu.memory_space<vmem>>, %arg9: memref<2x160x80xf32, #tpu.memory_space<vmem>>, %arg10: memref<5x80x120xf32, #tpu.memory_space<vmem>>, %arg11: memref<1x120xf32, #tpu.memory_space<vmem>>, %arg12: memref<120x84xf32, #tpu.memory_space<vmem>>, %arg13: memref<1x84xf32, #tpu.memory_space<vmem>>, %arg14: memref<84x10xf32, #tpu.memory_space<vmem>>, %arg15: memref<1x10xf32, #tpu.memory_space<vmem>>, %arg16: memref<2x10xf32, #tpu.memory_space<vmem>>, %arg17: memref<14x84xf32, #tpu.memory_space<vmem>>, %arg18: memref<5x80xf32, #tpu.memory_space<vmem>>, %arg19: memref<2x120xf32, #tpu.memory_space<vmem>>) attributes {dimension_semantics = [#tpu.dimension_semantics<parallel>], iteration_bounds = array<i64: 1>, scalar_prefetch = 0 : i64, scratch_operands = 3 : i64, tpu.core_type = #tpu.core_type<tc>, window_params = [{transform_indices = @transform_0, window_bounds = array<i64: 2, 32, 96>}, {pipeline_mode = #tpu.pipeline_mode<synchronous>, transform_indices = @transform_1, window_bounds = array<i64: 5, 96, 168>}, {pipeline_mode = #tpu.pipeline_mode<synchronous>, transform_indices = @transform_2, window_bounds = array<i64: 1, 168>}, {pipeline_mode = #tpu.pipeline_mode<synchronous>, transform_indices = @transform_3, window_bounds = array<i64: 2, 14, 28>}, {pipeline_mode = #tpu.pipeline_mode<synchronous>, transform_indices = @transform_4, window_bounds = array<i64: 2, 168, 84>}, {pipeline_mode = #tpu.pipeline_mode<synchronous>, transform_indices = @transform_5, window_bounds = array<i64: 5, 84, 160>}, {pipeline_mode = #tpu.pipeline_mode<synchronous>, transform_indices = @transform_6, window_bounds = array<i64: 1, 160>}, {pipeline_mode = #tpu.pipeline_mode<synchronous>, transform_indices = @transform_7, window_bounds = array<i64: 2, 5, 10>}, {pipeline_mode = #tpu.pipeline_mode<synchronous>, transform_indices = @transform_8, window_bounds = array<i64: 2, 160, 80>}, {pipeline_mode = #tpu.pipeline_mode<synchronous>, transform_indices = @transform_9, window_bounds = array<i64: 5, 80, 120>}, {pipeline_mode = #tpu.pipeline_mode<synchronous>, transform_indices = @transform_10, window_bounds = array<i64: 1, 120>}, {pipeline_mode = #tpu.pipeline_mode<synchronous>, transform_indices = @transform_11, window_bounds = array<i64: 120, 84>}, {pipeline_mode = #tpu.pipeline_mode<synchronous>, transform_indices = @transform_12, window_bounds = array<i64: 1, 84>}, {pipeline_mode = #tpu.pipeline_mode<synchronous>, transform_indices = @transform_13, window_bounds = array<i64: 84, 10>}, {pipeline_mode = #tpu.pipeline_mode<synchronous>, transform_indices = @transform_14, window_bounds = array<i64: 1, 10>}, {transform_indices = @transform_15, window_bounds = array<i64: 2, 10>}]} {
    %c0 = arith.constant 0 : index
    %c0_0 = arith.constant 0 : index
    %c0_1 = arith.constant 0 : index
    %0 = vector.load %arg1[%c0, %c0_0, %c0_1] : memref<2x32x96xf32, #tpu.memory_space<vmem>>, vector<1x28x96xf32>
    %1 = vector.shape_cast %0 : vector<1x28x96xf32> to vector<28x96xf32>
    %c0_2 = arith.constant 0 : index
    %c0_3 = arith.constant 0 : index
    %c0_4 = arith.constant 0 : index
    %2 = vector.load %arg2[%c0_2, %c0_3, %c0_4] : memref<5x96x168xf32, #tpu.memory_space<vmem>>, vector<1x96x168xf32>
    %3 = vector.shape_cast %2 : vector<1x96x168xf32> to vector<96x168xf32>
    %cst = arith.constant dense<0.000000e+00> : vector<28x168xf32>
    %4 = tpu.matmul %1, %3, %cst {dimension_numbers = #tpu.dot_dimension_numbers<[1], [0], [0], [1], [0, 0, 1, 1], [], []>} : vector<28x96xf32>, vector<96x168xf32>, vector<28x168xf32> -> vector<28x168xf32>
    %c0_5 = arith.constant 0 : index
    %c1 = arith.constant 1 : index
    %c0_6 = arith.constant 0 : index
    %5 = vector.load %arg1[%c0_5, %c1, %c0_6] : memref<2x32x96xf32, #tpu.memory_space<vmem>>, vector<1x28x96xf32>
    %6 = vector.shape_cast %5 : vector<1x28x96xf32> to vector<28x96xf32>
    %c1_7 = arith.constant 1 : index
    %c0_8 = arith.constant 0 : index
    %c0_9 = arith.constant 0 : index
    %7 = vector.load %arg2[%c1_7, %c0_8, %c0_9] : memref<5x96x168xf32, #tpu.memory_space<vmem>>, vector<1x96x168xf32>
    %8 = vector.shape_cast %7 : vector<1x96x168xf32> to vector<96x168xf32>
    %cst_10 = arith.constant dense<0.000000e+00> : vector<28x168xf32>
    %9 = tpu.matmul %6, %8, %cst_10 {dimension_numbers = #tpu.dot_dimension_numbers<[1], [0], [0], [1], [0, 0, 1, 1], [], []>} : vector<28x96xf32>, vector<96x168xf32>, vector<28x168xf32> -> vector<28x168xf32>
    %10 = arith.addf %4, %9 : vector<28x168xf32>
    %c0_11 = arith.constant 0 : index
    %c2 = arith.constant 2 : index
    %c0_12 = arith.constant 0 : index
    %11 = vector.load %arg1[%c0_11, %c2, %c0_12] : memref<2x32x96xf32, #tpu.memory_space<vmem>>, vector<1x28x96xf32>
    %12 = vector.shape_cast %11 : vector<1x28x96xf32> to vector<28x96xf32>
    %c2_13 = arith.constant 2 : index
    %c0_14 = arith.constant 0 : index
    %c0_15 = arith.constant 0 : index
    %13 = vector.load %arg2[%c2_13, %c0_14, %c0_15] : memref<5x96x168xf32, #tpu.memory_space<vmem>>, vector<1x96x168xf32>
    %14 = vector.shape_cast %13 : vector<1x96x168xf32> to vector<96x168xf32>
    %cst_16 = arith.constant dense<0.000000e+00> : vector<28x168xf32>
    %15 = tpu.matmul %12, %14, %cst_16 {dimension_numbers = #tpu.dot_dimension_numbers<[1], [0], [0], [1], [0, 0, 1, 1], [], []>} : vector<28x96xf32>, vector<96x168xf32>, vector<28x168xf32> -> vector<28x168xf32>
    %16 = arith.addf %10, %15 : vector<28x168xf32>
    %c0_17 = arith.constant 0 : index
    %c3 = arith.constant 3 : index
    %c0_18 = arith.constant 0 : index
    %17 = vector.load %arg1[%c0_17, %c3, %c0_18] : memref<2x32x96xf32, #tpu.memory_space<vmem>>, vector<1x28x96xf32>
    %18 = vector.shape_cast %17 : vector<1x28x96xf32> to vector<28x96xf32>
    %c3_19 = arith.constant 3 : index
    %c0_20 = arith.constant 0 : index
    %c0_21 = arith.constant 0 : index
    %19 = vector.load %arg2[%c3_19, %c0_20, %c0_21] : memref<5x96x168xf32, #tpu.memory_space<vmem>>, vector<1x96x168xf32>
    %20 = vector.shape_cast %19 : vector<1x96x168xf32> to vector<96x168xf32>
    %cst_22 = arith.constant dense<0.000000e+00> : vector<28x168xf32>
    %21 = tpu.matmul %18, %20, %cst_22 {dimension_numbers = #tpu.dot_dimension_numbers<[1], [0], [0], [1], [0, 0, 1, 1], [], []>} : vector<28x96xf32>, vector<96x168xf32>, vector<28x168xf32> -> vector<28x168xf32>
    %22 = arith.addf %16, %21 : vector<28x168xf32>
    %c0_23 = arith.constant 0 : index
    %c4 = arith.constant 4 : index
    %c0_24 = arith.constant 0 : index
    %23 = vector.load %arg1[%c0_23, %c4, %c0_24] : memref<2x32x96xf32, #tpu.memory_space<vmem>>, vector<1x28x96xf32>
    %24 = vector.shape_cast %23 : vector<1x28x96xf32> to vector<28x96xf32>
    %c4_25 = arith.constant 4 : index
    %c0_26 = arith.constant 0 : index
    %c0_27 = arith.constant 0 : index
    %25 = vector.load %arg2[%c4_25, %c0_26, %c0_27] : memref<5x96x168xf32, #tpu.memory_space<vmem>>, vector<1x96x168xf32>
    %26 = vector.shape_cast %25 : vector<1x96x168xf32> to vector<96x168xf32>
    %cst_28 = arith.constant dense<0.000000e+00> : vector<28x168xf32>
    %27 = tpu.matmul %24, %26, %cst_28 {dimension_numbers = #tpu.dot_dimension_numbers<[1], [0], [0], [1], [0, 0, 1, 1], [], []>} : vector<28x96xf32>, vector<96x168xf32>, vector<28x168xf32> -> vector<28x168xf32>
    %28 = arith.addf %22, %27 : vector<28x168xf32>
    %c0_29 = arith.constant 0 : index
    %c0_30 = arith.constant 0 : index
    %29 = vector.load %arg3[%c0_29, %c0_30] : memref<1x168xf32, #tpu.memory_space<vmem>>, vector<1x168xf32>
    %30 = vector.broadcast %29 : vector<1x168xf32> to vector<28x168xf32>
    %31 = arith.addf %28, %30 : vector<28x168xf32>
    %cst_31 = arith.constant 0.000000e+00 : f32
    %32 = vector.broadcast %cst_31 : f32 to vector<28x168xf32>
    %33 = arith.maximumf %31, %32 : vector<28x168xf32>
    %c0_32 = arith.constant 0 : index
    %c0_33 = arith.constant 0 : index
    %c0_34 = arith.constant 0 : index
    %34 = vector.load %arg4[%c0_32, %c0_33, %c0_34] : memref<2x14x28xf32, #tpu.memory_space<vmem>>, vector<1x14x28xf32>
    %35 = vector.shape_cast %34 : vector<1x14x28xf32> to vector<14x28xf32>
    %cst_35 = arith.constant dense<0.000000e+00> : vector<14x168xf32>
    %36 = tpu.matmul %35, %33, %cst_35 {dimension_numbers = #tpu.dot_dimension_numbers<[1], [0], [0], [1], [0, 0, 1, 1], [], []>} : vector<14x28xf32>, vector<28x168xf32>, vector<14x168xf32> -> vector<14x168xf32>
    %c1_36 = arith.constant 1 : index
    %c0_37 = arith.constant 0 : index
    %c0_38 = arith.constant 0 : index
    %37 = vector.load %arg4[%c1_36, %c0_37, %c0_38] : memref<2x14x28xf32, #tpu.memory_space<vmem>>, vector<1x14x28xf32>
    %38 = vector.shape_cast %37 : vector<1x14x28xf32> to vector<14x28xf32>
    %cst_39 = arith.constant dense<0.000000e+00> : vector<14x168xf32>
    %39 = tpu.matmul %38, %33, %cst_39 {dimension_numbers = #tpu.dot_dimension_numbers<[1], [0], [0], [1], [0, 0, 1, 1], [], []>} : vector<14x28xf32>, vector<28x168xf32>, vector<14x168xf32> -> vector<14x168xf32>
    %40 = arith.maximumf %36, %39 : vector<14x168xf32>
    %c0_40 = arith.constant 0 : index
    %c0_41 = arith.constant 0 : index
    %c0_42 = arith.constant 0 : index
    %41 = vector.load %arg5[%c0_40, %c0_41, %c0_42] : memref<2x168x84xf32, #tpu.memory_space<vmem>>, vector<1x168x84xf32>
    %42 = vector.shape_cast %41 : vector<1x168x84xf32> to vector<168x84xf32>
    %cst_43 = arith.constant dense<0.000000e+00> : vector<14x84xf32>
    %43 = tpu.matmul %40, %42, %cst_43 {dimension_numbers = #tpu.dot_dimension_numbers<[1], [0], [0], [1], [0, 0, 1, 1], [], []>} : vector<14x168xf32>, vector<168x84xf32>, vector<14x84xf32> -> vector<14x84xf32>
    %c1_44 = arith.constant 1 : index
    %c0_45 = arith.constant 0 : index
    %c0_46 = arith.constant 0 : index
    %44 = vector.load %arg5[%c1_44, %c0_45, %c0_46] : memref<2x168x84xf32, #tpu.memory_space<vmem>>, vector<1x168x84xf32>
    %45 = vector.shape_cast %44 : vector<1x168x84xf32> to vector<168x84xf32>
    %cst_47 = arith.constant dense<0.000000e+00> : vector<14x84xf32>
    %46 = tpu.matmul %40, %45, %cst_47 {dimension_numbers = #tpu.dot_dimension_numbers<[1], [0], [0], [1], [0, 0, 1, 1], [], []>} : vector<14x168xf32>, vector<168x84xf32>, vector<14x84xf32> -> vector<14x84xf32>
    %47 = arith.maximumf %43, %46 : vector<14x84xf32>
    %c0_48 = arith.constant 0 : index
    %c0_49 = arith.constant 0 : index
    %48 = vector.load %arg17[%c0_48, %c0_49] : memref<14x84xf32, #tpu.memory_space<vmem>>, vector<14x84xf32>
    tpu.vector_store %arg17[%c0_48, %c0_49], %47 {strides = array<i32>} : memref<14x84xf32, #tpu.memory_space<vmem>>, vector<14x84xf32>,
    %c0_50 = arith.constant 0 : index
    %c0_51 = arith.constant 0 : index
    %49 = vector.load %arg17[%c0_50, %c0_51] : memref<14x84xf32, #tpu.memory_space<vmem>>, vector<10x84xf32>
    %c0_52 = arith.constant 0 : index
    %c0_53 = arith.constant 0 : index
    %c0_54 = arith.constant 0 : index
    %50 = vector.load %arg6[%c0_52, %c0_53, %c0_54] : memref<5x84x160xf32, #tpu.memory_space<vmem>>, vector<1x84x160xf32>
    %51 = vector.shape_cast %50 : vector<1x84x160xf32> to vector<84x160xf32>
    %cst_55 = arith.constant dense<0.000000e+00> : vector<10x160xf32>
    %52 = tpu.matmul %49, %51, %cst_55 {dimension_numbers = #tpu.dot_dimension_numbers<[1], [0], [0], [1], [0, 0, 1, 1], [], []>} : vector<10x84xf32>, vector<84x160xf32>, vector<10x160xf32> -> vector<10x160xf32>
    %c1_56 = arith.constant 1 : index
    %c0_57 = arith.constant 0 : index
    %53 = vector.load %arg17[%c1_56, %c0_57] : memref<14x84xf32, #tpu.memory_space<vmem>>, vector<10x84xf32>
    %c1_58 = arith.constant 1 : index
    %c0_59 = arith.constant 0 : index
    %c0_60 = arith.constant 0 : index
    %54 = vector.load %arg6[%c1_58, %c0_59, %c0_60] : memref<5x84x160xf32, #tpu.memory_space<vmem>>, vector<1x84x160xf32>
    %55 = vector.shape_cast %54 : vector<1x84x160xf32> to vector<84x160xf32>
    %cst_61 = arith.constant dense<0.000000e+00> : vector<10x160xf32>
    %56 = tpu.matmul %53, %55, %cst_61 {dimension_numbers = #tpu.dot_dimension_numbers<[1], [0], [0], [1], [0, 0, 1, 1], [], []>} : vector<10x84xf32>, vector<84x160xf32>, vector<10x160xf32> -> vector<10x160xf32>
    %57 = arith.addf %52, %56 : vector<10x160xf32>
    %c2_62 = arith.constant 2 : index
    %c0_63 = arith.constant 0 : index
    %58 = vector.load %arg17[%c2_62, %c0_63] : memref<14x84xf32, #tpu.memory_space<vmem>>, vector<10x84xf32>
    %c2_64 = arith.constant 2 : index
    %c0_65 = arith.constant 0 : index
    %c0_66 = arith.constant 0 : index
    %59 = vector.load %arg6[%c2_64, %c0_65, %c0_66] : memref<5x84x160xf32, #tpu.memory_space<vmem>>, vector<1x84x160xf32>
    %60 = vector.shape_cast %59 : vector<1x84x160xf32> to vector<84x160xf32>
    %cst_67 = arith.constant dense<0.000000e+00> : vector<10x160xf32>
    %61 = tpu.matmul %58, %60, %cst_67 {dimension_numbers = #tpu.dot_dimension_numbers<[1], [0], [0], [1], [0, 0, 1, 1], [], []>} : vector<10x84xf32>, vector<84x160xf32>, vector<10x160xf32> -> vector<10x160xf32>
    %62 = arith.addf %57, %61 : vector<10x160xf32>
    %c3_68 = arith.constant 3 : index
    %c0_69 = arith.constant 0 : index
    %63 = vector.load %arg17[%c3_68, %c0_69] : memref<14x84xf32, #tpu.memory_space<vmem>>, vector<10x84xf32>
    %c3_70 = arith.constant 3 : index
    %c0_71 = arith.constant 0 : index
    %c0_72 = arith.constant 0 : index
    %64 = vector.load %arg6[%c3_70, %c0_71, %c0_72] : memref<5x84x160xf32, #tpu.memory_space<vmem>>, vector<1x84x160xf32>
    %65 = vector.shape_cast %64 : vector<1x84x160xf32> to vector<84x160xf32>
    %cst_73 = arith.constant dense<0.000000e+00> : vector<10x160xf32>
    %66 = tpu.matmul %63, %65, %cst_73 {dimension_numbers = #tpu.dot_dimension_numbers<[1], [0], [0], [1], [0, 0, 1, 1], [], []>} : vector<10x84xf32>, vector<84x160xf32>, vector<10x160xf32> -> vector<10x160xf32>
    %67 = arith.addf %62, %66 : vector<10x160xf32>
    %c4_74 = arith.constant 4 : index
    %c0_75 = arith.constant 0 : index
    %68 = vector.load %arg17[%c4_74, %c0_75] : memref<14x84xf32, #tpu.memory_space<vmem>>, vector<10x84xf32>
    %c4_76 = arith.constant 4 : index
    %c0_77 = arith.constant 0 : index
    %c0_78 = arith.constant 0 : index
    %69 = vector.load %arg6[%c4_76, %c0_77, %c0_78] : memref<5x84x160xf32, #tpu.memory_space<vmem>>, vector<1x84x160xf32>
    %70 = vector.shape_cast %69 : vector<1x84x160xf32> to vector<84x160xf32>
    %cst_79 = arith.constant dense<0.000000e+00> : vector<10x160xf32>
    %71 = tpu.matmul %68, %70, %cst_79 {dimension_numbers = #tpu.dot_dimension_numbers<[1], [0], [0], [1], [0, 0, 1, 1], [], []>} : vector<10x84xf32>, vector<84x160xf32>, vector<10x160xf32> -> vector<10x160xf32>
    %72 = arith.addf %67, %71 : vector<10x160xf32>
    %c0_80 = arith.constant 0 : index
    %c0_81 = arith.constant 0 : index
    %73 = vector.load %arg7[%c0_80, %c0_81] : memref<1x160xf32, #tpu.memory_space<vmem>>, vector<1x160xf32>
    %74 = vector.broadcast %73 : vector<1x160xf32> to vector<10x160xf32>
    %75 = arith.addf %72, %74 : vector<10x160xf32>
    %cst_82 = arith.constant 0.000000e+00 : f32
    %76 = vector.broadcast %cst_82 : f32 to vector<10x160xf32>
    %77 = arith.maximumf %75, %76 : vector<10x160xf32>
    %c0_83 = arith.constant 0 : index
    %c0_84 = arith.constant 0 : index
    %c0_85 = arith.constant 0 : index
    %78 = vector.load %arg8[%c0_83, %c0_84, %c0_85] : memref<2x5x10xf32, #tpu.memory_space<vmem>>, vector<1x5x10xf32>
    %79 = vector.shape_cast %78 : vector<1x5x10xf32> to vector<5x10xf32>
    %cst_86 = arith.constant dense<0.000000e+00> : vector<5x160xf32>
    %80 = tpu.matmul %79, %77, %cst_86 {dimension_numbers = #tpu.dot_dimension_numbers<[1], [0], [0], [1], [0, 0, 1, 1], [], []>} : vector<5x10xf32>, vector<10x160xf32>, vector<5x160xf32> -> vector<5x160xf32>
    %c1_87 = arith.constant 1 : index
    %c0_88 = arith.constant 0 : index
    %c0_89 = arith.constant 0 : index
    %81 = vector.load %arg8[%c1_87, %c0_88, %c0_89] : memref<2x5x10xf32, #tpu.memory_space<vmem>>, vector<1x5x10xf32>
    %82 = vector.shape_cast %81 : vector<1x5x10xf32> to vector<5x10xf32>
    %cst_90 = arith.constant dense<0.000000e+00> : vector<5x160xf32>
    %83 = tpu.matmul %82, %77, %cst_90 {dimension_numbers = #tpu.dot_dimension_numbers<[1], [0], [0], [1], [0, 0, 1, 1], [], []>} : vector<5x10xf32>, vector<10x160xf32>, vector<5x160xf32> -> vector<5x160xf32>
    %84 = arith.maximumf %80, %83 : vector<5x160xf32>
    %c0_91 = arith.constant 0 : index
    %c0_92 = arith.constant 0 : index
    %c0_93 = arith.constant 0 : index
    %85 = vector.load %arg9[%c0_91, %c0_92, %c0_93] : memref<2x160x80xf32, #tpu.memory_space<vmem>>, vector<1x160x80xf32>
    %86 = vector.shape_cast %85 : vector<1x160x80xf32> to vector<160x80xf32>
    %cst_94 = arith.constant dense<0.000000e+00> : vector<5x80xf32>
    %87 = tpu.matmul %84, %86, %cst_94 {dimension_numbers = #tpu.dot_dimension_numbers<[1], [0], [0], [1], [0, 0, 1, 1], [], []>} : vector<5x160xf32>, vector<160x80xf32>, vector<5x80xf32> -> vector<5x80xf32>
    %c1_95 = arith.constant 1 : index
    %c0_96 = arith.constant 0 : index
    %c0_97 = arith.constant 0 : index
    %88 = vector.load %arg9[%c1_95, %c0_96, %c0_97] : memref<2x160x80xf32, #tpu.memory_space<vmem>>, vector<1x160x80xf32>
    %89 = vector.shape_cast %88 : vector<1x160x80xf32> to vector<160x80xf32>
    %cst_98 = arith.constant dense<0.000000e+00> : vector<5x80xf32>
    %90 = tpu.matmul %84, %89, %cst_98 {dimension_numbers = #tpu.dot_dimension_numbers<[1], [0], [0], [1], [0, 0, 1, 1], [], []>} : vector<5x160xf32>, vector<160x80xf32>, vector<5x80xf32> -> vector<5x80xf32>
    %91 = arith.maximumf %87, %90 : vector<5x80xf32>
    %c0_99 = arith.constant 0 : index
    %c0_100 = arith.constant 0 : index
    %92 = vector.load %arg18[%c0_99, %c0_100] : memref<5x80xf32, #tpu.memory_space<vmem>>, vector<5x80xf32>
    tpu.vector_store %arg18[%c0_99, %c0_100], %91 {strides = array<i32>} : memref<5x80xf32, #tpu.memory_space<vmem>>, vector<5x80xf32>,
    %c0_101 = arith.constant 0 : index
    %c0_102 = arith.constant 0 : index
    %93 = vector.load %arg18[%c0_101, %c0_102] : memref<5x80xf32, #tpu.memory_space<vmem>>, vector<1x80xf32>
    %c0_103 = arith.constant 0 : index
    %c0_104 = arith.constant 0 : index
    %c0_105 = arith.constant 0 : index
    %94 = vector.load %arg10[%c0_103, %c0_104, %c0_105] : memref<5x80x120xf32, #tpu.memory_space<vmem>>, vector<1x80x120xf32>
    %95 = vector.shape_cast %94 : vector<1x80x120xf32> to vector<80x120xf32>
    %cst_106 = arith.constant dense<0.000000e+00> : vector<1x120xf32>
    %96 = tpu.matmul %93, %95, %cst_106 {dimension_numbers = #tpu.dot_dimension_numbers<[1], [0], [0], [1], [0, 0, 1, 1], [], []>} : vector<1x80xf32>, vector<80x120xf32>, vector<1x120xf32> -> vector<1x120xf32>
    %c1_107 = arith.constant 1 : index
    %c0_108 = arith.constant 0 : index
    %97 = vector.load %arg18[%c1_107, %c0_108] : memref<5x80xf32, #tpu.memory_space<vmem>>, vector<1x80xf32>
    %c1_109 = arith.constant 1 : index
    %c0_110 = arith.constant 0 : index
    %c0_111 = arith.constant 0 : index
    %98 = vector.load %arg10[%c1_109, %c0_110, %c0_111] : memref<5x80x120xf32, #tpu.memory_space<vmem>>, vector<1x80x120xf32>
    %99 = vector.shape_cast %98 : vector<1x80x120xf32> to vector<80x120xf32>
    %cst_112 = arith.constant dense<0.000000e+00> : vector<1x120xf32>
    %100 = tpu.matmul %97, %99, %cst_112 {dimension_numbers = #tpu.dot_dimension_numbers<[1], [0], [0], [1], [0, 0, 1, 1], [], []>} : vector<1x80xf32>, vector<80x120xf32>, vector<1x120xf32> -> vector<1x120xf32>
    %101 = arith.addf %96, %100 : vector<1x120xf32>
    %c2_113 = arith.constant 2 : index
    %c0_114 = arith.constant 0 : index
    %102 = vector.load %arg18[%c2_113, %c0_114] : memref<5x80xf32, #tpu.memory_space<vmem>>, vector<1x80xf32>
    %c2_115 = arith.constant 2 : index
    %c0_116 = arith.constant 0 : index
    %c0_117 = arith.constant 0 : index
    %103 = vector.load %arg10[%c2_115, %c0_116, %c0_117] : memref<5x80x120xf32, #tpu.memory_space<vmem>>, vector<1x80x120xf32>
    %104 = vector.shape_cast %103 : vector<1x80x120xf32> to vector<80x120xf32>
    %cst_118 = arith.constant dense<0.000000e+00> : vector<1x120xf32>
    %105 = tpu.matmul %102, %104, %cst_118 {dimension_numbers = #tpu.dot_dimension_numbers<[1], [0], [0], [1], [0, 0, 1, 1], [], []>} : vector<1x80xf32>, vector<80x120xf32>, vector<1x120xf32> -> vector<1x120xf32>
    %106 = arith.addf %101, %105 : vector<1x120xf32>
    %c3_119 = arith.constant 3 : index
    %c0_120 = arith.constant 0 : index
    %107 = vector.load %arg18[%c3_119, %c0_120] : memref<5x80xf32, #tpu.memory_space<vmem>>, vector<1x80xf32>
    %c3_121 = arith.constant 3 : index
    %c0_122 = arith.constant 0 : index
    %c0_123 = arith.constant 0 : index
    %108 = vector.load %arg10[%c3_121, %c0_122, %c0_123] : memref<5x80x120xf32, #tpu.memory_space<vmem>>, vector<1x80x120xf32>
    %109 = vector.shape_cast %108 : vector<1x80x120xf32> to vector<80x120xf32>
    %cst_124 = arith.constant dense<0.000000e+00> : vector<1x120xf32>
    %110 = tpu.matmul %107, %109, %cst_124 {dimension_numbers = #tpu.dot_dimension_numbers<[1], [0], [0], [1], [0, 0, 1, 1], [], []>} : vector<1x80xf32>, vector<80x120xf32>, vector<1x120xf32> -> vector<1x120xf32>
    %111 = arith.addf %106, %110 : vector<1x120xf32>
    %c4_125 = arith.constant 4 : index
    %c0_126 = arith.constant 0 : index
    %112 = vector.load %arg18[%c4_125, %c0_126] : memref<5x80xf32, #tpu.memory_space<vmem>>, vector<1x80xf32>
    %c4_127 = arith.constant 4 : index
    %c0_128 = arith.constant 0 : index
    %c0_129 = arith.constant 0 : index
    %113 = vector.load %arg10[%c4_127, %c0_128, %c0_129] : memref<5x80x120xf32, #tpu.memory_space<vmem>>, vector<1x80x120xf32>
    %114 = vector.shape_cast %113 : vector<1x80x120xf32> to vector<80x120xf32>
    %cst_130 = arith.constant dense<0.000000e+00> : vector<1x120xf32>
    %115 = tpu.matmul %112, %114, %cst_130 {dimension_numbers = #tpu.dot_dimension_numbers<[1], [0], [0], [1], [0, 0, 1, 1], [], []>} : vector<1x80xf32>, vector<80x120xf32>, vector<1x120xf32> -> vector<1x120xf32>
    %116 = arith.addf %111, %115 : vector<1x120xf32>
    %c0_131 = arith.constant 0 : index
    %c0_132 = arith.constant 0 : index
    %117 = vector.load %arg19[%c0_131, %c0_132] : memref<2x120xf32, #tpu.memory_space<vmem>>, vector<1x120xf32>
    tpu.vector_store %arg19[%c0_131, %c0_132], %116 {strides = array<i32>} : memref<2x120xf32, #tpu.memory_space<vmem>>, vector<1x120xf32>,
    %c1_133 = arith.constant 1 : index
    %c0_134 = arith.constant 0 : index
    %c0_135 = arith.constant 0 : index
    %118 = vector.load %arg1[%c1_133, %c0_134, %c0_135] : memref<2x32x96xf32, #tpu.memory_space<vmem>>, vector<1x28x96xf32>
    %119 = vector.shape_cast %118 : vector<1x28x96xf32> to vector<28x96xf32>
    %c0_136 = arith.constant 0 : index
    %c0_137 = arith.constant 0 : index
    %c0_138 = arith.constant 0 : index
    %120 = vector.load %arg2[%c0_136, %c0_137, %c0_138] : memref<5x96x168xf32, #tpu.memory_space<vmem>>, vector<1x96x168xf32>
    %121 = vector.shape_cast %120 : vector<1x96x168xf32> to vector<96x168xf32>
    %cst_139 = arith.constant dense<0.000000e+00> : vector<28x168xf32>
    %122 = tpu.matmul %119, %121, %cst_139 {dimension_numbers = #tpu.dot_dimension_numbers<[1], [0], [0], [1], [0, 0, 1, 1], [], []>} : vector<28x96xf32>, vector<96x168xf32>, vector<28x168xf32> -> vector<28x168xf32>
    %c1_140 = arith.constant 1 : index
    %c1_141 = arith.constant 1 : index
    %c0_142 = arith.constant 0 : index
    %123 = vector.load %arg1[%c1_140, %c1_141, %c0_142] : memref<2x32x96xf32, #tpu.memory_space<vmem>>, vector<1x28x96xf32>
    %124 = vector.shape_cast %123 : vector<1x28x96xf32> to vector<28x96xf32>
    %c1_143 = arith.constant 1 : index
    %c0_144 = arith.constant 0 : index
    %c0_145 = arith.constant 0 : index
    %125 = vector.load %arg2[%c1_143, %c0_144, %c0_145] : memref<5x96x168xf32, #tpu.memory_space<vmem>>, vector<1x96x168xf32>
    %126 = vector.shape_cast %125 : vector<1x96x168xf32> to vector<96x168xf32>
    %cst_146 = arith.constant dense<0.000000e+00> : vector<28x168xf32>
    %127 = tpu.matmul %124, %126, %cst_146 {dimension_numbers = #tpu.dot_dimension_numbers<[1], [0], [0], [1], [0, 0, 1, 1], [], []>} : vector<28x96xf32>, vector<96x168xf32>, vector<28x168xf32> -> vector<28x168xf32>
    %128 = arith.addf %122, %127 : vector<28x168xf32>
    %c1_147 = arith.constant 1 : index
    %c2_148 = arith.constant 2 : index
    %c0_149 = arith.constant 0 : index
    %129 = vector.load %arg1[%c1_147, %c2_148, %c0_149] : memref<2x32x96xf32, #tpu.memory_space<vmem>>, vector<1x28x96xf32>
    %130 = vector.shape_cast %129 : vector<1x28x96xf32> to vector<28x96xf32>
    %c2_150 = arith.constant 2 : index
    %c0_151 = arith.constant 0 : index
    %c0_152 = arith.constant 0 : index
    %131 = vector.load %arg2[%c2_150, %c0_151, %c0_152] : memref<5x96x168xf32, #tpu.memory_space<vmem>>, vector<1x96x168xf32>
    %132 = vector.shape_cast %131 : vector<1x96x168xf32> to vector<96x168xf32>
    %cst_153 = arith.constant dense<0.000000e+00> : vector<28x168xf32>
    %133 = tpu.matmul %130, %132, %cst_153 {dimension_numbers = #tpu.dot_dimension_numbers<[1], [0], [0], [1], [0, 0, 1, 1], [], []>} : vector<28x96xf32>, vector<96x168xf32>, vector<28x168xf32> -> vector<28x168xf32>
    %134 = arith.addf %128, %133 : vector<28x168xf32>
    %c1_154 = arith.constant 1 : index
    %c3_155 = arith.constant 3 : index
    %c0_156 = arith.constant 0 : index
    %135 = vector.load %arg1[%c1_154, %c3_155, %c0_156] : memref<2x32x96xf32, #tpu.memory_space<vmem>>, vector<1x28x96xf32>
    %136 = vector.shape_cast %135 : vector<1x28x96xf32> to vector<28x96xf32>
    %c3_157 = arith.constant 3 : index
    %c0_158 = arith.constant 0 : index
    %c0_159 = arith.constant 0 : index
    %137 = vector.load %arg2[%c3_157, %c0_158, %c0_159] : memref<5x96x168xf32, #tpu.memory_space<vmem>>, vector<1x96x168xf32>
    %138 = vector.shape_cast %137 : vector<1x96x168xf32> to vector<96x168xf32>
    %cst_160 = arith.constant dense<0.000000e+00> : vector<28x168xf32>
    %139 = tpu.matmul %136, %138, %cst_160 {dimension_numbers = #tpu.dot_dimension_numbers<[1], [0], [0], [1], [0, 0, 1, 1], [], []>} : vector<28x96xf32>, vector<96x168xf32>, vector<28x168xf32> -> vector<28x168xf32>
    %140 = arith.addf %134, %139 : vector<28x168xf32>
    %c1_161 = arith.constant 1 : index
    %c4_162 = arith.constant 4 : index
    %c0_163 = arith.constant 0 : index
    %141 = vector.load %arg1[%c1_161, %c4_162, %c0_163] : memref<2x32x96xf32, #tpu.memory_space<vmem>>, vector<1x28x96xf32>
    %142 = vector.shape_cast %141 : vector<1x28x96xf32> to vector<28x96xf32>
    %c4_164 = arith.constant 4 : index
    %c0_165 = arith.constant 0 : index
    %c0_166 = arith.constant 0 : index
    %143 = vector.load %arg2[%c4_164, %c0_165, %c0_166] : memref<5x96x168xf32, #tpu.memory_space<vmem>>, vector<1x96x168xf32>
    %144 = vector.shape_cast %143 : vector<1x96x168xf32> to vector<96x168xf32>
    %cst_167 = arith.constant dense<0.000000e+00> : vector<28x168xf32>
    %145 = tpu.matmul %142, %144, %cst_167 {dimension_numbers = #tpu.dot_dimension_numbers<[1], [0], [0], [1], [0, 0, 1, 1], [], []>} : vector<28x96xf32>, vector<96x168xf32>, vector<28x168xf32> -> vector<28x168xf32>
    %146 = arith.addf %140, %145 : vector<28x168xf32>
    %c0_168 = arith.constant 0 : index
    %c0_169 = arith.constant 0 : index
    %147 = vector.load %arg3[%c0_168, %c0_169] : memref<1x168xf32, #tpu.memory_space<vmem>>, vector<1x168xf32>
    %148 = vector.broadcast %147 : vector<1x168xf32> to vector<28x168xf32>
    %149 = arith.addf %146, %148 : vector<28x168xf32>
    %cst_170 = arith.constant 0.000000e+00 : f32
    %150 = vector.broadcast %cst_170 : f32 to vector<28x168xf32>
    %151 = arith.maximumf %149, %150 : vector<28x168xf32>
    %c0_171 = arith.constant 0 : index
    %c0_172 = arith.constant 0 : index
    %c0_173 = arith.constant 0 : index
    %152 = vector.load %arg4[%c0_171, %c0_172, %c0_173] : memref<2x14x28xf32, #tpu.memory_space<vmem>>, vector<1x14x28xf32>
    %153 = vector.shape_cast %152 : vector<1x14x28xf32> to vector<14x28xf32>
    %cst_174 = arith.constant dense<0.000000e+00> : vector<14x168xf32>
    %154 = tpu.matmul %153, %151, %cst_174 {dimension_numbers = #tpu.dot_dimension_numbers<[1], [0], [0], [1], [0, 0, 1, 1], [], []>} : vector<14x28xf32>, vector<28x168xf32>, vector<14x168xf32> -> vector<14x168xf32>
    %c1_175 = arith.constant 1 : index
    %c0_176 = arith.constant 0 : index
    %c0_177 = arith.constant 0 : index
    %155 = vector.load %arg4[%c1_175, %c0_176, %c0_177] : memref<2x14x28xf32, #tpu.memory_space<vmem>>, vector<1x14x28xf32>
    %156 = vector.shape_cast %155 : vector<1x14x28xf32> to vector<14x28xf32>
    %cst_178 = arith.constant dense<0.000000e+00> : vector<14x168xf32>
    %157 = tpu.matmul %156, %151, %cst_178 {dimension_numbers = #tpu.dot_dimension_numbers<[1], [0], [0], [1], [0, 0, 1, 1], [], []>} : vector<14x28xf32>, vector<28x168xf32>, vector<14x168xf32> -> vector<14x168xf32>
    %158 = arith.maximumf %154, %157 : vector<14x168xf32>
    %c0_179 = arith.constant 0 : index
    %c0_180 = arith.constant 0 : index
    %c0_181 = arith.constant 0 : index
    %159 = vector.load %arg5[%c0_179, %c0_180, %c0_181] : memref<2x168x84xf32, #tpu.memory_space<vmem>>, vector<1x168x84xf32>
    %160 = vector.shape_cast %159 : vector<1x168x84xf32> to vector<168x84xf32>
    %cst_182 = arith.constant dense<0.000000e+00> : vector<14x84xf32>
    %161 = tpu.matmul %158, %160, %cst_182 {dimension_numbers = #tpu.dot_dimension_numbers<[1], [0], [0], [1], [0, 0, 1, 1], [], []>} : vector<14x168xf32>, vector<168x84xf32>, vector<14x84xf32> -> vector<14x84xf32>
    %c1_183 = arith.constant 1 : index
    %c0_184 = arith.constant 0 : index
    %c0_185 = arith.constant 0 : index
    %162 = vector.load %arg5[%c1_183, %c0_184, %c0_185] : memref<2x168x84xf32, #tpu.memory_space<vmem>>, vector<1x168x84xf32>
    %163 = vector.shape_cast %162 : vector<1x168x84xf32> to vector<168x84xf32>
    %cst_186 = arith.constant dense<0.000000e+00> : vector<14x84xf32>
    %164 = tpu.matmul %158, %163, %cst_186 {dimension_numbers = #tpu.dot_dimension_numbers<[1], [0], [0], [1], [0, 0, 1, 1], [], []>} : vector<14x168xf32>, vector<168x84xf32>, vector<14x84xf32> -> vector<14x84xf32>
    %165 = arith.maximumf %161, %164 : vector<14x84xf32>
    %c0_187 = arith.constant 0 : index
    %c0_188 = arith.constant 0 : index
    %166 = vector.load %arg17[%c0_187, %c0_188] : memref<14x84xf32, #tpu.memory_space<vmem>>, vector<14x84xf32>
    tpu.vector_store %arg17[%c0_187, %c0_188], %165 {strides = array<i32>} : memref<14x84xf32, #tpu.memory_space<vmem>>, vector<14x84xf32>,
    %c0_189 = arith.constant 0 : index
    %c0_190 = arith.constant 0 : index
    %167 = vector.load %arg17[%c0_189, %c0_190] : memref<14x84xf32, #tpu.memory_space<vmem>>, vector<10x84xf32>
    %c0_191 = arith.constant 0 : index
    %c0_192 = arith.constant 0 : index
    %c0_193 = arith.constant 0 : index
    %168 = vector.load %arg6[%c0_191, %c0_192, %c0_193] : memref<5x84x160xf32, #tpu.memory_space<vmem>>, vector<1x84x160xf32>
    %169 = vector.shape_cast %168 : vector<1x84x160xf32> to vector<84x160xf32>
    %cst_194 = arith.constant dense<0.000000e+00> : vector<10x160xf32>
    %170 = tpu.matmul %167, %169, %cst_194 {dimension_numbers = #tpu.dot_dimension_numbers<[1], [0], [0], [1], [0, 0, 1, 1], [], []>} : vector<10x84xf32>, vector<84x160xf32>, vector<10x160xf32> -> vector<10x160xf32>
    %c1_195 = arith.constant 1 : index
    %c0_196 = arith.constant 0 : index
    %171 = vector.load %arg17[%c1_195, %c0_196] : memref<14x84xf32, #tpu.memory_space<vmem>>, vector<10x84xf32>
    %c1_197 = arith.constant 1 : index
    %c0_198 = arith.constant 0 : index
    %c0_199 = arith.constant 0 : index
    %172 = vector.load %arg6[%c1_197, %c0_198, %c0_199] : memref<5x84x160xf32, #tpu.memory_space<vmem>>, vector<1x84x160xf32>
    %173 = vector.shape_cast %172 : vector<1x84x160xf32> to vector<84x160xf32>
    %cst_200 = arith.constant dense<0.000000e+00> : vector<10x160xf32>
    %174 = tpu.matmul %171, %173, %cst_200 {dimension_numbers = #tpu.dot_dimension_numbers<[1], [0], [0], [1], [0, 0, 1, 1], [], []>} : vector<10x84xf32>, vector<84x160xf32>, vector<10x160xf32> -> vector<10x160xf32>
    %175 = arith.addf %170, %174 : vector<10x160xf32>
    %c2_201 = arith.constant 2 : index
    %c0_202 = arith.constant 0 : index
    %176 = vector.load %arg17[%c2_201, %c0_202] : memref<14x84xf32, #tpu.memory_space<vmem>>, vector<10x84xf32>
    %c2_203 = arith.constant 2 : index
    %c0_204 = arith.constant 0 : index
    %c0_205 = arith.constant 0 : index
    %177 = vector.load %arg6[%c2_203, %c0_204, %c0_205] : memref<5x84x160xf32, #tpu.memory_space<vmem>>, vector<1x84x160xf32>
    %178 = vector.shape_cast %177 : vector<1x84x160xf32> to vector<84x160xf32>
    %cst_206 = arith.constant dense<0.000000e+00> : vector<10x160xf32>
    %179 = tpu.matmul %176, %178, %cst_206 {dimension_numbers = #tpu.dot_dimension_numbers<[1], [0], [0], [1], [0, 0, 1, 1], [], []>} : vector<10x84xf32>, vector<84x160xf32>, vector<10x160xf32> -> vector<10x160xf32>
    %180 = arith.addf %175, %179 : vector<10x160xf32>
    %c3_207 = arith.constant 3 : index
    %c0_208 = arith.constant 0 : index
    %181 = vector.load %arg17[%c3_207, %c0_208] : memref<14x84xf32, #tpu.memory_space<vmem>>, vector<10x84xf32>
    %c3_209 = arith.constant 3 : index
    %c0_210 = arith.constant 0 : index
    %c0_211 = arith.constant 0 : index
    %182 = vector.load %arg6[%c3_209, %c0_210, %c0_211] : memref<5x84x160xf32, #tpu.memory_space<vmem>>, vector<1x84x160xf32>
    %183 = vector.shape_cast %182 : vector<1x84x160xf32> to vector<84x160xf32>
    %cst_212 = arith.constant dense<0.000000e+00> : vector<10x160xf32>
    %184 = tpu.matmul %181, %183, %cst_212 {dimension_numbers = #tpu.dot_dimension_numbers<[1], [0], [0], [1], [0, 0, 1, 1], [], []>} : vector<10x84xf32>, vector<84x160xf32>, vector<10x160xf32> -> vector<10x160xf32>
    %185 = arith.addf %180, %184 : vector<10x160xf32>
    %c4_213 = arith.constant 4 : index
    %c0_214 = arith.constant 0 : index
    %186 = vector.load %arg17[%c4_213, %c0_214] : memref<14x84xf32, #tpu.memory_space<vmem>>, vector<10x84xf32>
    %c4_215 = arith.constant 4 : index
    %c0_216 = arith.constant 0 : index
    %c0_217 = arith.constant 0 : index
    %187 = vector.load %arg6[%c4_215, %c0_216, %c0_217] : memref<5x84x160xf32, #tpu.memory_space<vmem>>, vector<1x84x160xf32>
    %188 = vector.shape_cast %187 : vector<1x84x160xf32> to vector<84x160xf32>
    %cst_218 = arith.constant dense<0.000000e+00> : vector<10x160xf32>
    %189 = tpu.matmul %186, %188, %cst_218 {dimension_numbers = #tpu.dot_dimension_numbers<[1], [0], [0], [1], [0, 0, 1, 1], [], []>} : vector<10x84xf32>, vector<84x160xf32>, vector<10x160xf32> -> vector<10x160xf32>
    %190 = arith.addf %185, %189 : vector<10x160xf32>
    %c0_219 = arith.constant 0 : index
    %c0_220 = arith.constant 0 : index
    %191 = vector.load %arg7[%c0_219, %c0_220] : memref<1x160xf32, #tpu.memory_space<vmem>>, vector<1x160xf32>
    %192 = vector.broadcast %191 : vector<1x160xf32> to vector<10x160xf32>
    %193 = arith.addf %190, %192 : vector<10x160xf32>
    %cst_221 = arith.constant 0.000000e+00 : f32
    %194 = vector.broadcast %cst_221 : f32 to vector<10x160xf32>
    %195 = arith.maximumf %193, %194 : vector<10x160xf32>
    %c0_222 = arith.constant 0 : index
    %c0_223 = arith.constant 0 : index
    %c0_224 = arith.constant 0 : index
    %196 = vector.load %arg8[%c0_222, %c0_223, %c0_224] : memref<2x5x10xf32, #tpu.memory_space<vmem>>, vector<1x5x10xf32>
    %197 = vector.shape_cast %196 : vector<1x5x10xf32> to vector<5x10xf32>
    %cst_225 = arith.constant dense<0.000000e+00> : vector<5x160xf32>
    %198 = tpu.matmul %197, %195, %cst_225 {dimension_numbers = #tpu.dot_dimension_numbers<[1], [0], [0], [1], [0, 0, 1, 1], [], []>} : vector<5x10xf32>, vector<10x160xf32>, vector<5x160xf32> -> vector<5x160xf32>
    %c1_226 = arith.constant 1 : index
    %c0_227 = arith.constant 0 : index
    %c0_228 = arith.constant 0 : index
    %199 = vector.load %arg8[%c1_226, %c0_227, %c0_228] : memref<2x5x10xf32, #tpu.memory_space<vmem>>, vector<1x5x10xf32>
    %200 = vector.shape_cast %199 : vector<1x5x10xf32> to vector<5x10xf32>
    %cst_229 = arith.constant dense<0.000000e+00> : vector<5x160xf32>
    %201 = tpu.matmul %200, %195, %cst_229 {dimension_numbers = #tpu.dot_dimension_numbers<[1], [0], [0], [1], [0, 0, 1, 1], [], []>} : vector<5x10xf32>, vector<10x160xf32>, vector<5x160xf32> -> vector<5x160xf32>
    %202 = arith.maximumf %198, %201 : vector<5x160xf32>
    %c0_230 = arith.constant 0 : index
    %c0_231 = arith.constant 0 : index
    %c0_232 = arith.constant 0 : index
    %203 = vector.load %arg9[%c0_230, %c0_231, %c0_232] : memref<2x160x80xf32, #tpu.memory_space<vmem>>, vector<1x160x80xf32>
    %204 = vector.shape_cast %203 : vector<1x160x80xf32> to vector<160x80xf32>
    %cst_233 = arith.constant dense<0.000000e+00> : vector<5x80xf32>
    %205 = tpu.matmul %202, %204, %cst_233 {dimension_numbers = #tpu.dot_dimension_numbers<[1], [0], [0], [1], [0, 0, 1, 1], [], []>} : vector<5x160xf32>, vector<160x80xf32>, vector<5x80xf32> -> vector<5x80xf32>
    %c1_234 = arith.constant 1 : index
    %c0_235 = arith.constant 0 : index
    %c0_236 = arith.constant 0 : index
    %206 = vector.load %arg9[%c1_234, %c0_235, %c0_236] : memref<2x160x80xf32, #tpu.memory_space<vmem>>, vector<1x160x80xf32>
    %207 = vector.shape_cast %206 : vector<1x160x80xf32> to vector<160x80xf32>
    %cst_237 = arith.constant dense<0.000000e+00> : vector<5x80xf32>
    %208 = tpu.matmul %202, %207, %cst_237 {dimension_numbers = #tpu.dot_dimension_numbers<[1], [0], [0], [1], [0, 0, 1, 1], [], []>} : vector<5x160xf32>, vector<160x80xf32>, vector<5x80xf32> -> vector<5x80xf32>
    %209 = arith.maximumf %205, %208 : vector<5x80xf32>
    %c0_238 = arith.constant 0 : index
    %c0_239 = arith.constant 0 : index
    %210 = vector.load %arg18[%c0_238, %c0_239] : memref<5x80xf32, #tpu.memory_space<vmem>>, vector<5x80xf32>
    tpu.vector_store %arg18[%c0_238, %c0_239], %209 {strides = array<i32>} : memref<5x80xf32, #tpu.memory_space<vmem>>, vector<5x80xf32>,
    %c0_240 = arith.constant 0 : index
    %c0_241 = arith.constant 0 : index
    %211 = vector.load %arg18[%c0_240, %c0_241] : memref<5x80xf32, #tpu.memory_space<vmem>>, vector<1x80xf32>
    %c0_242 = arith.constant 0 : index
    %c0_243 = arith.constant 0 : index
    %c0_244 = arith.constant 0 : index
    %212 = vector.load %arg10[%c0_242, %c0_243, %c0_244] : memref<5x80x120xf32, #tpu.memory_space<vmem>>, vector<1x80x120xf32>
    %213 = vector.shape_cast %212 : vector<1x80x120xf32> to vector<80x120xf32>
    %cst_245 = arith.constant dense<0.000000e+00> : vector<1x120xf32>
    %214 = tpu.matmul %211, %213, %cst_245 {dimension_numbers = #tpu.dot_dimension_numbers<[1], [0], [0], [1], [0, 0, 1, 1], [], []>} : vector<1x80xf32>, vector<80x120xf32>, vector<1x120xf32> -> vector<1x120xf32>
    %c1_246 = arith.constant 1 : index
    %c0_247 = arith.constant 0 : index
    %215 = vector.load %arg18[%c1_246, %c0_247] : memref<5x80xf32, #tpu.memory_space<vmem>>, vector<1x80xf32>
    %c1_248 = arith.constant 1 : index
    %c0_249 = arith.constant 0 : index
    %c0_250 = arith.constant 0 : index
    %216 = vector.load %arg10[%c1_248, %c0_249, %c0_250] : memref<5x80x120xf32, #tpu.memory_space<vmem>>, vector<1x80x120xf32>
    %217 = vector.shape_cast %216 : vector<1x80x120xf32> to vector<80x120xf32>
    %cst_251 = arith.constant dense<0.000000e+00> : vector<1x120xf32>
    %218 = tpu.matmul %215, %217, %cst_251 {dimension_numbers = #tpu.dot_dimension_numbers<[1], [0], [0], [1], [0, 0, 1, 1], [], []>} : vector<1x80xf32>, vector<80x120xf32>, vector<1x120xf32> -> vector<1x120xf32>
    %219 = arith.addf %214, %218 : vector<1x120xf32>
    %c2_252 = arith.constant 2 : index
    %c0_253 = arith.constant 0 : index
    %220 = vector.load %arg18[%c2_252, %c0_253] : memref<5x80xf32, #tpu.memory_space<vmem>>, vector<1x80xf32>
    %c2_254 = arith.constant 2 : index
    %c0_255 = arith.constant 0 : index
    %c0_256 = arith.constant 0 : index
    %221 = vector.load %arg10[%c2_254, %c0_255, %c0_256] : memref<5x80x120xf32, #tpu.memory_space<vmem>>, vector<1x80x120xf32>
    %222 = vector.shape_cast %221 : vector<1x80x120xf32> to vector<80x120xf32>
    %cst_257 = arith.constant dense<0.000000e+00> : vector<1x120xf32>
    %223 = tpu.matmul %220, %222, %cst_257 {dimension_numbers = #tpu.dot_dimension_numbers<[1], [0], [0], [1], [0, 0, 1, 1], [], []>} : vector<1x80xf32>, vector<80x120xf32>, vector<1x120xf32> -> vector<1x120xf32>
    %224 = arith.addf %219, %223 : vector<1x120xf32>
    %c3_258 = arith.constant 3 : index
    %c0_259 = arith.constant 0 : index
    %225 = vector.load %arg18[%c3_258, %c0_259] : memref<5x80xf32, #tpu.memory_space<vmem>>, vector<1x80xf32>
    %c3_260 = arith.constant 3 : index
    %c0_261 = arith.constant 0 : index
    %c0_262 = arith.constant 0 : index
    %226 = vector.load %arg10[%c3_260, %c0_261, %c0_262] : memref<5x80x120xf32, #tpu.memory_space<vmem>>, vector<1x80x120xf32>
    %227 = vector.shape_cast %226 : vector<1x80x120xf32> to vector<80x120xf32>
    %cst_263 = arith.constant dense<0.000000e+00> : vector<1x120xf32>
    %228 = tpu.matmul %225, %227, %cst_263 {dimension_numbers = #tpu.dot_dimension_numbers<[1], [0], [0], [1], [0, 0, 1, 1], [], []>} : vector<1x80xf32>, vector<80x120xf32>, vector<1x120xf32> -> vector<1x120xf32>
    %229 = arith.addf %224, %228 : vector<1x120xf32>
    %c4_264 = arith.constant 4 : index
    %c0_265 = arith.constant 0 : index
    %230 = vector.load %arg18[%c4_264, %c0_265] : memref<5x80xf32, #tpu.memory_space<vmem>>, vector<1x80xf32>
    %c4_266 = arith.constant 4 : index
    %c0_267 = arith.constant 0 : index
    %c0_268 = arith.constant 0 : index
    %231 = vector.load %arg10[%c4_266, %c0_267, %c0_268] : memref<5x80x120xf32, #tpu.memory_space<vmem>>, vector<1x80x120xf32>
    %232 = vector.shape_cast %231 : vector<1x80x120xf32> to vector<80x120xf32>
    %cst_269 = arith.constant dense<0.000000e+00> : vector<1x120xf32>
    %233 = tpu.matmul %230, %232, %cst_269 {dimension_numbers = #tpu.dot_dimension_numbers<[1], [0], [0], [1], [0, 0, 1, 1], [], []>} : vector<1x80xf32>, vector<80x120xf32>, vector<1x120xf32> -> vector<1x120xf32>
    %234 = arith.addf %229, %233 : vector<1x120xf32>
    %c1_270 = arith.constant 1 : index
    %c0_271 = arith.constant 0 : index
    %235 = vector.load %arg19[%c1_270, %c0_271] : memref<2x120xf32, #tpu.memory_space<vmem>>, vector<1x120xf32>
    tpu.vector_store %arg19[%c1_270, %c0_271], %234 {strides = array<i32>} : memref<2x120xf32, #tpu.memory_space<vmem>>, vector<1x120xf32>,
    %c0_272 = arith.constant 0 : index
    %c0_273 = arith.constant 0 : index
    %236 = vector.load %arg19[%c0_272, %c0_273] : memref<2x120xf32, #tpu.memory_space<vmem>>, vector<2x120xf32>
    %c0_274 = arith.constant 0 : index
    %c0_275 = arith.constant 0 : index
    %237 = vector.load %arg11[%c0_274, %c0_275] : memref<1x120xf32, #tpu.memory_space<vmem>>, vector<1x120xf32>
    %238 = vector.broadcast %237 : vector<1x120xf32> to vector<2x120xf32>
    %239 = arith.addf %236, %238 : vector<2x120xf32>
    %cst_276 = arith.constant 0.000000e+00 : f32
    %240 = vector.broadcast %cst_276 : f32 to vector<2x120xf32>
    %241 = arith.maximumf %239, %240 : vector<2x120xf32>
    %c0_277 = arith.constant 0 : index
    %c0_278 = arith.constant 0 : index
    %242 = vector.load %arg12[%c0_277, %c0_278] : memref<120x84xf32, #tpu.memory_space<vmem>>, vector<120x84xf32>
    %cst_279 = arith.constant dense<0.000000e+00> : vector<2x84xf32>
    %243 = tpu.matmul %241, %242, %cst_279 {dimension_numbers = #tpu.dot_dimension_numbers<[1], [0], [0], [1], [0, 0, 1, 1], [], []>} : vector<2x120xf32>, vector<120x84xf32>, vector<2x84xf32> -> vector<2x84xf32>
    %c0_280 = arith.constant 0 : index
    %c0_281 = arith.constant 0 : index
    %244 = vector.load %arg13[%c0_280, %c0_281] : memref<1x84xf32, #tpu.memory_space<vmem>>, vector<1x84xf32>
    %245 = vector.broadcast %244 : vector<1x84xf32> to vector<2x84xf32>
    %246 = arith.addf %243, %245 : vector<2x84xf32>
    %cst_282 = arith.constant 0.000000e+00 : f32
    %247 = vector.broadcast %cst_282 : f32 to vector<2x84xf32>
    %248 = arith.maximumf %246, %247 : vector<2x84xf32>
    %c0_283 = arith.constant 0 : index
    %c0_284 = arith.constant 0 : index
    %249 = vector.load %arg14[%c0_283, %c0_284] : memref<84x10xf32, #tpu.memory_space<vmem>>, vector<84x10xf32>
    %cst_285 = arith.constant dense<0.000000e+00> : vector<2x10xf32>
    %250 = tpu.matmul %248, %249, %cst_285 {dimension_numbers = #tpu.dot_dimension_numbers<[1], [0], [0], [1], [0, 0, 1, 1], [], []>} : vector<2x84xf32>, vector<84x10xf32>, vector<2x10xf32> -> vector<2x10xf32>
    %c0_286 = arith.constant 0 : index
    %c0_287 = arith.constant 0 : index
    %251 = vector.load %arg15[%c0_286, %c0_287] : memref<1x10xf32, #tpu.memory_space<vmem>>, vector<1x10xf32>
    %252 = vector.broadcast %251 : vector<1x10xf32> to vector<2x10xf32>
    %253 = arith.addf %250, %252 : vector<2x10xf32>
    %c0_288 = arith.constant 0 : index
    %c0_289 = arith.constant 0 : index
    %254 = vector.load %arg16[%c0_288, %c0_289] : memref<2x10xf32, #tpu.memory_space<vmem>>, vector<2x10xf32>
    tpu.vector_store %arg16[%c0_288, %c0_289], %253 {strides = array<i32>} : memref<2x10xf32, #tpu.memory_space<vmem>>, vector<2x10xf32>,
    return
  }
  func.func @transform_0(%arg0: i32) -> (i32, i32, i32) {
    %c0_i32 = arith.constant 0 : i32
    %c0_i32_0 = arith.constant 0 : i32
    %c0_i32_1 = arith.constant 0 : i32
    return %arg0, %c0_i32, %c0_i32_0 : i32, i32, i32
  }
  func.func @transform_1(%arg0: i32) -> (i32, i32, i32) {
    %c0_i32 = arith.constant 0 : i32
    %c0_i32_0 = arith.constant 0 : i32
    %c0_i32_1 = arith.constant 0 : i32
    %c0_i32_2 = arith.constant 0 : i32
    return %c0_i32, %c0_i32_0, %c0_i32_1 : i32, i32, i32
  }
  func.func @transform_2(%arg0: i32) -> (i32, i32) {
    %c0_i32 = arith.constant 0 : i32
    %c0_i32_0 = arith.constant 0 : i32
    %c0_i32_1 = arith.constant 0 : i32
    return %c0_i32, %c0_i32_0 : i32, i32
  }
  func.func @transform_3(%arg0: i32) -> (i32, i32, i32) {
    %c0_i32 = arith.constant 0 : i32
    %c0_i32_0 = arith.constant 0 : i32
    %c0_i32_1 = arith.constant 0 : i32
    %c0_i32_2 = arith.constant 0 : i32
    return %c0_i32, %c0_i32_0, %c0_i32_1 : i32, i32, i32
  }
  func.func @transform_4(%arg0: i32) -> (i32, i32, i32) {
    %c0_i32 = arith.constant 0 : i32
    %c0_i32_0 = arith.constant 0 : i32
    %c0_i32_1 = arith.constant 0 : i32
    %c0_i32_2 = arith.constant 0 : i32
    return %c0_i32, %c0_i32_0, %c0_i32_1 : i32, i32, i32
  }
  func.func @transform_5(%arg0: i32) -> (i32, i32, i32) {
    %c0_i32 = arith.constant 0 : i32
    %c0_i32_0 = arith.constant 0 : i32
    %c0_i32_1 = arith.constant 0 : i32
    %c0_i32_2 = arith.constant 0 : i32
    return %c0_i32, %c0_i32_0, %c0_i32_1 : i32, i32, i32
  }
  func.func @transform_6(%arg0: i32) -> (i32, i32) {
    %c0_i32 = arith.constant 0 : i32
    %c0_i32_0 = arith.constant 0 : i32
    %c0_i32_1 = arith.constant 0 : i32
    return %c0_i32, %c0_i32_0 : i32, i32
  }
  func.func @transform_7(%arg0: i32) -> (i32, i32, i32) {
    %c0_i32 = arith.constant 0 : i32
    %c0_i32_0 = arith.constant 0 : i32
    %c0_i32_1 = arith.constant 0 : i32
    %c0_i32_2 = arith.constant 0 : i32
    return %c0_i32, %c0_i32_0, %c0_i32_1 : i32, i32, i32
  }
  func.func @transform_8(%arg0: i32) -> (i32, i32, i32) {
    %c0_i32 = arith.constant 0 : i32
    %c0_i32_0 = arith.constant 0 : i32
    %c0_i32_1 = arith.constant 0 : i32
    %c0_i32_2 = arith.constant 0 : i32
    return %c0_i32, %c0_i32_0, %c0_i32_1 : i32, i32, i32
  }
  func.func @transform_9(%arg0: i32) -> (i32, i32, i32) {
    %c0_i32 = arith.constant 0 : i32
    %c0_i32_0 = arith.constant 0 : i32
    %c0_i32_1 = arith.constant 0 : i32
    %c0_i32_2 = arith.constant 0 : i32
    return %c0_i32, %c0_i32_0, %c0_i32_1 : i32, i32, i32
  }
  func.func @transform_10(%arg0: i32) -> (i32, i32) {
    %c0_i32 = arith.constant 0 : i32
    %c0_i32_0 = arith.constant 0 : i32
    %c0_i32_1 = arith.constant 0 : i32
    return %c0_i32, %c0_i32_0 : i32, i32
  }
  func.func @transform_11(%arg0: i32) -> (i32, i32) {
    %c0_i32 = arith.constant 0 : i32
    %c0_i32_0 = arith.constant 0 : i32
    %c0_i32_1 = arith.constant 0 : i32
    return %c0_i32, %c0_i32_0 : i32, i32
  }
  func.func @transform_12(%arg0: i32) -> (i32, i32) {
    %c0_i32 = arith.constant 0 : i32
    %c0_i32_0 = arith.constant 0 : i32
    %c0_i32_1 = arith.constant 0 : i32
    return %c0_i32, %c0_i32_0 : i32, i32
  }
  func.func @transform_13(%arg0: i32) -> (i32, i32) {
    %c0_i32 = arith.constant 0 : i32
    %c0_i32_0 = arith.constant 0 : i32
    %c0_i32_1 = arith.constant 0 : i32
    return %c0_i32, %c0_i32_0 : i32, i32
  }
  func.func @transform_14(%arg0: i32) -> (i32, i32) {
    %c0_i32 = arith.constant 0 : i32
    %c0_i32_0 = arith.constant 0 : i32
    %c0_i32_1 = arith.constant 0 : i32
    return %c0_i32, %c0_i32_0 : i32, i32
  }
  func.func @transform_15(%arg0: i32) -> (i32, i32) {
    %c0_i32 = arith.constant 0 : i32
    %c0_i32_0 = arith.constant 0 : i32
    return %arg0, %c0_i32 : i32, i32
  }
}

</mosaic_0001>

<bundles_post_ra>
// kernel: _forward.1
= control target key start
LH: loop header
LB: loop body
LE: loop exit
PB: predicated region body
PF: predicated region fallthrough
CT: control target
= control target key end

     0   :  { %vm108_vm0 = vcmask 785408   ;;  %s7020_s0 = inlined_call_operand.vmem [shape: f32[2,32,96], index: 0, kind: input, shape index: {}]   ;;  %s7021_s1 = inlined_call_operand.vmem [shape: f32[5,96,168], index: 1, kind: input, shape index: {}]   ;;  %s7022_s2 = inlined_call_operand.vmem [shape: f32[1,168], index: 2, kind: input, shape index: {}]   ;;  %s7023_s3 = inlined_call_operand.vmem [shape: f32[2,14,28], index: 3, kind: input, shape index: {}]   ;;  %s7024_s4 = inlined_call_operand.vmem [shape: f32[2,168,84], index: 4, kind: input, shape index: {}]   ;;  %s7025_s5 = inlined_call_operand.vmem [shape: f32[5,84,160], index: 5, kind: input, shape index: {}]   ;;  %s7026_s6 = inlined_call_operand.vmem [shape: f32[1,160], index: 6, kind: input, shape index: {}]   ;;  %s7027_s7 = inlined_call_operand.vmem [shape: f32[2,5,10], index: 7, kind: input, shape index: {}]   ;;  %s7028_s8 = inlined_call_operand.vmem [shape: f32[2,160,80], index: 8, kind: input, shape index: {}]   ;;  %s7029_s9 = inlined_call_operand.vmem [shape: f32[5,80,120], index: 9, kind: input, shape index: {}]   ;;  %s7030_s10 = inlined_call_operand.vmem [shape: f32[1,120], index: 10, kind: input, shape index: {}]   ;;  %s7031_s11 = inlined_call_operand.vmem [shape: f32[120,84], index: 11, kind: input, shape index: {}]   ;;  %s7032_s12 = inlined_call_operand.vmem [shape: f32[1,84], index: 12, kind: input, shape index: {}]   ;;  %s7033_s13 = inlined_call_operand.vmem [shape: f32[84,10], index: 13, kind: input, shape index: {}]   ;;  %s7034_s14 = inlined_call_operand.vmem [shape: f32[1,10], index: 14, kind: input, shape index: {}]   ;;  %s7035_s15 = inlined_call_operand.hbm [shape: f32[2,10], index: 15, kind: output, shape index: {}]  }
   0x1   :  { %v3470_v0 = vld [vmem:[%s7021_s1 + $0x170] sm:$0xff]  ;;  %v3471_v1 = vld [vmem:[%s7021_s1 + $0x178] sm:$0xff]  ;;  %v3468_v4 = vld [vmem:[%s7021_s1 + $0x160] sm:$0xff] }
   0x2   :  { %v77_v2 = vld [vmem:[%s7021_s1 + $0xb0] sm:$0xff]  ;;  %125 = vmatpush.msra.mxu0 %v3470_v0  ;;  %154 = vmatpush.msra.mxu1 %v3471_v1  ;;  %v78_v3 = vld [vmem:[%s7021_s1 + $0xb8] sm:$0xff]  ;;  %v3469_v5 = vld [vmem:[%s7021_s1 + $0x168] sm:$0xff] }
   0x3   :  { %195 = vmatpush.msra.mxu2 %v77_v2  ;;  %224 = vmatpush.msra.mxu3 %v78_v3  ;;  %v75_v6 = vld [vmem:[%s7021_s1 + $0xa0] sm:$0xff]  ;;  %v76_v7 = vld [vmem:[%s7021_s1 + $0xa8] sm:$0xff]  ;;  %v3466_v8 = vld [vmem:[%s7021_s1 + $0x150] sm:$0xff] }
   0x4   :  { %126 = vmatpush.msra.mxu0 %v3468_v4  ;;  %155 = vmatpush.msra.mxu1 %v3469_v5  ;;  %v3467_v9 = vld [vmem:[%s7021_s1 + $0x158] sm:$0xff]  ;;  %v73_v10 = vld [vmem:[%s7021_s1 + $0x90] sm:$0xff]  ;;  %v3464_v12 = vld [vmem:[%s7021_s1 + $0x140] sm:$0xff] }
   0x5   :  { %v74_v11 = vld [vmem:[%s7021_s1 + $0x98] sm:$0xff]  ;;  %196 = vmatpush.msra.mxu2 %v75_v6  ;;  %225 = vmatpush.msra.mxu3 %v76_v7  ;;  %v3465_v13 = vld [vmem:[%s7021_s1 + $0x148] sm:$0xff]  ;;  %v71_v14 = vld [vmem:[%s7021_s1 + $0x80] sm:$0xff] }
   0x6   :  { %127 = vmatpush.msra.mxu0 %v3466_v8  ;;  %156 = vmatpush.msra.mxu1 %v3467_v9  ;;  %v72_v15 = vld [vmem:[%s7021_s1 + $0x88] sm:$0xff]  ;;  %v3462_v16 = vld [vmem:[%s7021_s1 + $0x130] sm:$0xff]  ;;  %v3463_v17 = vld [vmem:[%s7021_s1 + $0x138] sm:$0xff] }
   0x7   :  { %197 = vmatpush.msra.mxu2 %v73_v10  ;;  %226 = vmatpush.msra.mxu3 %v74_v11  ;;  %v69_v18 = vld [vmem:[%s7021_s1 + $0x70] sm:$0xff]  ;;  %v70_v19 = vld [vmem:[%s7021_s1 + $0x78] sm:$0xff]  ;;  %v3460_v20 = vld [vmem:[%s7021_s1 + $0x120] sm:$0xff] }
   0x8   :  { %128 = vmatpush.msra.mxu0 %v3464_v12  ;;  %157 = vmatpush.msra.mxu1 %v3465_v13  ;;  %v3461_v21 = vld [vmem:[%s7021_s1 + $0x128] sm:$0xff]  ;;  %v67_v22 = vld [vmem:[%s7021_s1 + $0x60] sm:$0xff]  ;;  %v3458_v24 = vld [vmem:[%s7021_s1 + $0x110] sm:$0xff] }
   0x9   :  { %198 = vmatpush.msra.mxu2 %v71_v14  ;;  %227 = vmatpush.msra.mxu3 %v72_v15  ;;  %v68_v23 = vld [vmem:[%s7021_s1 + $0x68] sm:$0xff]  ;;  %v3459_v25 = vld [vmem:[%s7021_s1 + $0x118] sm:$0xff]  ;;  %v65_v26 = vld [vmem:[%s7021_s1 + $0x50] sm:$0xff] }
   0xa   :  { %129 = vmatpush.msra.mxu0 %v3462_v16  ;;  %158 = vmatpush.msra.mxu1 %v3463_v17  ;;  %v66_v27 = vld [vmem:[%s7021_s1 + $0x58] sm:$0xff]  ;;  %v3456_v28 = vld [vmem:[%s7021_s1 + $0x100] sm:$0xff]  ;;  %v3457_v29 = vld [vmem:[%s7021_s1 + $0x108] sm:$0xff] }
   0xb   :  { %199 = vmatpush.msra.mxu2 %v69_v18  ;;  %228 = vmatpush.msra.mxu3 %v70_v19  ;;  %v63_v30 = vld [vmem:[%s7021_s1 + $0x40] sm:$0xff]  ;;  %v64_v31 = vld [vmem:[%s7021_s1 + $0x48] sm:$0xff]  ;;  %v3454_v32 = vld [vmem:[%s7021_s1 + $0xf0] sm:$0xff] }
   0xc   :  { %130 = vmatpush.msra.mxu0 %v3460_v20  ;;  %159 = vmatpush.msra.mxu1 %v3461_v21  ;;  %v3455_v33 = vld [vmem:[%s7021_s1 + $0xf8] sm:$0xff]  ;;  %v61_v34 = vld [vmem:[%s7021_s1 + $0x30] sm:$0xff]  ;;  %v3452_v36 = vld [vmem:[%s7021_s1 + $0xe0] sm:$0xff] }
   0xd   :  { %200 = vmatpush.msra.mxu2 %v67_v22  ;;  %229 = vmatpush.msra.mxu3 %v68_v23  ;;  %v62_v35 = vld [vmem:[%s7021_s1 + $0x38] sm:$0xff]  ;;  %v3453_v37 = vld [vmem:[%s7021_s1 + $0xe8] sm:$0xff]  ;;  %v59_v38 = vld [vmem:[%s7021_s1 + $0x20] sm:$0xff] }
   0xe   :  { %131 = vmatpush.msra.mxu0 %v3458_v24  ;;  %160 = vmatpush.msra.mxu1 %v3459_v25  ;;  %v60_v39 = vld [vmem:[%s7021_s1 + $0x28] sm:$0xff]  ;;  %v3450_v40 = vld [vmem:[%s7021_s1 + $0xd0] sm:$0xff]  ;;  %v3451_v41 = vld [vmem:[%s7021_s1 + $0xd8] sm:$0xff] }
   0xf   :  { %201 = vmatpush.msra.mxu2 %v65_v26  ;;  %230 = vmatpush.msra.mxu3 %v66_v27  ;;  %v57_v42 = vld [vmem:[%s7021_s1 + $0x10] sm:$0xff]  ;;  %v58_v43 = vld [vmem:[%s7021_s1 + $0x18] sm:$0xff]  ;;  %v3448_v44 = vld [vmem:[%s7021_s1 + $0xc0] sm:$0xff] }
  0x10   :  { %132 = vmatpush.msra.mxu0 %v3456_v28  ;;  %161 = vmatpush.msra.mxu1 %v3457_v29  ;;  %v3449_v45 = vld [vmem:[%s7021_s1 + $0xc8] sm:$0xff]  ;;  %v55_v46 = vld [vmem:[%s7021_s1] sm:$0xff]  ;;  %v3510_v50 = vld [vmem:[%s7021_s1 + $0x230] sm:$0xff] }
  0x11   :  { %202 = vmatpush.msra.mxu2 %v63_v30  ;;  %231 = vmatpush.msra.mxu3 %v64_v31  ;;  %v56_v47 = vld [vmem:[%s7021_s1 + $0x8] sm:$0xff]  ;;  %v51_v49 = vld [vmem:[%s7020_s0] sm:$0xff]  ;;  %v3511_v51 = vld [vmem:[%s7021_s1 + $0x238] sm:$0xff] }
  0x12   :  { %133 = vmatpush.msra.mxu0 %v3454_v32  ;;  %162 = vmatpush.msra.mxu1 %v3455_v33  ;;  %v79_v48 = vld [vmem:[%s7020_s0 + $0x1] sm:$0xff]  ;;  %v3542_v52 = vld [vmem:[%s7021_s1 + $0x2f0] sm:$0xff]  ;;  %v3543_v53 = vld [vmem:[%s7021_s1 + $0x2f8] sm:$0xff] }
  0x13   :  { %203 = vmatpush.msra.mxu2 %v61_v34  ;;  %232 = vmatpush.msra.mxu3 %v62_v35  ;;  %v3508_v54 = vld [vmem:[%s7021_s1 + $0x220] sm:$0xff]  ;;  %v3509_v55 = vld [vmem:[%s7021_s1 + $0x228] sm:$0xff]  ;;  %v3506_v58 = vld [vmem:[%s7021_s1 + $0x210] sm:$0xff] }
  0x14   :  { %134 = vmatpush.msra.mxu0 %v3452_v36  ;;  %163 = vmatpush.msra.mxu1 %v3453_v37  ;;  %v3540_v56 = vld [vmem:[%s7021_s1 + $0x2e0] sm:$0xff]  ;;  %v3541_v57 = vld [vmem:[%s7021_s1 + $0x2e8] sm:$0xff]  ;;  %v3507_v59 = vld [vmem:[%s7021_s1 + $0x218] sm:$0xff] }
  0x15   :  { %204 = vmatpush.msra.mxu2 %v59_v38  ;;  %233 = vmatpush.msra.mxu3 %v60_v39  ;;  %v3538_v60 = vld [vmem:[%s7021_s1 + $0x2d0] sm:$0xff]  ;;  %v3539_v61 = vld [vmem:[%s7021_s1 + $0x2d8] sm:$0xff]  ;;  %v52_v63 = vld [vmem:[%s7020_s0 + $0x8] sm:$0xff] }
  0x16   :  { %135 = vmatpush.msra.mxu0 %v3450_v40  ;;  %164 = vmatpush.msra.mxu1 %v3451_v41  ;;  %v80_v62 = vld [vmem:[%s7020_s0 + $0x9] sm:$0xff]  ;;  %v3504_v0 = vld [vmem:[%s7021_s1 + $0x200] sm:$0xff]  ;;  %v3503_v5 = vld [vmem:[%s7021_s1 + $0x1f8] sm:$0xff] }
  0x17   :  { %205 = vmatpush.msra.mxu2 %v57_v42  ;;  %234 = vmatpush.msra.mxu3 %v58_v43  ;;  %v3505_v1 = vld [vmem:[%s7021_s1 + $0x208] sm:$0xff]  ;;  %v3536_v2 = vld [vmem:[%s7021_s1 + $0x2c0] sm:$0xff]  ;;  %v3502_v4 = vld [vmem:[%s7021_s1 + $0x1f0] sm:$0xff] }
  0x18   :  { %136 = vmatpush.msra.mxu0 %v3448_v44  ;;  %165 = vmatpush.msra.mxu1 %v3449_v45  ;;  %v3537_v3 = vld [vmem:[%s7021_s1 + $0x2c8] sm:$0xff]  ;;  %v3534_v6 = vld [vmem:[%s7021_s1 + $0x2b0] sm:$0xff]  ;;  %v3535_v7 = vld [vmem:[%s7021_s1 + $0x2b8] sm:$0xff] }
  0x19   :  { %206 = vmatpush.msra.mxu2 %v55_v46  ;;  %235 = vmatpush.msra.mxu3 %v56_v47  ;;  %v3500_v8 = vld [vmem:[%s7021_s1 + $0x1e0] sm:$0xff]  ;;  %v3501_v9 = vld [vmem:[%s7021_s1 + $0x1e8] sm:$0xff]  ;;  %v81_v12 = vld [vmem:[%s7020_s0 + $0x11] sm:$0xff] }
  0x1a   :  { %3472 = vmatmul.msk.f32.vlgmr.msra.gmra.mxu0 %vm108_vm0, %v79_v48  ;;  %3476 = vmatmul.msk.f32.vlgmr.msra.gmra.mxu1 %vm108_vm0, %v79_v48  ;;  %v3532_v10 = vld [vmem:[%s7021_s1 + $0x2a0] sm:$0xff]  ;;  %v3533_v11 = vld [vmem:[%s7021_s1 + $0x2a8] sm:$0xff]  ;;  %v53_v13 = vld [vmem:[%s7020_s0 + $0x10] sm:$0xff] }
  0x1b   :  { %3480 = vmatmul.msk.f32.vlgmr.msra.gmra.mxu2 %vm108_vm0, %v51_v49  ;;  %3484 = vmatmul.msk.f32.vlgmr.msra.gmra.mxu3 %vm108_vm0, %v51_v49  ;;  %v3498_v14 = vld [vmem:[%s7021_s1 + $0x1d0] sm:$0xff]  ;;  %v3499_v15 = vld [vmem:[%s7021_s1 + $0x1d8] sm:$0xff] }
  0x1c   :  { %294 = vmatpush.msrb.mxu0 %v3510_v50  ;;  %323 = vmatpush.msrb.mxu1 %v3511_v51 }
  0x1d   :  { %401 = vmatpush.msrb.mxu2 %v3542_v52  ;;  %430 = vmatpush.msrb.mxu3 %v3543_v53 }
  0x1e   :  { %295 = vmatpush.msrb.mxu0 %v3508_v54  ;;  %324 = vmatpush.msrb.mxu1 %v3509_v55 }
  0x1f   :  { %402 = vmatpush.msrb.mxu2 %v3540_v56  ;;  %431 = vmatpush.msrb.mxu3 %v3541_v57 }
  0x20   :  { %296 = vmatpush.msrb.mxu0 %v3506_v58  ;;  %325 = vmatpush.msrb.mxu1 %v3507_v59 }
  0x21   :  { %403 = vmatpush.msrb.mxu2 %v3538_v60  ;;  %432 = vmatpush.msrb.mxu3 %v3539_v61 }
  0x22   :  { %3473 = vmatmul.msk.f32.gmra.mxu0 %vm108_vm0, %v80_v62  ;;  %3477 = vmatmul.msk.f32.gmra.mxu1 %vm108_vm0, %v80_v62 }
  0x23   :  { %3481 = vmatmul.msk.f32.gmra.mxu2 %vm108_vm0, %v52_v63  ;;  %3485 = vmatmul.msk.f32.gmra.mxu3 %vm108_vm0, %v52_v63 }
  0x24   :  { %297 = vmatpush.msrb.mxu0 %v3504_v0  ;;  %326 = vmatpush.msrb.mxu1 %v3505_v1 }
  0x25   :  { %404 = vmatpush.msrb.mxu2 %v3536_v2  ;;  %433 = vmatpush.msrb.mxu3 %v3537_v3 }
  0x26   :  { %298 = vmatpush.msrb.mxu0 %v3502_v4  ;;  %327 = vmatpush.msrb.mxu1 %v3503_v5 }
  0x27   :  { %405 = vmatpush.msrb.mxu2 %v3534_v6  ;;  %434 = vmatpush.msrb.mxu3 %v3535_v7 }
  0x28   :  { %299 = vmatpush.msrb.mxu0 %v3500_v8  ;;  %328 = vmatpush.msrb.mxu1 %v3501_v9 }
  0x29   :  { %406 = vmatpush.msrb.mxu2 %v3532_v10  ;;  %435 = vmatpush.msrb.mxu3 %v3533_v11 }
  0x2a   :  { %20 = vsyncpa [#allocation6], 0  ;;  %3474 = vmatmul.msk.f32.gmra.mxu0 %vm108_vm0, %v81_v12  ;;  %3478 = vmatmul.msk.f32.gmra.mxu1 %vm108_vm0, %v81_v12  ;;  %v3530_v16 = vld [vmem:[%s7021_s1 + $0x290] sm:$0xff]  ;;  %v3531_v17 = vld [vmem:[%s7021_s1 + $0x298] sm:$0xff]  ;;  %vm601_vm1 = vcmask 1043456   ;;  %vm594_vm2 = vcmask 228352  }
  0x2b   :  { %3482 = vmatmul.msk.f32.gmra.mxu2 %vm108_vm0, %v53_v13  ;;  %3486 = vmatmul.msk.f32.gmra.mxu3 %vm108_vm0, %v53_v13  ;;  %v3496_v18 = vld [vmem:[%s7021_s1 + $0x1c0] sm:$0xff]  ;;  %v3497_v19 = vld [vmem:[%s7021_s1 + $0x1c8] sm:$0xff]  ;;  %v3494_v22 = vld [vmem:[%s7021_s1 + $0x1b0] sm:$0xff]  ;;  %vm734_vm3 = vcmask 326656   ;;  %vm857_vm4 = vcmask 687104   ;;  %vm859_vm5 = vcmask 685056  }
  0x2c   :  { %300 = vmatpush.msrb.mxu0 %v3498_v14  ;;  %329 = vmatpush.msrb.mxu1 %v3499_v15  ;;  %v3528_v20 = vld [vmem:[%s7021_s1 + $0x280] sm:$0xff]  ;;  %v3529_v21 = vld [vmem:[%s7021_s1 + $0x288] sm:$0xff]  ;;  %v3495_v23 = vld [vmem:[%s7021_s1 + $0x1b8] sm:$0xff]  ;;  %vm1306_vm6 = vcmask 1041408   ;;  %vm1302_vm7 = vcmask 80896   ;;  %vm1420_vm8 = vcmask 261120  }
  0x2d   :  { %407 = vmatpush.msrb.mxu2 %v3530_v16  ;;  %436 = vmatpush.msrb.mxu3 %v3531_v17  ;;  %v3526_v24 = vld [vmem:[%s7021_s1 + $0x270] sm:$0xff]  ;;  %v3527_v25 = vld [vmem:[%s7021_s1 + $0x278] sm:$0xff]  ;;  %v3492_v28 = vld [vmem:[%s7021_s1 + $0x1a0] sm:$0xff]  ;;  %vm1526_vm9 = vcmask 651264   ;;  %vm1551_vm10 = vcmask 654336   ;;  %vm1706_vm11 = vcmask 974848  }
  0x2e   :  { %301 = vmatpush.msrb.mxu0 %v3496_v18  ;;  %330 = vmatpush.msrb.mxu1 %v3497_v19  ;;  %v82_v26 = vld [vmem:[%s7020_s0 + $0x19] sm:$0xf]  ;;  %v3493_v29 = vld [vmem:[%s7021_s1 + $0x1a8] sm:$0xff]  ;;  %v3524_v30 = vld [vmem:[%s7021_s1 + $0x260] sm:$0xff]  ;;  %vm3364_vm12 = vcmask 982016   ;;  %s4239_s28 = smov [#allocation5]  }
  0x2f   :  { %408 = vmatpush.msrb.mxu2 %v3528_v20  ;;  %437 = vmatpush.msrb.mxu3 %v3529_v21  ;;  %v54_v27 = vld [vmem:[%s7020_s0 + $0x18] sm:$0xf]  ;;  %v3525_v31 = vld [vmem:[%s7021_s1 + $0x268] sm:$0xff]  ;;  %v3490_v32 = vld [vmem:[%s7021_s1 + $0x190] sm:$0xff]  ;;  %vm3430_vm13 = vcmask 74752  }
  0x30   :  { %302 = vmatpush.msrb.mxu0 %v3494_v22  ;;  %331 = vmatpush.msrb.mxu1 %v3495_v23  ;;  %v3491_v33 = vld [vmem:[%s7021_s1 + $0x198] sm:$0xff]  ;;  %v3522_v34 = vld [vmem:[%s7021_s1 + $0x250] sm:$0xff]  ;;  %v3488_v36 = vld [vmem:[%s7021_s1 + $0x180] sm:$0xff] }
  0x31   :  { %409 = vmatpush.msrb.mxu2 %v3526_v24  ;;  %438 = vmatpush.msrb.mxu3 %v3527_v25  ;;  %v3523_v35 = vld [vmem:[%s7021_s1 + $0x258] sm:$0xff]  ;;  %v3489_v37 = vld [vmem:[%s7021_s1 + $0x188] sm:$0xff]  ;;  %v3520_v38 = vld [vmem:[%s7021_s1 + $0x240] sm:$0xff] }
  0x32   :  { %3475 = vmatmul.msk.f32.gmra.mxu0 %vm108_vm0, %v82_v26  ;;  %3479 = vmatmul.msk.f32.gmra.mxu1 %vm108_vm0, %v82_v26  ;;  %v3521_v39 = vld [vmem:[%s7021_s1 + $0x248] sm:$0xff]  ;;  %v3574_v42 = vld [vmem:[%s7021_s1 + $0x3b0] sm:$0xff]  ;;  %v3575_v43 = vld [vmem:[%s7021_s1 + $0x3b8] sm:$0xff] }
  0x33   :  { %3483 = vmatmul.msk.f32.gmra.mxu2 %vm108_vm0, %v54_v27  ;;  %3487 = vmatmul.msk.f32.gmra.mxu3 %vm108_vm0, %v54_v27  ;;  %v249_v40 = vld [vmem:[%s7020_s0 + $0x2] sm:$0xff]  ;;  %v3570_v46 = vld [vmem:[%s7021_s1 + $0x390] sm:$0xff]  ;;  %v3571_v47 = vld [vmem:[%s7021_s1 + $0x398] sm:$0xff] }
  0x34   :  { %303 = vmatpush.msrb.mxu0 %v3492_v28  ;;  %332 = vmatpush.msrb.mxu1 %v3493_v29  ;;  %v356_v41 = vld [vmem:[%s7020_s0 + $0x3] sm:$0xff]  ;;  %v357_v49 = vld [vmem:[%s7020_s0 + $0xb] sm:$0xff]  ;;  %v3567_v53 = vld [vmem:[%s7021_s1 + $0x378] sm:$0xff] }
  0x35   :  { %410 = vmatpush.msrb.mxu2 %v3524_v30  ;;  %439 = vmatpush.msrb.mxu3 %v3525_v31  ;;  %v3572_v44 = vld [vmem:[%s7021_s1 + $0x3a0] sm:$0xff]  ;;  %v3573_v45 = vld [vmem:[%s7021_s1 + $0x3a8] sm:$0xff]  ;;  %v3566_v52 = vld [vmem:[%s7021_s1 + $0x370] sm:$0xff] }
  0x36   :  { %304 = vmatpush.msrb.mxu0 %v3490_v32  ;;  %333 = vmatpush.msrb.mxu1 %v3491_v33  ;;  %v250_v48 = vld [vmem:[%s7020_s0 + $0xa] sm:$0xff]  ;;  %v3568_v50 = vld [vmem:[%s7021_s1 + $0x380] sm:$0xff]  ;;  %v251_v56 = vld [vmem:[%s7020_s0 + $0x12] sm:$0xff] }
  0x37   :  { %411 = vmatpush.msrb.mxu2 %v3522_v34  ;;  %440 = vmatpush.msrb.mxu3 %v3523_v35  ;;  %v3569_v51 = vld [vmem:[%s7021_s1 + $0x388] sm:$0xff]  ;;  %v3564_v54 = vld [vmem:[%s7021_s1 + $0x360] sm:$0xff]  ;;  %v358_v57 = vld [vmem:[%s7020_s0 + $0x13] sm:$0xff] }
  0x38   :  { %305 = vmatpush.msrb.mxu0 %v3488_v36  ;;  %334 = vmatpush.msrb.mxu1 %v3489_v37  ;;  %v3565_v55 = vld [vmem:[%s7021_s1 + $0x368] sm:$0xff]  ;;  %v3562_v58 = vld [vmem:[%s7021_s1 + $0x350] sm:$0xff]  ;;  %v3563_v59 = vld [vmem:[%s7021_s1 + $0x358] sm:$0xff] }
  0x39   :  { %412 = vmatpush.msrb.mxu2 %v3520_v38  ;;  %441 = vmatpush.msrb.mxu3 %v3521_v39  ;;  %v3560_v60 = vld [vmem:[%s7021_s1 + $0x340] sm:$0xff]  ;;  %v3561_v61 = vld [vmem:[%s7021_s1 + $0x348] sm:$0xff]  ;;  %v3558_v62 = vld [vmem:[%s7021_s1 + $0x330] sm:$0xff] }
  0x3a   :  { %3512 = vmatmul.msk.f32.vlgmr.msrb.gmra.mxu0 %vm108_vm0, %v249_v40  ;;  %3516 = vmatmul.msk.f32.vlgmr.msrb.gmra.mxu1 %vm108_vm0, %v249_v40  ;;  %v3559_v63 = vld [vmem:[%s7021_s1 + $0x338] sm:$0xff]  ;;  %v3556_v2 = vld [vmem:[%s7021_s1 + $0x320] sm:$0xff]  ;;  %v3557_v3 = vld [vmem:[%s7021_s1 + $0x328] sm:$0xff] }
  0x3b   :  { %3544 = vmatmul.msk.f32.vlgmr.msrb.gmra.mxu2 %vm108_vm0, %v356_v41  ;;  %3548 = vmatmul.msk.f32.vlgmr.msrb.gmra.mxu3 %vm108_vm0, %v356_v41  ;;  %v252_v0 = vld [vmem:[%s7020_s0 + $0x1a] sm:$0xf]  ;;  %v3554_v4 = vld [vmem:[%s7021_s1 + $0x310] sm:$0xff]  ;;  %v3552_v6 = vld [vmem:[%s7021_s1 + $0x300] sm:$0xff] }
  0x3c   :  { %508 = vmatpush.msra.mxu0 %v3574_v42  ;;  %537 = vmatpush.msra.mxu1 %v3575_v43  ;;  %v359_v1 = vld [vmem:[%s7020_s0 + $0x1b] sm:$0xf]  ;;  %v3553_v7 = vld [vmem:[%s7021_s1 + $0x308] sm:$0xff] }
  0x3d   :  { %v3555_v5 = vld [vmem:[%s7021_s1 + $0x318] sm:$0xff]  ;;  %v463_v8 = vld [vmem:[%s7020_s0 + $0x4] sm:$0xff]  ;;  %v464_v9 = vld [vmem:[%s7020_s0 + $0xc] sm:$0xff] }
  0x3e   :  { %509 = vmatpush.msra.mxu0 %v3572_v44  ;;  %538 = vmatpush.msra.mxu1 %v3573_v45  ;;  %v465_v10 = vld [vmem:[%s7020_s0 + $0x14] sm:$0xff]  ;;  %v466_v11 = vld [vmem:[%s7020_s0 + $0x1c] sm:$0xf] }
  0x40   :  { %510 = vmatpush.msra.mxu0 %v3570_v46  ;;  %539 = vmatpush.msra.mxu1 %v3571_v47 }
  0x42   :  { %3513 = vmatmul.msk.f32.gmra.mxu0 %vm108_vm0, %v250_v48  ;;  %3517 = vmatmul.msk.f32.gmra.mxu1 %vm108_vm0, %v250_v48 }
  0x43   :  { %3545 = vmatmul.msk.f32.gmra.mxu2 %vm108_vm0, %v357_v49  ;;  %3549 = vmatmul.msk.f32.gmra.mxu3 %vm108_vm0, %v357_v49 }
  0x44   :  { %511 = vmatpush.msra.mxu0 %v3568_v50  ;;  %540 = vmatpush.msra.mxu1 %v3569_v51 }
  0x46   :  { %512 = vmatpush.msra.mxu0 %v3566_v52  ;;  %541 = vmatpush.msra.mxu1 %v3567_v53 }
  0x48   :  { %513 = vmatpush.msra.mxu0 %v3564_v54  ;;  %542 = vmatpush.msra.mxu1 %v3565_v55 }
  0x4a   :  { %3514 = vmatmul.msk.f32.gmra.mxu0 %vm108_vm0, %v251_v56  ;;  %3518 = vmatmul.msk.f32.gmra.mxu1 %vm108_vm0, %v251_v56 }
  0x4b   :  { %3546 = vmatmul.msk.f32.gmra.mxu2 %vm108_vm0, %v358_v57  ;;  %3550 = vmatmul.msk.f32.gmra.mxu3 %vm108_vm0, %v358_v57 }
  0x4c   :  { %514 = vmatpush.msra.mxu0 %v3562_v58  ;;  %543 = vmatpush.msra.mxu1 %v3563_v59 }
  0x4e   :  { %515 = vmatpush.msra.mxu0 %v3560_v60  ;;  %544 = vmatpush.msra.mxu1 %v3561_v61 }
  0x50   :  { %516 = vmatpush.msra.mxu0 %v3558_v62  ;;  %545 = vmatpush.msra.mxu1 %v3559_v63 }
  0x52   :  { %3515 = vmatmul.msk.f32.gmra.mxu0 %vm108_vm0, %v252_v0  ;;  %3519 = vmatmul.msk.f32.gmra.mxu1 %vm108_vm0, %v252_v0 }
  0x53   :  { %3547 = vmatmul.msk.f32.gmra.mxu2 %vm108_vm0, %v359_v1  ;;  %3551 = vmatmul.msk.f32.gmra.mxu3 %vm108_vm0, %v359_v1 }
  0x54   :  { %517 = vmatpush.msra.mxu0 %v3556_v2  ;;  %546 = vmatpush.msra.mxu1 %v3557_v3  ;;  %v570_v2 = vld [vmem:[%s7022_s2] sm:$0x3] }
  0x56   :  { %518 = vmatpush.msra.mxu0 %v3554_v4  ;;  %547 = vmatpush.msra.mxu1 %v3555_v5 }
  0x58   :  { %519 = vmatpush.msra.mxu0 %v3552_v6  ;;  %548 = vmatpush.msra.mxu1 %v3553_v7 }
  0x5a   :  { %3576 = vmatmul.msk.f32.vlgmr.msra.gmra.mxu0 %vm108_vm0, %v463_v8  ;;  %3580 = vmatmul.msk.f32.vlgmr.msra.gmra.mxu1 %vm108_vm0, %v463_v8 }
  0x62   :  { %3577 = vmatmul.msk.f32.gmra.mxu0 %vm108_vm0, %v464_v9  ;;  %3581 = vmatmul.msk.f32.gmra.mxu1 %vm108_vm0, %v464_v9 }
  0x6a   :  { %3578 = vmatmul.msk.f32.gmra.mxu0 %vm108_vm0, %v465_v10  ;;  %3582 = vmatmul.msk.f32.gmra.mxu1 %vm108_vm0, %v465_v10 }
  0x72   :  { %3579 = vmatmul.msk.f32.gmra.mxu0 %vm108_vm0, %v466_v11  ;;  %3583 = vmatmul.msk.f32.gmra.mxu1 %vm108_vm0, %v466_v11 }
  0x97   :  { %v138_v12 = vpop.f32.mrf.mxu0  ;;  %v167_v13 = vpop.f32.mrf.mxu1 }
  0x9e   :  { %v208_v16 = vpop.f32.mrf.mxu2  ;;  %v237_v17 = vpop.f32.mrf.mxu3 }
  0x9f   :  { %v141_v14 = vpop.f32.mrf.mxu0  ;;  %v170_v15 = vpop.f32.mrf.mxu1  ;;  %v209_v56 = vadd.f32 %v208_v16, %v138_v12  ;;  %v238_v57 = vadd.f32 %v237_v17, %v167_v13  ;;  %v572_v13 = vperm.slane %v570_v2, 0 }
  0xa6   :  { %v211_v20 = vpop.f32.mrf.mxu2  ;;  %v240_v21 = vpop.f32.mrf.mxu3 }
  0xa7   :  { %v144_v18 = vpop.f32.mrf.mxu0  ;;  %v173_v19 = vpop.f32.mrf.mxu1  ;;  %v212_v50 = vadd.f32 %v211_v20, %v141_v14  ;;  %v241_v51 = vadd.f32 %v240_v21, %v170_v15  ;;  %v573_v14 = vperm.slane %v570_v2, 1  ;;  %v733_v2 = vld [vmem:[%s7024_s4 + $0xa0] sm:$0xff] }
  0xa8   :  { %775 = vmatpush.msrb.mxu1 %v733_v2  ;;  %v3630_v2 = vld [vmem:[%s7025_s5 + $0xe8] sm:$0xff] }
  0xae   :  { %v214_v26 = vpop.f32.mrf.mxu2  ;;  %v243_v27 = vpop.f32.mrf.mxu3 }
  0xaf   :  { %v147_v22 = vpop.f32.mrf.mxu0  ;;  %v176_v23 = vpop.f32.mrf.mxu1  ;;  %v215_v48 = vadd.f32 %v214_v26, %v144_v18  ;;  %v244_v49 = vadd.f32 %v243_v27, %v173_v19 }
  0xb6   :  { %v217_v30 = vpop.f32.mrf.mxu2  ;;  %v246_v31 = vpop.f32.mrf.mxu3 }
  0xb7   :  { %v307_v24 = vpop.f32.mrf.mxu0  ;;  %v336_v25 = vpop.f32.mrf.mxu1  ;;  %v218_v52 = vadd.f32 %v217_v30, %v147_v22  ;;  %v247_v53 = vadd.f32 %v246_v31, %v176_v23  ;;  %v728_v31 = vld [vmem:[%s7024_s4 + $0x78] sm:$0xff] }
  0xb8   :  { %v348_v3 = vadd.f32 %v307_v24, %v209_v56  ;;  %v349_v4 = vadd.f32 %v336_v25, %v238_v57  ;;  %741 = vmatpush.msrb.mxu0 %v728_v31  ;;  %v3609_v56 = vld [vmem:[%s7024_s4 + $0xf0] sm:$0xff]  ;;  %v721_v57 = vld [vmem:[%s7024_s4 + $0x40] sm:$0xff] }
  0xbe   :  { %v414_v34 = vpop.f32.mrf.mxu2  ;;  %v443_v35 = vpop.f32.mrf.mxu3 }
  0xbf   :  { %v310_v28 = vpop.f32.mrf.mxu0  ;;  %v339_v29 = vpop.f32.mrf.mxu1  ;;  %v455_v11 = vadd.f32 %v414_v34, %v348_v3  ;;  %v456_v12 = vadd.f32 %v443_v35, %v349_v4  ;;  %v3604_v3 = vld [vmem:[%s7024_s4 + $0xc8] sm:$0xff] }
  0xc0   :  { %v350_v58 = vadd.f32 %v310_v28, %v212_v50  ;;  %v351_v59 = vadd.f32 %v339_v29, %v241_v51  ;;  %v3612_v50 = vld [vmem:[%s7024_s4 + $0x108] sm:$0xff]  ;;  %v3590_v51 = vld [vmem:[%s7023_s3 + $0x10] sm:$0xff] }
  0xc1   :  { %v3620_v4 = vld [vmem:[%s7024_s4 + $0x148] sm:$0xff] }
  0xc6   :  { %v417_v38 = vpop.f32.mrf.mxu2  ;;  %v446_v39 = vpop.f32.mrf.mxu3 }
  0xc7   :  { %v313_v32 = vpop.f32.mrf.mxu0  ;;  %v342_v33 = vpop.f32.mrf.mxu1  ;;  %v457_v5 = vadd.f32 %v417_v38, %v350_v58  ;;  %v458_v6 = vadd.f32 %v446_v39, %v351_v59  ;;  %v726_v39 = vld [vmem:[%s7024_s4 + $0x68] sm:$0xff]  ;;  %v720_v59 = vld [vmem:[%s7024_s4 + $0x38] sm:$0xff] }
  0xc8   :  { %v352_v54 = vadd.f32 %v313_v32, %v215_v48  ;;  %v353_v55 = vadd.f32 %v342_v33, %v244_v49  ;;  %v3614_v48 = vld [vmem:[%s7024_s4 + $0x118] sm:$0xff]  ;;  %v3613_v49 = vld [vmem:[%s7024_s4 + $0x110] sm:$0xff]  ;;  %v3608_v58 = vld [vmem:[%s7024_s4 + $0xe8] sm:$0xff] }
  0xce   :  { %v420_v44 = vpop.f32.mrf.mxu2  ;;  %v449_v45 = vpop.f32.mrf.mxu3 }
  0xcf   :  { %v316_v36 = vpop.f32.mrf.mxu0  ;;  %v345_v37 = vpop.f32.mrf.mxu1  ;;  %v459_v62 = vadd.f32 %v420_v44, %v352_v54  ;;  %v460_v63 = vadd.f32 %v449_v45, %v353_v55  ;;  %v724_v44 = vld [vmem:[%s7024_s4 + $0x58] sm:$0xff]  ;;  %v723_v45 = vld [vmem:[%s7024_s4 + $0x50] sm:$0xff]  ;;  %v722_v55 = vld [vmem:[%s7024_s4 + $0x48] sm:$0xff] }
  0xd0   :  { %v354_v0 = vadd.f32 %v316_v36, %v218_v52  ;;  %v355_v1 = vadd.f32 %v345_v37, %v247_v53  ;;  %v727_v36 = vld [vmem:[%s7024_s4 + $0x70] sm:$0xff]  ;;  %v3611_v52 = vld [vmem:[%s7024_s4 + $0x100] sm:$0xff]  ;;  %v3610_v53 = vld [vmem:[%s7024_s4 + $0xf8] sm:$0xff] }
  0xd1   :  { %742 = vmatpush.msrb.mxu0 %v727_v36  ;;  %v3591_v54 = vld [vmem:[%s7023_s3 + $0x18] sm:$0x3f] }
  0xd3   :  { %743 = vmatpush.msrb.mxu0 %v726_v39 }
  0xd6   :  { %v423_v60 = vpop.f32.mrf.mxu2  ;;  %v452_v61 = vpop.f32.mrf.mxu3 }
  0xd7   :  { %v521_v40 = vpop.f32.mrf.mxu0  ;;  %v550_v41 = vpop.f32.mrf.mxu1  ;;  %v461_v7 = vadd.f32 %v423_v60, %v354_v0  ;;  %v462_v8 = vadd.f32 %v452_v61, %v355_v1  ;;  %v3607_v60 = vld [vmem:[%s7024_s4 + $0xe0] sm:$0xff]  ;;  %v719_v61 = vld [vmem:[%s7024_s4 + $0x30] sm:$0xff] }
  0xd8   :  { %v562_v21 = vadd.f32 %v521_v40, %v455_v11  ;;  %v563_v22 = vadd.f32 %v550_v41, %v456_v12  ;;  %v3605_v0 = vld [vmem:[%s7024_s4 + $0xd0] sm:$0xff]  ;;  %v717_v1 = vld [vmem:[%s7024_s4 + $0x20] sm:$0xff]  ;;  %v3602_v11 = vld [vmem:[%s7024_s4 + $0xb8] sm:$0xff] }
  0xd9   :  { %v3618_v12 = vld [vmem:[%s7024_s4 + $0x138] sm:$0xff] }
  0xda   :  { %v576_v32 = vadd.f32 %v572_v13, %v562_v21  ;;  %v577_v33 = vadd.f32 %v573_v14, %v563_v22  ;;  %v883_v21 = vld [vmem:[%s7025_s5 + $0xa0] sm:$0xf]  ;;  %v884_v22 = vld [vmem:[%s7025_s5 + $0xa8] sm:$0xf] }
  0xdc   :  { %v584_v40 = vmax.f32 %v576_v32, 0.0  ;;  %v585_v41 = vmax.f32 %v577_v33, 0.0  ;;  %v877_v33 = vld [vmem:[%s7025_s5 + $0x70] sm:$0xff] }
  0xdf   :  { %v524_v42 = vpop.f32.mrf.mxu0  ;;  %v553_v43 = vpop.f32.mrf.mxu1 }
  0xe0   :  { %v564_v17 = vadd.f32 %v524_v42, %v457_v5  ;;  %v565_v18 = vadd.f32 %v553_v43, %v458_v6  ;;  %v592_v42 = vld [vmem:[%s7023_s3] sm:$0xff]  ;;  %v716_v5 = vld [vmem:[%s7024_s4 + $0x18] sm:$0xff] }
  0xe1   :  { %v725_v43 = vld [vmem:[%s7024_s4 + $0x60] sm:$0xff]  ;;  %v732_v6 = vld [vmem:[%s7024_s4 + $0x98] sm:$0xff] }
  0xe2   :  { %v578_v27 = vadd.f32 %v572_v13, %v564_v17  ;;  %v579_v28 = vadd.f32 %v573_v14, %v565_v18  ;;  %744 = vmatpush.msrb.mxu0 %v725_v43  ;;  %776 = vmatpush.msrb.mxu1 %v732_v6  ;;  %v713_v17 = vld [vmem:[%s7024_s4] sm:$0xff]  ;;  %v3628_v6 = vld [vmem:[%s7025_s5 + $0xd8] sm:$0xff] }
  0xe3   :  { %v729_v18 = vld [vmem:[%s7024_s4 + $0x80] sm:$0xff] }
  0xe4   :  { %v586_v37 = vmax.f32 %v578_v27, 0.0  ;;  %v587_v38 = vmax.f32 %v579_v28, 0.0  ;;  %745 = vmatpush.msrb.mxu0 %v724_v44  ;;  %v879_v27 = vld [vmem:[%s7025_s5 + $0x80] sm:$0xff]  ;;  %v880_v28 = vld [vmem:[%s7025_s5 + $0x88] sm:$0xff] }
  0xe6   :  { %746 = vmatpush.msrb.mxu0 %v723_v45  ;;  %v3639_v45 = vld [vmem:[%s7025_s5 + $0x130] sm:$0xff] }
  0xe7   :  { %v527_v46 = vpop.f32.mrf.mxu0  ;;  %v556_v47 = vpop.f32.mrf.mxu1 }
  0xe8   :  { %v566_v9 = vadd.f32 %v527_v46, %v459_v62  ;;  %v567_v10 = vadd.f32 %v556_v47, %v460_v63  ;;  %v593_v46 = vld [vmem:[%s7023_s3 + $0x8] sm:$0x3f]  ;;  %v3615_v47 = vld [vmem:[%s7024_s4 + $0x120] sm:$0xff]  ;;  %747 = vmatpush.msrb.mxu0 %v722_v55  ;;  %v3606_v62 = vld [vmem:[%s7024_s4 + $0xd8] sm:$0xff] }
  0xe9   :  { %v718_v63 = vld [vmem:[%s7024_s4 + $0x28] sm:$0xff]  ;;  %v871_v55 = vld [vmem:[%s7025_s5 + $0x40] sm:$0xff] }
  0xea   :  { %v580_v23 = vadd.f32 %v572_v13, %v566_v9  ;;  %v581_v24 = vadd.f32 %v573_v14, %v567_v10  ;;  %748 = vmatpush.msrb.mxu0 %v721_v57  ;;  %v731_v9 = vld [vmem:[%s7024_s4 + $0x90] sm:$0xff]  ;;  %v3633_v57 = vld [vmem:[%s7025_s5 + $0x100] sm:$0xff] }
  0xeb   :  { %v715_v10 = vld [vmem:[%s7024_s4 + $0x10] sm:$0xff]  ;;  %777 = vmatpush.msrb.mxu1 %v731_v9  ;;  %v3625_v9 = vld [vmem:[%s7025_s5 + $0xc0] sm:$0xff] }
  0xec   :  { %v588_v34 = vmax.f32 %v580_v23, 0.0  ;;  %v589_v35 = vmax.f32 %v581_v24, 0.0  ;;  %749 = vmatpush.msrb.mxu0 %v720_v59  ;;  %v881_v23 = vld [vmem:[%s7025_s5 + $0x90] sm:$0xff]  ;;  %v882_v24 = vld [vmem:[%s7025_s5 + $0x98] sm:$0xff] }
  0xed   :  { %v869_v59 = vld [vmem:[%s7025_s5 + $0x30] sm:$0xff] }
  0xee   :  { %750 = vmatpush.msrb.mxu0 %v719_v61  ;;  %v3631_v61 = vld [vmem:[%s7025_s5 + $0xf0] sm:$0xff] }
  0xef   :  { %v530_v15 = vpop.f32.mrf.mxu0  ;;  %v559_v16 = vpop.f32.mrf.mxu1 }
  0xf0   :  { %v568_v19 = vadd.f32 %v530_v15, %v461_v7  ;;  %v569_v20 = vadd.f32 %v559_v16, %v462_v8  ;;  %751 = vmatpush.msrb.mxu0 %v718_v63  ;;  %v3603_v7 = vld [vmem:[%s7024_s4 + $0xc0] sm:$0xff]  ;;  %v3601_v15 = vld [vmem:[%s7024_s4 + $0xb0] sm:$0xff] }
  0xf1   :  { %v3619_v8 = vld [vmem:[%s7024_s4 + $0x140] sm:$0xff]  ;;  %v3617_v16 = vld [vmem:[%s7024_s4 + $0x130] sm:$0xff] }
  0xf2   :  { %v582_v25 = vadd.f32 %v572_v13, %v568_v19  ;;  %v583_v26 = vadd.f32 %v573_v14, %v569_v20  ;;  %752 = vmatpush.msrb.mxu0 %v717_v1  ;;  %v714_v13 = vld [vmem:[%s7024_s4 + $0x8] sm:$0xff]  ;;  %v867_v63 = vld [vmem:[%s7025_s5 + $0x20] sm:$0xff] }
  0xf3   :  { %v730_v14 = vld [vmem:[%s7024_s4 + $0x88] sm:$0xff]  ;;  %v3629_v1 = vld [vmem:[%s7025_s5 + $0xe0] sm:$0xff] }
  0xf4   :  { %v590_v29 = vmax.f32 %v582_v25, 0.0  ;;  %v591_v30 = vmax.f32 %v583_v26, 0.0  ;;  %753 = vmatpush.msrb.mxu0 %v716_v5  ;;  %778 = vmatpush.msrb.mxu1 %v730_v14  ;;  %v3600_v19 = vld [vmem:[%s7024_s4 + $0xa8] sm:$0xff]  ;;  %v3643_v25 = vld [vmem:[%s7025_s5 + $0x150] sm:$0xf]  ;;  %v3624_v14 = vld [vmem:[%s7025_s5 + $0xb8] sm:$0xff] }
  0xf5   :  { %v3616_v20 = vld [vmem:[%s7024_s4 + $0x128] sm:$0xff]  ;;  %v3644_v26 = vld [vmem:[%s7025_s5 + $0x158] sm:$0xf]  ;;  %v3627_v5 = vld [vmem:[%s7025_s5 + $0xd0] sm:$0xff] }
  0xf6   :  { %3584 = vmatpush.msk.msra.mxu2 %vm601_vm1, %v590_v29  ;;  %3587 = vmatpush.msk.msra.mxu3 %vm601_vm1, %v591_v30 }
  0xf7   :  { %754 = vmatpush.msrb.mxu0 %v715_v10  ;;  %779 = vmatpush.msrb.mxu1 %v729_v18  ;;  %v3626_v10 = vld [vmem:[%s7025_s5 + $0xc8] sm:$0xff] }
  0xf8   :  { %621 = vmatpush.msra.mxu2 %v588_v34  ;;  %644 = vmatpush.msra.mxu3 %v589_v35  ;;  %v3678_v18 = vld [vmem:[%s7025_s5 + $0x208] sm:$0xf] }
  0xf9   :  { %755 = vmatpush.msrb.mxu0 %v714_v13  ;;  %3648 = vmatpush.msk.msra.mxu1 %vm601_vm1, %v3644_v26  ;;  %v3623_v13 = vld [vmem:[%s7025_s5 + $0xb0] sm:$0xff]  ;;  %v3674_v26 = vld [vmem:[%s7025_s5 + $0x1e8] sm:$0xff] }
  0xfa   :  { %622 = vmatpush.msra.mxu2 %v586_v37  ;;  %645 = vmatpush.msra.mxu3 %v587_v38 }
  0xfb   :  { %756 = vmatpush.msrb.mxu0 %v713_v17  ;;  %v3677_v17 = vld [vmem:[%s7025_s5 + $0x200] sm:$0xf] }
  0xfc   :  { %623 = vmatpush.msra.mxu2 %v584_v40  ;;  %646 = vmatpush.msra.mxu3 %v585_v41 }
  0xfd   :  { %3585 = vmatmul.msk.f32.vlgmr.msra.gmra.mxu2 %vm594_vm2, %v592_v42  ;;  %3588 = vmatmul.msk.f32.vlgmr.msra.gmra.mxu3 %vm594_vm2, %v592_v42 }
  0xfe   :  { %3592 = vmatpush.msk.msrb.mxu2 %vm601_vm1, %v590_v29  ;;  %3595 = vmatpush.msk.msrb.mxu3 %vm601_vm1, %v591_v30  ;;  %v3641_v29 = vld [vmem:[%s7025_s5 + $0x140] sm:$0xff]  ;;  %v3642_v30 = vld [vmem:[%s7025_s5 + $0x148] sm:$0xff] }
  0xff   :  { %3645 = vmatpush.msk.msra.mxu0 %vm601_vm1, %v3643_v25  ;;  %951 = vmatpush.msra.mxu1 %v3642_v30  ;;  %v3673_v25 = vld [vmem:[%s7025_s5 + $0x1e0] sm:$0xff]  ;;  %v3672_v30 = vld [vmem:[%s7025_s5 + $0x1d8] sm:$0xff] }
 0x100   :  { %676 = vmatpush.msrb.mxu2 %v588_v34  ;;  %699 = vmatpush.msrb.mxu3 %v589_v35  ;;  %v878_v34 = vld [vmem:[%s7025_s5 + $0x78] sm:$0xff] }
 0x101   :  { %928 = vmatpush.msra.mxu0 %v3641_v29  ;;  %v3671_v29 = vld [vmem:[%s7025_s5 + $0x1d0] sm:$0xff] }
 0x102   :  { %677 = vmatpush.msrb.mxu2 %v586_v37  ;;  %700 = vmatpush.msrb.mxu3 %v587_v38 }
 0x103   :  { %929 = vmatpush.msra.mxu0 %v3639_v45  ;;  %v3663_v45 = vld [vmem:[%s7025_s5 + $0x190] sm:$0xff] }
 0x104   :  { %678 = vmatpush.msrb.mxu2 %v584_v40  ;;  %701 = vmatpush.msrb.mxu3 %v585_v41 }
 0x105   :  { %3586 = vmatmul.msk.f32.gmra.mxu2 %vm594_vm2, %v593_v46  ;;  %3589 = vmatmul.msk.f32.gmra.mxu3 %vm594_vm2, %v593_v46  ;;  %v3640_v46 = vld [vmem:[%s7025_s5 + $0x138] sm:$0xff] }
 0x106   :  { %809 = vmatpush.msra.mxu2 %v3615_v47  ;;  %843 = vmatpush.msra.mxu3 %v3620_v4  ;;  %v875_v47 = vld [vmem:[%s7025_s5 + $0x60] sm:$0xff]  ;;  %v866_v4 = vld [vmem:[%s7025_s5 + $0x18] sm:$0xff] }
 0x107   :  { %952 = vmatpush.msra.mxu1 %v3640_v46  ;;  %v3664_v46 = vld [vmem:[%s7025_s5 + $0x198] sm:$0xff] }
 0x108   :  { %810 = vmatpush.msra.mxu2 %v3614_v48  ;;  %844 = vmatpush.msra.mxu3 %v3619_v8  ;;  %v876_v48 = vld [vmem:[%s7025_s5 + $0x68] sm:$0xff] }
 0x109   :  { %v864_v8 = vld [vmem:[%s7025_s5 + $0x8] sm:$0xff] }
 0x10a   :  { %811 = vmatpush.msra.mxu2 %v3613_v49  ;;  %845 = vmatpush.msra.mxu3 %v3618_v12  ;;  %v3637_v49 = vld [vmem:[%s7025_s5 + $0x120] sm:$0xff]  ;;  %v3706_v12 = vld [vmem:[%s7025_s5 + $0x2b8] sm:$0xf] }
 0x10b   :  { %930 = vmatpush.msra.mxu0 %v3637_v49  ;;  %v3661_v49 = vld [vmem:[%s7025_s5 + $0x180] sm:$0xff] }
 0x10c   :  { %812 = vmatpush.msra.mxu2 %v3612_v50  ;;  %846 = vmatpush.msra.mxu3 %v3617_v16  ;;  %v3638_v50 = vld [vmem:[%s7025_s5 + $0x128] sm:$0xff] }
 0x10d   :  { %3593 = vmatmul.msk.f32.vlgmr.msrb.gmra.mxu2 %vm594_vm2, %v3590_v51  ;;  %3596 = vmatmul.msk.f32.vlgmr.msrb.gmra.mxu3 %vm594_vm2, %v3590_v51  ;;  %v873_v51 = vld [vmem:[%s7025_s5 + $0x50] sm:$0xff]  ;;  %v3704_v16 = vld [vmem:[%s7025_s5 + $0x2a8] sm:$0xff] }
 0x10e   :  { %813 = vmatpush.msra.mxu2 %v3611_v52  ;;  %847 = vmatpush.msra.mxu3 %v3616_v20  ;;  %v874_v52 = vld [vmem:[%s7025_s5 + $0x58] sm:$0xff] }
 0x10f   :  { %953 = vmatpush.msra.mxu1 %v3638_v50  ;;  %v3702_v20 = vld [vmem:[%s7025_s5 + $0x298] sm:$0xff]  ;;  %v3662_v50 = vld [vmem:[%s7025_s5 + $0x188] sm:$0xff] }
 0x110   :  { %814 = vmatpush.msra.mxu2 %v3610_v53  ;;  %3651 = vmatpush.msk.msrb.mxu3 %vm601_vm1, %v883_v21  ;;  %v3635_v53 = vld [vmem:[%s7025_s5 + $0x110] sm:$0xff] }
 0x111   :  { %931 = vmatpush.msra.mxu0 %v3635_v53  ;;  %v3675_v21 = vld [vmem:[%s7025_s5 + $0x1f0] sm:$0xff] }
 0x112   :  { %815 = vmatpush.msra.mxu2 %v3609_v56  ;;  %986 = vmatpush.msrb.mxu3 %v881_v23  ;;  %v872_v56 = vld [vmem:[%s7025_s5 + $0x48] sm:$0xff]  ;;  %v3699_v23 = vld [vmem:[%s7025_s5 + $0x280] sm:$0xff] }
 0x113   :  { %932 = vmatpush.msra.mxu0 %v3633_v57  ;;  %v3657_v57 = vld [vmem:[%s7025_s5 + $0x160] sm:$0xff] }
 0x114   :  { %816 = vmatpush.msra.mxu2 %v3608_v58  ;;  %987 = vmatpush.msrb.mxu3 %v879_v27  ;;  %v3634_v58 = vld [vmem:[%s7025_s5 + $0x108] sm:$0xff]  ;;  %v3697_v27 = vld [vmem:[%s7025_s5 + $0x270] sm:$0xff] }
 0x115   :  { %3594 = vmatmul.msk.f32.gmra.mxu2 %vm594_vm2, %v3591_v54  ;;  %3597 = vmatmul.msk.f32.gmra.mxu3 %vm594_vm2, %v3591_v54  ;;  %v3636_v54 = vld [vmem:[%s7025_s5 + $0x118] sm:$0xff] }
 0x116   :  { %817 = vmatpush.msra.mxu2 %v3607_v60  ;;  %988 = vmatpush.msrb.mxu3 %v877_v33  ;;  %v870_v60 = vld [vmem:[%s7025_s5 + $0x38] sm:$0xff]  ;;  %v3669_v33 = vld [vmem:[%s7025_s5 + $0x1c0] sm:$0xff] }
 0x117   :  { %954 = vmatpush.msra.mxu1 %v3636_v54  ;;  %933 = vmatpush.msra.mxu0 %v3631_v61 }
 0x118   :  { %818 = vmatpush.msra.mxu2 %v3606_v62  ;;  %989 = vmatpush.msrb.mxu3 %v875_v47  ;;  %v3632_v62 = vld [vmem:[%s7025_s5 + $0xf8] sm:$0xff]  ;;  %v3687_v47 = vld [vmem:[%s7025_s5 + $0x220] sm:$0xff] }
 0x119   :  { %955 = vmatpush.msra.mxu1 %v3634_v58  ;;  %934 = vmatpush.msra.mxu0 %v3629_v1  ;;  %v3658_v58 = vld [vmem:[%s7025_s5 + $0x168] sm:$0xff] }
 0x11a   :  { %819 = vmatpush.msra.mxu2 %v3605_v0  ;;  %990 = vmatpush.msrb.mxu3 %v873_v51  ;;  %v868_v0 = vld [vmem:[%s7025_s5 + $0x28] sm:$0xff]  ;;  %v3685_v51 = vld [vmem:[%s7025_s5 + $0x210] sm:$0xff] }
 0x11b   :  { %956 = vmatpush.msra.mxu1 %v3632_v62  ;;  %935 = vmatpush.msra.mxu0 %v3627_v5 }
 0x11c   :  { %820 = vmatpush.msra.mxu2 %v3604_v3  ;;  %991 = vmatpush.msrb.mxu3 %v871_v55  ;;  %v865_v3 = vld [vmem:[%s7025_s5 + $0x10] sm:$0xff] }
 0x11d   :  { %957 = vmatpush.msra.mxu1 %v3630_v2  ;;  %936 = vmatpush.msra.mxu0 %v3625_v9  ;;  %v3659_v55 = vld [vmem:[%s7025_s5 + $0x170] sm:$0xff] }
 0x11e   :  { %821 = vmatpush.msra.mxu2 %v3603_v7  ;;  %992 = vmatpush.msrb.mxu3 %v869_v59  ;;  %v863_v7 = vld [vmem:[%s7025_s5] sm:$0xff] }
 0x11f   :  { %958 = vmatpush.msra.mxu1 %v3628_v6  ;;  %937 = vmatpush.msra.mxu0 %v3623_v13  ;;  %v3732_v13 = vld [vmem:[%s7025_s5 + $0x358] sm:$0xff] }
 0x120   :  { %822 = vmatpush.msra.mxu2 %v3602_v11  ;;  %993 = vmatpush.msrb.mxu3 %v867_v63  ;;  %v3705_v11 = vld [vmem:[%s7025_s5 + $0x2b0] sm:$0xf] }
 0x121   :  { %959 = vmatpush.msra.mxu1 %v3626_v10 }
 0x122   :  { %823 = vmatpush.msra.mxu2 %v3601_v15  ;;  %994 = vmatpush.msrb.mxu3 %v865_v3  ;;  %v3703_v15 = vld [vmem:[%s7025_s5 + $0x2a0] sm:$0xff] }
 0x123   :  { %960 = vmatpush.msra.mxu1 %v3624_v14  ;;  %v3729_v14 = vld [vmem:[%s7025_s5 + $0x340] sm:$0xff] }
 0x124   :  { %824 = vmatpush.msra.mxu2 %v3600_v19  ;;  %995 = vmatpush.msrb.mxu3 %v863_v7  ;;  %v3701_v19 = vld [vmem:[%s7025_s5 + $0x290] sm:$0xff] }
 0x126   :  { %3654 = vmatpush.msk.msrb.mxu2 %vm601_vm1, %v884_v22  ;;  %v3676_v22 = vld [vmem:[%s7025_s5 + $0x1f8] sm:$0xff] }
 0x128   :  { %1009 = vmatpush.msrb.mxu2 %v882_v24  ;;  %v3700_v24 = vld [vmem:[%s7025_s5 + $0x288] sm:$0xff] }
 0x12a   :  { %1010 = vmatpush.msrb.mxu2 %v880_v28  ;;  %v3698_v28 = vld [vmem:[%s7025_s5 + $0x278] sm:$0xff] }
 0x12c   :  { %1011 = vmatpush.msrb.mxu2 %v878_v34  ;;  %v3670_v34 = vld [vmem:[%s7025_s5 + $0x1c8] sm:$0xff] }
 0x12e   :  { %1012 = vmatpush.msrb.mxu2 %v876_v48  ;;  %v3688_v48 = vld [vmem:[%s7025_s5 + $0x228] sm:$0xff] }
 0x130   :  { %1013 = vmatpush.msrb.mxu2 %v874_v52  ;;  %v3686_v52 = vld [vmem:[%s7025_s5 + $0x218] sm:$0xff] }
 0x132   :  { %1014 = vmatpush.msrb.mxu2 %v872_v56  ;;  %v3660_v56 = vld [vmem:[%s7025_s5 + $0x178] sm:$0xff] }
 0x134   :  { %1015 = vmatpush.msrb.mxu2 %v870_v60 }
 0x136   :  { %1016 = vmatpush.msrb.mxu2 %v868_v0 }
 0x138   :  { %1017 = vmatpush.msrb.mxu2 %v866_v4 }
 0x13a   :  { %1018 = vmatpush.msrb.mxu2 %v864_v8  ;;  %v3733_v8 = vld [vmem:[%s7025_s5 + $0x360] sm:$0xf] }
 0x180   :  { %v625_v31 = vpop.f32.mrf.mxu2  ;;  %v648_v32 = vpop.f32.mrf.mxu3 }
 0x188   :  { %v628_v35 = vpop.f32.mrf.mxu2  ;;  %v651_v36 = vpop.f32.mrf.mxu3 }
 0x190   :  { %v680_v37 = vpop.f32.mrf.mxu2  ;;  %v703_v38 = vpop.f32.mrf.mxu3 }
 0x191   :  { %v709_v39 = vmax.f32 %v625_v31, %v680_v37  ;;  %v710_v40 = vmax.f32 %v648_v32, %v703_v38  ;;  %v3695_v31 = vld [vmem:[%s7025_s5 + $0x260] sm:$0xff]  ;;  %v3696_v32 = vld [vmem:[%s7025_s5 + $0x268] sm:$0xff]  ;;  %v3667_v37 = vld [vmem:[%s7025_s5 + $0x1b0] sm:$0xff] }
 0x192   :  { %v3668_v38 = vld [vmem:[%s7025_s5 + $0x1b8] sm:$0xff] }
 0x193   :  { %757 = vmatmul.f32.vlgmr.msrb.gmra.mxu0 %v709_v39  ;;  %3598 = vmatmul.msk.f32.vlgmr.msrb.gmra.mxu1 %vm734_vm3, %v710_v40 }
 0x194   :  { %825 = vmatmul.f32.vlgmr.msra.gmra.mxu2 %v709_v39  ;;  %3621 = vmatmul.msk.f32.vlgmr.msra.gmra.mxu3 %vm734_vm3, %v710_v40  ;;  %v3691_v39 = vld [vmem:[%s7025_s5 + $0x240] sm:$0xff]  ;;  %v3692_v40 = vld [vmem:[%s7025_s5 + $0x248] sm:$0xff] }
 0x195   :  { %3707 = vmatpush.msk.msra.mxu3 %vm601_vm1, %v3705_v11  ;;  %3710 = vmatpush.msk.msra.mxu2 %vm601_vm1, %v3706_v12  ;;  %v3734_v11 = vld [vmem:[%s7025_s5 + $0x368] sm:$0xf]  ;;  %v3731_v12 = vld [vmem:[%s7025_s5 + $0x350] sm:$0xff] }
 0x196   :  { %3679 = vmatpush.msk.msrb.mxu0 %vm601_vm1, %v3677_v17  ;;  %3682 = vmatpush.msk.msrb.mxu1 %vm601_vm1, %v3678_v18  ;;  %v3727_v17 = vld [vmem:[%s7025_s5 + $0x330] sm:$0xff]  ;;  %v3728_v18 = vld [vmem:[%s7025_s5 + $0x338] sm:$0xff] }
 0x197   :  { %1156 = vmatpush.msra.mxu3 %v3703_v15  ;;  %1179 = vmatpush.msra.mxu2 %v3704_v16  ;;  %v3730_v15 = vld [vmem:[%s7025_s5 + $0x348] sm:$0xff] }
 0x198   :  { %v683_v41 = vpop.f32.mrf.mxu2  ;;  %v706_v42 = vpop.f32.mrf.mxu3  ;;  %1069 = vmatpush.msrb.mxu0 %v3675_v21  ;;  %1092 = vmatpush.msrb.mxu1 %v3676_v22  ;;  %v3726_v21 = vld [vmem:[%s7025_s5 + $0x328] sm:$0xff]  ;;  %v3723_v22 = vld [vmem:[%s7025_s5 + $0x310] sm:$0xff] }
 0x199   :  { %v712_v43 = vmax.f32 %v651_v36, %v706_v42  ;;  %v711_v44 = vmax.f32 %v628_v35, %v683_v41  ;;  %1157 = vmatpush.msra.mxu3 %v3701_v19  ;;  %1180 = vmatpush.msra.mxu2 %v3702_v20  ;;  %v3693_v35 = vld [vmem:[%s7025_s5 + $0x250] sm:$0xff]  ;;  %v3694_v36 = vld [vmem:[%s7025_s5 + $0x258] sm:$0xff]  ;;  %v3665_v41 = vld [vmem:[%s7025_s5 + $0x1a0] sm:$0xff] }
 0x19a   :  { %1070 = vmatpush.msrb.mxu0 %v3673_v25  ;;  %1093 = vmatpush.msrb.mxu1 %v3674_v26  ;;  %v3666_v42 = vld [vmem:[%s7025_s5 + $0x1a8] sm:$0xff]  ;;  %v3725_v20 = vld [vmem:[%s7025_s5 + $0x320] sm:$0xff] }
 0x19b   :  { %760 = vmatmul.f32.gmra.mxu0 %v711_v44  ;;  %3599 = vmatmul.msk.f32.gmra.mxu1 %vm734_vm3, %v712_v43  ;;  %v3721_v25 = vld [vmem:[%s7025_s5 + $0x300] sm:$0xff]  ;;  %v3722_v26 = vld [vmem:[%s7025_s5 + $0x308] sm:$0xff] }
 0x19c   :  { %828 = vmatmul.f32.gmra.mxu2 %v711_v44  ;;  %3622 = vmatmul.msk.f32.gmra.mxu3 %vm734_vm3, %v712_v43  ;;  %v3689_v43 = vld [vmem:[%s7025_s5 + $0x230] sm:$0xff]  ;;  %v3690_v44 = vld [vmem:[%s7025_s5 + $0x238] sm:$0xff] }
 0x19d   :  { %1158 = vmatpush.msra.mxu3 %v3699_v23  ;;  %1181 = vmatpush.msra.mxu2 %v3700_v24  ;;  %v3724_v23 = vld [vmem:[%s7025_s5 + $0x318] sm:$0xff] }
 0x19e   :  { %1071 = vmatpush.msrb.mxu0 %v3671_v29  ;;  %1094 = vmatpush.msrb.mxu1 %v3672_v30  ;;  %v3720_v29 = vld [vmem:[%s7025_s5 + $0x2f8] sm:$0xff]  ;;  %v3717_v30 = vld [vmem:[%s7025_s5 + $0x2e0] sm:$0xff] }
 0x19f   :  { %1159 = vmatpush.msra.mxu3 %v3697_v27  ;;  %1182 = vmatpush.msra.mxu2 %v3698_v28  ;;  %v3719_v28 = vld [vmem:[%s7025_s5 + $0x2f0] sm:$0xff] }
 0x1a0   :  { %1072 = vmatpush.msrb.mxu0 %v3669_v33  ;;  %1095 = vmatpush.msrb.mxu1 %v3670_v34  ;;  %v3716_v33 = vld [vmem:[%s7025_s5 + $0x2d8] sm:$0xff] }
 0x1a1   :  { %1160 = vmatpush.msra.mxu3 %v3695_v31  ;;  %1183 = vmatpush.msra.mxu2 %v3696_v32  ;;  %v3718_v31 = vld [vmem:[%s7025_s5 + $0x2e8] sm:$0xff]  ;;  %v3715_v32 = vld [vmem:[%s7025_s5 + $0x2d0] sm:$0xff] }
 0x1a2   :  { %1073 = vmatpush.msrb.mxu0 %v3667_v37  ;;  %1096 = vmatpush.msrb.mxu1 %v3668_v38 }
 0x1a3   :  { %1161 = vmatpush.msra.mxu3 %v3693_v35  ;;  %1184 = vmatpush.msra.mxu2 %v3694_v36  ;;  %v3713_v35 = vld [vmem:[%s7025_s5 + $0x2c0] sm:$0xff]  ;;  %v3714_v36 = vld [vmem:[%s7025_s5 + $0x2c8] sm:$0xff] }
 0x1a4   :  { %1074 = vmatpush.msrb.mxu0 %v3665_v41  ;;  %1097 = vmatpush.msrb.mxu1 %v3666_v42 }
 0x1a5   :  { %1162 = vmatpush.msra.mxu3 %v3691_v39  ;;  %1185 = vmatpush.msra.mxu2 %v3692_v40 }
 0x1a6   :  { %1075 = vmatpush.msrb.mxu0 %v3663_v45  ;;  %1098 = vmatpush.msrb.mxu1 %v3664_v46 }
 0x1a7   :  { %1163 = vmatpush.msra.mxu3 %v3689_v43  ;;  %1186 = vmatpush.msra.mxu2 %v3690_v44 }
 0x1a8   :  { %1076 = vmatpush.msrb.mxu0 %v3661_v49  ;;  %1099 = vmatpush.msrb.mxu1 %v3662_v50 }
 0x1a9   :  { %1164 = vmatpush.msra.mxu3 %v3687_v47  ;;  %1187 = vmatpush.msra.mxu2 %v3688_v48 }
 0x1aa   :  { %1077 = vmatpush.msrb.mxu0 %v3659_v55  ;;  %1100 = vmatpush.msrb.mxu1 %v3660_v56 }
 0x1ab   :  { %1165 = vmatpush.msra.mxu3 %v3685_v51  ;;  %1188 = vmatpush.msra.mxu2 %v3686_v52 }
 0x1ac   :  { %1078 = vmatpush.msrb.mxu0 %v3657_v57  ;;  %1101 = vmatpush.msrb.mxu1 %v3658_v58 }
 0x210   :  { %v758_v53 = vpop.f32.mrf.mxu0  ;;  %v781_v54 = vpop.f32.mrf.mxu1 }
 0x211   :  { %v782_v61 = vadd.f32 %v781_v54, %v758_v53 }
 0x217   :  { %v826_v59 = vpop.f32.mrf.mxu2  ;;  %v849_v60 = vpop.f32.mrf.mxu3 }
 0x218   :  { %v850_v62 = vadd.f32 %v849_v60, %v826_v59  ;;  %v761_v0 = vpop.f32.mrf.mxu0  ;;  %v784_v1 = vpop.f32.mrf.mxu1  ;;  %v1415_v59 = vld [vmem:[%s7028_s8 + $0x78] sm:$0xff]  ;;  %v1414_v60 = vld [vmem:[%s7028_s8 + $0x70] sm:$0xff] }
 0x219   :  { %v785_v4 = vadd.f32 %v784_v1, %v761_v0  ;;  %v1287_v0 = vld [vmem:[%s7026_s6] sm:$0x3]  ;;  %v1413_v1 = vld [vmem:[%s7028_s8 + $0x68] sm:$0xff] }
 0x21a   :  { %v855_v63 = vmax.f32 %v782_v61, %v850_v62 }
 0x21c   :  { %858 = vst.msk [vmem:[#allocation2] sm:$0xff] %vm857_vm4, %v855_v63 }
 0x21f   :  { %v829_v2 = vpop.f32.mrf.mxu2  ;;  %v852_v3 = vpop.f32.mrf.mxu3 }
 0x220   :  { %v853_v5 = vadd.f32 %v852_v3, %v829_v2 }
 0x222   :  { %v856_v6 = vmax.f32 %v785_v4, %v853_v5 }
 0x223   :  { %v861_v7 = vld [vmem:[#allocation2] sm:$0xff] }
 0x224   :  { %860 = vst.msk [vmem:[#allocation2 + $0x8] sm:$0x3f] %vm859_vm5, %v856_v6  ;;  %3652 = vmatmul.msk.f32.vlgmr.msrb.gmra.mxu3 %vm857_vm4, %v861_v7  ;;  %3655 = vmatmul.msk.f32.vlgmr.msrb.gmra.mxu2 %vm857_vm4, %v861_v7  ;;  %v1412_v6 = vld [vmem:[%s7028_s8 + $0x60] sm:$0xff] }
 0x22b   :  { %v885_v9 = vld [vmem:[#allocation2 + $0x1] sm:$0xff]  ;;  %v886_v16 = vld [vmem:[#allocation2 + $0x9] sm:$0x3]  ;;  %v1114_v27 = vld [vmem:[#allocation2 + $0xb] sm:$0x3] }
 0x22c   :  { %v862_v10 = vld [vmem:[#allocation2 + $0x8] sm:$0x3]  ;;  %3646 = vmatmul.msk.f32.vlgmr.msra.gmra.mxu0 %vm857_vm4, %v885_v9  ;;  %3649 = vmatmul.msk.f32.vlgmr.msra.gmra.mxu1 %vm857_vm4, %v885_v9  ;;  %v1027_v34 = vld [vmem:[#allocation2 + $0xa] sm:$0x3]  ;;  %v1201_v38 = vld [vmem:[#allocation2 + $0xc] sm:$0x3] }
 0x22d   :  { %3653 = vmatmul.msk.f32.gmra.mxu3 %vm857_vm4, %v862_v10  ;;  %3656 = vmatmul.msk.f32.gmra.mxu2 %vm857_vm4, %v862_v10  ;;  %v1113_v19 = vld [vmem:[#allocation2 + $0x3] sm:$0xff] }
 0x22e   :  { %3735 = vmatpush.msk.msra.mxu0 %vm601_vm1, %v3733_v8  ;;  %3738 = vmatpush.msk.msra.mxu1 %vm601_vm1, %v3734_v11  ;;  %v1026_v24 = vld [vmem:[#allocation2 + $0x2] sm:$0xff]  ;;  %v1289_v8 = vperm.slane %v1287_v0, 0 }
 0x22f   :  { %v1200_v37 = vld [vmem:[#allocation2 + $0x4] sm:$0xff] }
 0x230   :  { %1243 = vmatpush.msra.mxu0 %v3731_v12  ;;  %1266 = vmatpush.msra.mxu1 %v3732_v13  ;;  %v1411_v13 = vld [vmem:[%s7028_s8 + $0x58] sm:$0xff] }
 0x232   :  { %1244 = vmatpush.msra.mxu0 %v3729_v14  ;;  %1267 = vmatpush.msra.mxu1 %v3730_v15 }
 0x234   :  { %3647 = vmatmul.msk.f32.gmra.mxu0 %vm857_vm4, %v886_v16  ;;  %3650 = vmatmul.msk.f32.gmra.mxu1 %vm857_vm4, %v886_v16 }
 0x235   :  { %3708 = vmatmul.msk.f32.vlgmr.msra.gmra.mxu3 %vm857_vm4, %v1113_v19  ;;  %3711 = vmatmul.msk.f32.vlgmr.msra.gmra.mxu2 %vm857_vm4, %v1113_v19 }
 0x236   :  { %1245 = vmatpush.msra.mxu0 %v3727_v17  ;;  %1268 = vmatpush.msra.mxu1 %v3728_v18  ;;  %v1410_v17 = vld [vmem:[%s7028_s8 + $0x50] sm:$0xff] }
 0x238   :  { %1246 = vmatpush.msra.mxu0 %v3725_v20  ;;  %1269 = vmatpush.msra.mxu1 %v3726_v21  ;;  %v1290_v20 = vperm.slane %v1287_v0, 1  ;;  %v3781_v0 = vld [vmem:[%s7029_s9 + $0x98] sm:$0xff] }
 0x23a   :  { %1247 = vmatpush.msra.mxu0 %v3723_v22  ;;  %1270 = vmatpush.msra.mxu1 %v3724_v23 }
 0x23c   :  { %3680 = vmatmul.msk.f32.vlgmr.msrb.gmra.mxu0 %vm857_vm4, %v1026_v24  ;;  %3683 = vmatmul.msk.f32.vlgmr.msrb.gmra.mxu1 %vm857_vm4, %v1026_v24  ;;  %v1409_v24 = vld [vmem:[%s7028_s8 + $0x48] sm:$0xff] }
 0x23d   :  { %3709 = vmatmul.msk.f32.gmra.mxu3 %vm857_vm4, %v1114_v27  ;;  %3712 = vmatmul.msk.f32.gmra.mxu2 %vm857_vm4, %v1114_v27  ;;  %v1301_v27 = vld [vmem:[%s7027_s7] sm:$0x1f] }
 0x23e   :  { %1248 = vmatpush.msra.mxu0 %v3721_v25  ;;  %1271 = vmatpush.msra.mxu1 %v3722_v26 }
 0x240   :  { %1249 = vmatpush.msra.mxu0 %v3719_v28  ;;  %1272 = vmatpush.msra.mxu1 %v3720_v29  ;;  %v3745_v28 = vld [vmem:[%s7027_s7 + $0x8] sm:$0x1f]  ;;  %v3766_v29 = vld [vmem:[%s7028_s8 + $0x118] sm:$0xff] }
 0x242   :  { %1250 = vmatpush.msra.mxu0 %v3717_v30  ;;  %1273 = vmatpush.msra.mxu1 %v3718_v31  ;;  %v1408_v31 = vld [vmem:[%s7028_s8 + $0x40] sm:$0xff] }
 0x244   :  { %3681 = vmatmul.msk.f32.gmra.mxu0 %vm857_vm4, %v1027_v34  ;;  %3684 = vmatmul.msk.f32.gmra.mxu1 %vm857_vm4, %v1027_v34  ;;  %v1407_v34 = vld [vmem:[%s7028_s8 + $0x38] sm:$0xff] }
 0x245   :  { %1251 = vmatpush.msra.mxu0 %v3715_v32  ;;  %1274 = vmatpush.msra.mxu1 %v3716_v33  ;;  %v3765_v32 = vld [vmem:[%s7028_s8 + $0x110] sm:$0xff] }
 0x247   :  { %1252 = vmatpush.msra.mxu0 %v3713_v35  ;;  %1275 = vmatpush.msra.mxu1 %v3714_v36  ;;  %v3764_v35 = vld [vmem:[%s7028_s8 + $0x108] sm:$0xff]  ;;  %v1406_v36 = vld [vmem:[%s7028_s8 + $0x30] sm:$0xff] }
 0x249   :  { %1424 = vmatpush.msrb.mxu0 %v1415_v59  ;;  %v3769_v59 = vld [vmem:[%s7028_s8 + $0x130] sm:$0xff] }
 0x24b   :  { %1425 = vmatpush.msrb.mxu0 %v1414_v60  ;;  %v1417_v60 = vld [vmem:[%s7028_s8 + $0x88] sm:$0xff] }
 0x24c   :  { %3736 = vmatmul.msk.f32.vlgmr.msra.gmra.mxu0 %vm857_vm4, %v1200_v37  ;;  %3739 = vmatmul.msk.f32.vlgmr.msra.gmra.mxu1 %vm857_vm4, %v1200_v37  ;;  %v3763_v37 = vld [vmem:[%s7028_s8 + $0x100] sm:$0xff] }
 0x24d   :  { %1426 = vmatpush.msrb.mxu0 %v1413_v1  ;;  %v1538_v1 = vld [vmem:[%s7029_s9 + $0x48] sm:$0xff] }
 0x24f   :  { %1427 = vmatpush.msrb.mxu0 %v1412_v6 }
 0x251   :  { %1428 = vmatpush.msrb.mxu0 %v1411_v13  ;;  %v3793_v13 = vld [vmem:[%s7029_s9 + $0xe8] sm:$0xff] }
 0x253   :  { %1429 = vmatpush.msrb.mxu0 %v1410_v17  ;;  %v3792_v17 = vld [vmem:[%s7029_s9 + $0xe0] sm:$0xff] }
 0x254   :  { %3737 = vmatmul.msk.f32.gmra.mxu0 %vm857_vm4, %v1201_v38  ;;  %3740 = vmatmul.msk.f32.gmra.mxu1 %vm857_vm4, %v1201_v38  ;;  %v1405_v38 = vld [vmem:[%s7028_s8 + $0x28] sm:$0xff] }
 0x255   :  { %1430 = vmatpush.msrb.mxu0 %v1409_v24  ;;  %v1533_v24 = vld [vmem:[%s7029_s9 + $0x20] sm:$0xff] }
 0x257   :  { %1431 = vmatpush.msrb.mxu0 %v1408_v31  ;;  %v3774_v31 = vld [vmem:[%s7029_s9 + $0x60] sm:$0xff] }
 0x259   :  { %1432 = vmatpush.msrb.mxu0 %v1407_v34  ;;  %v3835_v34 = vld [vmem:[%s7021_s1 + $0x110] sm:$0xff] }
 0x25b   :  { %1433 = vmatpush.msrb.mxu0 %v1406_v36  ;;  %v1530_v36 = vld [vmem:[%s7029_s9 + $0x8] sm:$0xff] }
 0x25d   :  { %1434 = vmatpush.msrb.mxu0 %v1405_v38  ;;  %v3833_v38 = vld [vmem:[%s7021_s1 + $0x100] sm:$0xff] }
 0x2a7   :  { %v997_v41 = vpop.f32.mrf.mxu3  ;;  %v1020_v42 = vpop.f32.mrf.mxu2 }
 0x2a9   :  { %v939_v39 = vpop.f32.mrf.mxu0  ;;  %v962_v40 = vpop.f32.mrf.mxu1 }
 0x2aa   :  { %v998_v53 = vadd.f32 %v997_v41, %v939_v39  ;;  %v1021_v61 = vadd.f32 %v1020_v42, %v962_v40  ;;  %v3762_v39 = vld [vmem:[%s7028_s8 + $0xf8] sm:$0xff]  ;;  %v1404_v40 = vld [vmem:[%s7028_s8 + $0x20] sm:$0xff]  ;;  %v3761_v41 = vld [vmem:[%s7028_s8 + $0xf0] sm:$0xff] }
 0x2ab   :  { %v1403_v42 = vld [vmem:[%s7028_s8 + $0x18] sm:$0xff]  ;;  %1435 = vmatpush.msrb.mxu0 %v1404_v40  ;;  %v1529_v40 = vld [vmem:[%s7029_s9] sm:$0xff] }
 0x2ad   :  { %1436 = vmatpush.msrb.mxu0 %v1403_v42  ;;  %v3831_v42 = vld [vmem:[%s7021_s1 + $0xf0] sm:$0xff] }
 0x2b0   :  { %v1000_v47 = vpop.f32.mrf.mxu3  ;;  %v1023_v48 = vpop.f32.mrf.mxu2 }
 0x2b1   :  { %v942_v43 = vpop.f32.mrf.mxu0  ;;  %v965_v44 = vpop.f32.mrf.mxu1 }
 0x2b2   :  { %v1001_v56 = vadd.f32 %v1000_v47, %v942_v43  ;;  %v1024_v57 = vadd.f32 %v1023_v48, %v965_v44  ;;  %v3760_v43 = vld [vmem:[%s7028_s8 + $0xe8] sm:$0xff]  ;;  %v1402_v44 = vld [vmem:[%s7028_s8 + $0x10] sm:$0xff] }
 0x2b3   :  { %1437 = vmatpush.msrb.mxu0 %v1402_v44  ;;  %v3757_v47 = vld [vmem:[%s7028_s8 + $0xd0] sm:$0xff]  ;;  %v3756_v48 = vld [vmem:[%s7028_s8 + $0xc8] sm:$0xff] }
 0x2b4   :  { %v3815_v44 = vld [vmem:[%s7029_s9 + $0x188] sm:$0xff] }
 0x2b8   :  { %v1167_v51 = vpop.f32.mrf.mxu3  ;;  %v1190_v52 = vpop.f32.mrf.mxu2 }
 0x2b9   :  { %v1080_v45 = vpop.f32.mrf.mxu0  ;;  %v1103_v46 = vpop.f32.mrf.mxu1 }
 0x2ba   :  { %v1109_v58 = vadd.f32 %v1080_v45, %v998_v53  ;;  %v1110_v2 = vadd.f32 %v1103_v46, %v1021_v61  ;;  %v3759_v45 = vld [vmem:[%s7028_s8 + $0xe0] sm:$0xff]  ;;  %v3758_v46 = vld [vmem:[%s7028_s8 + $0xd8] sm:$0xff]  ;;  %v3752_v53 = vld [vmem:[%s7028_s8 + $0xa8] sm:$0xff] }
 0x2bb   :  { %v3768_v61 = vld [vmem:[%s7028_s8 + $0x128] sm:$0xff] }
 0x2bc   :  { %v1196_v3 = vadd.f32 %v1167_v51, %v1109_v58  ;;  %v1197_v14 = vadd.f32 %v1190_v52, %v1110_v2  ;;  %v3753_v51 = vld [vmem:[%s7028_s8 + $0xb0] sm:$0xff]  ;;  %v1401_v52 = vld [vmem:[%s7028_s8 + $0x8] sm:$0xff] }
 0x2bd   :  { %1438 = vmatpush.msrb.mxu0 %v1401_v52  ;;  %v1418_v58 = vld [vmem:[%s7028_s8 + $0x90] sm:$0xff]  ;;  %v3813_v52 = vld [vmem:[%s7029_s9 + $0x178] sm:$0xff] }
 0x2be   :  { %v3780_v2 = vld [vmem:[%s7029_s9 + $0x90] sm:$0xff] }
 0x2c0   :  { %v1170_v4 = vpop.f32.mrf.mxu3  ;;  %v1193_v5 = vpop.f32.mrf.mxu2 }
 0x2c1   :  { %v1083_v49 = vpop.f32.mrf.mxu0  ;;  %v1106_v50 = vpop.f32.mrf.mxu1 }
 0x2c2   :  { %v1111_v62 = vadd.f32 %v1083_v49, %v1001_v56  ;;  %v1112_v63 = vadd.f32 %v1106_v50, %v1024_v57  ;;  %v3755_v49 = vld [vmem:[%s7028_s8 + $0xc0] sm:$0xff]  ;;  %v3754_v50 = vld [vmem:[%s7028_s8 + $0xb8] sm:$0xff] }
 0x2c3   :  { %v1419_v56 = vld [vmem:[%s7028_s8 + $0x98] sm:$0xff] }
 0x2c4   :  { %v1198_v9 = vadd.f32 %v1170_v4, %v1111_v62  ;;  %v1199_v10 = vadd.f32 %v1193_v5, %v1112_v63  ;;  %v3770_v57 = vld [vmem:[%s7028_s8 + $0x138] sm:$0xff]  ;;  %1456 = vmatpush.msrb.mxu1 %v1419_v56  ;;  %v1416_v62 = vld [vmem:[%s7028_s8 + $0x80] sm:$0xff]  ;;  %v3847_v4 = vld [vmem:[%s7021_s1 + $0x170] sm:$0xff] }
 0x2c5   :  { %v3767_v63 = vld [vmem:[%s7028_s8 + $0x120] sm:$0xff]  ;;  %v3812_v56 = vld [vmem:[%s7029_s9 + $0x170] sm:$0xff] }
 0x2c6   :  { %1457 = vmatpush.msrb.mxu1 %v1418_v58  ;;  %v3846_v58 = vld [vmem:[%s7021_s1 + $0x168] sm:$0xff] }
 0x2c8   :  { %1458 = vmatpush.msrb.mxu1 %v1417_v60  ;;  %v3811_v60 = vld [vmem:[%s7029_s9 + $0x168] sm:$0xff] }
 0x2c9   :  { %v1254_v54 = vpop.f32.mrf.mxu0  ;;  %v1277_v55 = vpop.f32.mrf.mxu1 }
 0x2ca   :  { %v1283_v7 = vadd.f32 %v1254_v54, %v1196_v3  ;;  %v1284_v19 = vadd.f32 %v1277_v55, %v1197_v14  ;;  %v1400_v54 = vld [vmem:[%s7028_s8] sm:$0xff]  ;;  %1459 = vmatpush.msrb.mxu1 %v1416_v62  ;;  %v3799_v62 = vld [vmem:[%s7029_s9 + $0x110] sm:$0xff] }
 0x2cb   :  { %v3751_v55 = vld [vmem:[%s7028_s8 + $0xa0] sm:$0xff]  ;;  %1439 = vmatpush.msrb.mxu0 %v1400_v54 }
 0x2cc   :  { %v1293_v18 = vadd.f32 %v1289_v8, %v1283_v7  ;;  %v1294_v25 = vadd.f32 %v1290_v20, %v1284_v19  ;;  %v1537_v3 = vld [vmem:[%s7029_s9 + $0x40] sm:$0xff]  ;;  %1561 = vmatpush.msra.mxu1 %v3781_v0  ;;  %v3777_v19 = vld [vmem:[%s7029_s9 + $0x78] sm:$0xff]  ;;  %v3842_v0 = vld [vmem:[%s7021_s1 + $0x148] sm:$0xff] }
 0x2cd   :  { %v3845_v14 = vld [vmem:[%s7021_s1 + $0x160] sm:$0xff]  ;;  %1619 = vmatpush.msra.mxu0 %v3793_v13  ;;  %v3795_v13 = vld [vmem:[%s7029_s9 + $0xf0] sm:$0xff] }
 0x2ce   :  { %v1297_v26 = vmax.f32 %v1293_v18, 0.0  ;;  %v1298_v33 = vmax.f32 %v1294_v25, 0.0  ;;  %1562 = vmatpush.msra.mxu1 %v3780_v2  ;;  %v3843_v18 = vld [vmem:[%s7021_s1 + $0x150] sm:$0xff]  ;;  %v3825_v54 = vld [vmem:[%s7021_s1 + $0xc0] sm:$0xff]  ;;  %v3809_v2 = vld [vmem:[%s7029_s9 + $0x158] sm:$0xff] }
 0x2cf   :  { %1620 = vmatpush.msra.mxu0 %v3792_v17  ;;  %v3790_v25 = vld [vmem:[%s7029_s9 + $0xd0] sm:$0xff]  ;;  %v3832_v17 = vld [vmem:[%s7021_s1 + $0xf8] sm:$0xff] }
 0x2d1   :  { %v1257_v11 = vpop.f32.mrf.mxu0  ;;  %v1280_v12 = vpop.f32.mrf.mxu1 }
 0x2d2   :  { %v1285_v15 = vadd.f32 %v1257_v11, %v1198_v9  ;;  %v1286_v16 = vadd.f32 %v1280_v12, %v1199_v10  ;;  %v3779_v11 = vld [vmem:[%s7029_s9 + $0x88] sm:$0xff]  ;;  %v1536_v12 = vld [vmem:[%s7029_s9 + $0x38] sm:$0xff] }
 0x2d3   :  { %1563 = vmatpush.msra.mxu1 %v3779_v11  ;;  %v3836_v11 = vld [vmem:[%s7021_s1 + $0x118] sm:$0xff] }
 0x2d4   :  { %v1295_v21 = vadd.f32 %v1289_v8, %v1285_v15  ;;  %v1296_v23 = vadd.f32 %v1290_v20, %v1286_v16  ;;  %v3778_v15 = vld [vmem:[%s7029_s9 + $0x80] sm:$0xff]  ;;  %v1535_v16 = vld [vmem:[%s7029_s9 + $0x30] sm:$0xff]  ;;  %v1534_v20 = vld [vmem:[%s7029_s9 + $0x28] sm:$0xff] }
 0x2d5   :  { %1564 = vmatpush.msra.mxu1 %v3778_v15  ;;  %v3834_v15 = vld [vmem:[%s7021_s1 + $0x108] sm:$0xff] }
 0x2d6   :  { %v1299_v22 = vmax.f32 %v1295_v21, 0.0  ;;  %v1300_v30 = vmax.f32 %v1296_v23, 0.0  ;;  %v3791_v21 = vld [vmem:[%s7029_s9 + $0xd8] sm:$0xff]  ;;  %v3776_v23 = vld [vmem:[%s7029_s9 + $0x70] sm:$0xff] }
 0x2d7   :  { %1565 = vmatpush.msra.mxu1 %v3777_v19  ;;  %1621 = vmatpush.msra.mxu0 %v3791_v21  ;;  %v5680_v19 = vld [vmem:[%s7020_s0 + $0x31] sm:$0xff] }
 0x2d8   :  { %3741 = vmatpush.msk.msrb.mxu3 %vm1306_vm6, %v1299_v22  ;;  %3746 = vmatpush.msk.msrb.mxu2 %vm1306_vm6, %v1299_v22  ;;  %v3841_v22 = vld [vmem:[%s7021_s1 + $0x140] sm:$0xff]  ;;  %v3883_v21 = vld [vmem:[%s7021_s1 + $0x1f0] sm:$0xff] }
 0x2d9   :  { %1566 = vmatpush.msra.mxu1 %v3776_v23  ;;  %1622 = vmatpush.msra.mxu0 %v3790_v25  ;;  %v3881_v23 = vld [vmem:[%s7021_s1 + $0x1e0] sm:$0xff]  ;;  %v3879_v25 = vld [vmem:[%s7021_s1 + $0x1d0] sm:$0xff] }
 0x2da   :  { %1328 = vmatpush.msrb.mxu3 %v1297_v26  ;;  %1373 = vmatpush.msrb.mxu2 %v1297_v26  ;;  %v3839_v26 = vld [vmem:[%s7021_s1 + $0x130] sm:$0xff] }
 0x2db   :  { %3742 = vmatmul.msk.f32.vlgmr.msrb.gmra.mxu3 %vm1302_vm7, %v1301_v27  ;;  %3747 = vmatmul.msk.f32.vlgmr.msrb.gmra.mxu2 %vm1302_vm7, %v3745_v28 }
 0x2dc   :  { %3743 = vmatpush.msk.msra.mxu3 %vm1306_vm6, %v1300_v30  ;;  %1485 = vmatpush.msra.mxu2 %v3766_v29  ;;  %v3789_v29 = vld [vmem:[%s7029_s9 + $0xc8] sm:$0xff] }
 0x2dd   :  { %1623 = vmatpush.msra.mxu0 %v3789_v29  ;;  %v3873_v29 = vld [vmem:[%s7021_s1 + $0x1a0] sm:$0xff] }
 0x2de   :  { %1348 = vmatpush.msra.mxu3 %v1298_v33  ;;  %1486 = vmatpush.msra.mxu2 %v3765_v32  ;;  %v1531_v32 = vld [vmem:[%s7029_s9 + $0x10] sm:$0xff] }
 0x2e0   :  { %3748 = vmatpush.msk.msrb.mxu3 %vm1306_vm6, %v1300_v30  ;;  %1487 = vmatpush.msra.mxu2 %v3764_v35  ;;  %v3837_v30 = vld [vmem:[%s7021_s1 + $0x120] sm:$0xff]  ;;  %v3773_v35 = vld [vmem:[%s7029_s9 + $0x58] sm:$0xff] }
 0x2e2   :  { %1393 = vmatpush.msrb.mxu3 %v1298_v33  ;;  %1488 = vmatpush.msra.mxu2 %v3763_v37  ;;  %v3788_v33 = vld [vmem:[%s7029_s9 + $0xc0] sm:$0xff]  ;;  %v3787_v37 = vld [vmem:[%s7029_s9 + $0xb8] sm:$0xff] }
 0x2e3   :  { %3744 = vmatmul.msk.f32.vlgmr.msra.gmra.mxu3 %vm1302_vm7, %v1301_v27  ;;  %v3775_v27 = vld [vmem:[%s7029_s9 + $0x68] sm:$0xff]  ;;  %1624 = vmatpush.msra.mxu0 %v3788_v33 }
 0x2e4   :  { %1489 = vmatpush.msra.mxu2 %v3762_v39  ;;  %1517 = vmatpush.msra.mxu3 %v3770_v57  ;;  %v3772_v39 = vld [vmem:[%s7029_s9 + $0x50] sm:$0xff]  ;;  %v5594_v57 = vld [vmem:[%s7020_s0 + $0x21] sm:$0xff] }
 0x2e5   :  { %1567 = vmatpush.msra.mxu1 %v3775_v27  ;;  %1625 = vmatpush.msra.mxu0 %v3787_v37  ;;  %v5708_v27 = vld [vmem:[%s7020_s0 + $0x39] sm:$0xf] }
 0x2e6   :  { %1490 = vmatpush.msra.mxu2 %v3761_v41  ;;  %1518 = vmatpush.msra.mxu3 %v3769_v59  ;;  %v3786_v41 = vld [vmem:[%s7029_s9 + $0xb0] sm:$0xff]  ;;  %v3800_v59 = vld [vmem:[%s7029_s9 + $0x118] sm:$0xff] }
 0x2e7   :  { %1568 = vmatpush.msra.mxu1 %v3774_v31  ;;  %1626 = vmatpush.msra.mxu0 %v3786_v41  ;;  %v3871_v31 = vld [vmem:[%s7021_s1 + $0x190] sm:$0xff] }
 0x2e8   :  { %1491 = vmatpush.msra.mxu2 %v3760_v43  ;;  %1519 = vmatpush.msra.mxu3 %v3768_v61  ;;  %v3804_v43 = vld [vmem:[%s7029_s9 + $0x138] sm:$0xff]  ;;  %v3963_v41 = vld [vmem:[%s7021_s1 + $0x3b0] sm:$0xff] }
 0x2e9   :  { %1569 = vmatpush.msra.mxu1 %v3773_v35  ;;  %v3844_v61 = vld [vmem:[%s7021_s1 + $0x158] sm:$0xff]  ;;  %v3869_v35 = vld [vmem:[%s7021_s1 + $0x180] sm:$0xff] }
 0x2ea   :  { %1492 = vmatpush.msra.mxu2 %v3759_v45  ;;  %1520 = vmatpush.msra.mxu3 %v3767_v63  ;;  %v3785_v45 = vld [vmem:[%s7029_s9 + $0xa8] sm:$0xff]  ;;  %v3810_v63 = vld [vmem:[%s7029_s9 + $0x160] sm:$0xff] }
 0x2eb   :  { %3749 = vmatmul.msk.f32.vlgmr.msrb.gmra.mxu3 %vm1302_vm7, %v3745_v28  ;;  %v1532_v28 = vld [vmem:[%s7029_s9 + $0x18] sm:$0xff]  ;;  %1570 = vmatpush.msra.mxu1 %v3772_v39 }
 0x2ec   :  { %1493 = vmatpush.msra.mxu2 %v3758_v46  ;;  %1584 = vmatpush.msrb.mxu3 %v1538_v1  ;;  %v3829_v46 = vld [vmem:[%s7021_s1 + $0xe0] sm:$0xff]  ;;  %v3798_v1 = vld [vmem:[%s7029_s9 + $0x108] sm:$0xff] }
 0x2ed   :  { %1627 = vmatpush.msra.mxu0 %v3785_v45  ;;  %v3892_v45 = vld [vmem:[%s7021_s1 + $0x238] sm:$0xff] }
 0x2ee   :  { %1494 = vmatpush.msra.mxu2 %v3757_v47  ;;  %1585 = vmatpush.msrb.mxu3 %v1537_v3  ;;  %v3803_v47 = vld [vmem:[%s7029_s9 + $0x130] sm:$0xff]  ;;  %v3840_v3 = vld [vmem:[%s7021_s1 + $0x138] sm:$0xff] }
 0x2f0   :  { %1495 = vmatpush.msra.mxu2 %v3756_v48  ;;  %1586 = vmatpush.msrb.mxu3 %v1536_v12  ;;  %v3814_v48 = vld [vmem:[%s7029_s9 + $0x180] sm:$0xff] }
 0x2f1   :  { %v3889_v12 = vld [vmem:[%s7021_s1 + $0x220] sm:$0xff] }
 0x2f2   :  { %1496 = vmatpush.msra.mxu2 %v3755_v49  ;;  %1587 = vmatpush.msrb.mxu3 %v1535_v16  ;;  %v3784_v49 = vld [vmem:[%s7029_s9 + $0xa0] sm:$0xff]  ;;  %v3887_v16 = vld [vmem:[%s7021_s1 + $0x210] sm:$0xff] }
 0x2f3   :  { %1628 = vmatpush.msra.mxu0 %v3784_v49  ;;  %v1733_v49 = vld [vmem:[%s7021_s1 + $0xa0] sm:$0xff] }
 0x2f4   :  { %1497 = vmatpush.msra.mxu2 %v3754_v50  ;;  %1588 = vmatpush.msrb.mxu3 %v1534_v20  ;;  %v3827_v50 = vld [vmem:[%s7021_s1 + $0xd0] sm:$0xff]  ;;  %v3830_v20 = vld [vmem:[%s7021_s1 + $0xe8] sm:$0xff] }
 0x2f6   :  { %1498 = vmatpush.msra.mxu2 %v3753_v51  ;;  %1589 = vmatpush.msrb.mxu3 %v1533_v24  ;;  %v3802_v51 = vld [vmem:[%s7029_s9 + $0x128] sm:$0xff] }
 0x2f7   :  { %v3826_v24 = vld [vmem:[%s7021_s1 + $0xc8] sm:$0xff] }
 0x2f8   :  { %1499 = vmatpush.msra.mxu2 %v3752_v53  ;;  %1590 = vmatpush.msrb.mxu3 %v1532_v28  ;;  %v3848_v53 = vld [vmem:[%s7021_s1 + $0x178] sm:$0xff]  ;;  %v3875_v28 = vld [vmem:[%s7021_s1 + $0x1b0] sm:$0xff] }
 0x2fa   :  { %1500 = vmatpush.msra.mxu2 %v3751_v55  ;;  %1591 = vmatpush.msrb.mxu3 %v1531_v32  ;;  %v3801_v55 = vld [vmem:[%s7029_s9 + $0x120] sm:$0xff] }
 0x2fc   :  { %1781 = vmatpush.msrb.mxu2 %v3847_v4  ;;  %1592 = vmatpush.msrb.mxu3 %v1530_v36  ;;  %v3797_v4 = vld [vmem:[%s7029_s9 + $0x100] sm:$0xff] }
 0x2fe   :  { %1782 = vmatpush.msrb.mxu2 %v3845_v14  ;;  %1593 = vmatpush.msrb.mxu3 %v1529_v40  ;;  %v3806_v14 = vld [vmem:[%s7029_s9 + $0x140] sm:$0xff]  ;;  %v5735_v40 = vld [vmem:[%s7020_s0 + $0x2a] sm:$0xff] }
 0x300   :  { %1783 = vmatpush.msrb.mxu2 %v3843_v18  ;;  %v3885_v18 = vld [vmem:[%s7021_s1 + $0x200] sm:$0xff] }
 0x302   :  { %1784 = vmatpush.msrb.mxu2 %v3841_v22  ;;  %v3828_v22 = vld [vmem:[%s7021_s1 + $0xd8] sm:$0xff] }
 0x304   :  { %1785 = vmatpush.msrb.mxu2 %v3839_v26  ;;  %v3877_v26 = vld [vmem:[%s7021_s1 + $0x1c0] sm:$0xff] }
 0x306   :  { %1786 = vmatpush.msrb.mxu2 %v3837_v30 }
 0x308   :  { %1787 = vmatpush.msrb.mxu2 %v3835_v34 }
 0x30a   :  { %1788 = vmatpush.msrb.mxu2 %v3833_v38  ;;  %v5727_v38 = vld [vmem:[%s7020_s0 + $0x22] sm:$0xff] }
 0x30c   :  { %1789 = vmatpush.msrb.mxu2 %v3831_v42  ;;  %v3961_v42 = vld [vmem:[%s7021_s1 + $0x3a0] sm:$0xff] }
 0x30e   :  { %1790 = vmatpush.msrb.mxu2 %v3829_v46 }
 0x310   :  { %1791 = vmatpush.msrb.mxu2 %v3827_v50  ;;  %v1734_v50 = vld [vmem:[%s7021_s1 + $0xa8] sm:$0xff] }
 0x312   :  { %1792 = vmatpush.msrb.mxu2 %v3825_v54  ;;  %v1732_v54 = vld [vmem:[%s7021_s1 + $0x98] sm:$0xff] }
 0x35e   :  { %v1330_v5 = vpop.f32.mrf.mxu3  ;;  %v1375_v6 = vpop.f32.mrf.mxu2 }
 0x35f   :  { %v1398_v7 = vmax.f32 %v1330_v5, %v1375_v6  ;;  %v3808_v5 = vld [vmem:[%s7029_s9 + $0x150] sm:$0xff] }
 0x360   :  { %v5637_v6 = vld [vmem:[%s7020_s0 + $0x29] sm:$0xff] }
 0x361   :  { %1440 = vmatmul.f32.vlgmr.msrb.gmra.mxu0 %v1398_v7  ;;  %1501 = vmatmul.f32.vlgmr.msra.gmra.mxu2 %v1398_v7  ;;  %v3838_v7 = vld [vmem:[%s7021_s1 + $0x128] sm:$0xff] }
 0x362   :  { %1810 = vmatpush.msrb.mxu0 %v3848_v53  ;;  %v1731_v53 = vld [vmem:[%s7021_s1 + $0x90] sm:$0xff] }
 0x364   :  { %1811 = vmatpush.msrb.mxu0 %v3846_v58  ;;  %v1729_v58 = vld [vmem:[%s7021_s1 + $0x80] sm:$0xff] }
 0x366   :  { %v1350_v8 = vpop.f32.mrf.mxu3  ;;  %1812 = vmatpush.msrb.mxu0 %v3844_v61 }
 0x368   :  { %1813 = vmatpush.msrb.mxu0 %v3842_v0 }
 0x369   :  { %3849 = vmatmul.msk.f32.vlgmr.msrb.gmra.mxu2 %vm108_vm0, %v5594_v57 }
 0x36a   :  { %1814 = vmatpush.msrb.mxu0 %v3840_v3  ;;  %v1725_v3 = vld [vmem:[%s7021_s1 + $0x60] sm:$0xff] }
 0x36c   :  { %1815 = vmatpush.msrb.mxu0 %v3838_v7  ;;  %v3953_v7 = vld [vmem:[%s7021_s1 + $0x360] sm:$0xff] }
 0x36e   :  { %v1395_v9 = vpop.f32.mrf.mxu3  ;;  %1816 = vmatpush.msrb.mxu0 %v3836_v11  ;;  %v1721_v11 = vld [vmem:[%s7021_s1 + $0x40] sm:$0xff] }
 0x36f   :  { %v1399_v10 = vmax.f32 %v1350_v8, %v1395_v9  ;;  %v3891_v8 = vld [vmem:[%s7021_s1 + $0x230] sm:$0xff]  ;;  %v3796_v9 = vld [vmem:[%s7029_s9 + $0xf8] sm:$0xff] }
 0x370   :  { %1949 = vmatpush.msra.mxu2 %v3891_v8  ;;  %1817 = vmatpush.msrb.mxu0 %v3834_v15  ;;  %v1724_v8 = vld [vmem:[%s7021_s1 + $0x58] sm:$0xff] }
 0x371   :  { %3750 = vmatmul.msk.f32.vlgmr.msrb.gmra.mxu1 %vm1420_vm8, %v1399_v10  ;;  %3771 = vmatmul.msk.f32.vlgmr.msra.gmra.mxu3 %vm1420_vm8, %v1399_v10  ;;  %v3807_v10 = vld [vmem:[%s7029_s9 + $0x148] sm:$0xff]  ;;  %v1720_v15 = vld [vmem:[%s7021_s1 + $0x38] sm:$0xff] }
 0x372   :  { %1655 = vmatpush.msrb.mxu1 %v3804_v43  ;;  %1691 = vmatpush.msra.mxu3 %v3815_v44  ;;  %v1735_v43 = vld [vmem:[%s7021_s1 + $0xb0] sm:$0xff]  ;;  %v1736_v44 = vld [vmem:[%s7021_s1 + $0xb8] sm:$0xff] }
 0x373   :  { %3850 = vmatmul.msk.f32.gmra.mxu2 %vm108_vm0, %v5637_v6  ;;  %1818 = vmatpush.msrb.mxu0 %v3832_v17  ;;  %v5855_v17 = vld [vmem:[%s7020_s0 + $0x3a] sm:$0xf] }
 0x374   :  { %1656 = vmatpush.msrb.mxu1 %v3803_v47  ;;  %1692 = vmatpush.msra.mxu3 %v3814_v48 }
 0x375   :  { %1950 = vmatpush.msra.mxu2 %v3889_v12  ;;  %1819 = vmatpush.msrb.mxu0 %v3830_v20  ;;  %v1722_v12 = vld [vmem:[%s7021_s1 + $0x48] sm:$0xff] }
 0x376   :  { %1657 = vmatpush.msrb.mxu1 %v3802_v51  ;;  %1693 = vmatpush.msra.mxu3 %v3813_v52  ;;  %v3890_v51 = vld [vmem:[%s7021_s1 + $0x228] sm:$0xff]  ;;  %v3959_v52 = vld [vmem:[%s7021_s1 + $0x390] sm:$0xff] }
 0x377   :  { %1951 = vmatpush.msra.mxu2 %v3887_v16  ;;  %1820 = vmatpush.msrb.mxu0 %v3828_v22  ;;  %v3880_v16 = vld [vmem:[%s7021_s1 + $0x1d8] sm:$0xff]  ;;  %v1718_v20 = vld [vmem:[%s7021_s1 + $0x28] sm:$0xff]  ;;  %v3947_v22 = vld [vmem:[%s7021_s1 + $0x330] sm:$0xff] }
 0x378   :  { %1658 = vmatpush.msrb.mxu1 %v3801_v55  ;;  %1694 = vmatpush.msra.mxu3 %v3812_v56  ;;  %v3888_v55 = vld [vmem:[%s7021_s1 + $0x218] sm:$0xff]  ;;  %v3957_v56 = vld [vmem:[%s7021_s1 + $0x380] sm:$0xff] }
 0x379   :  { %1952 = vmatpush.msra.mxu2 %v3885_v18  ;;  %1821 = vmatpush.msrb.mxu0 %v3826_v24  ;;  %v1717_v18 = vld [vmem:[%s7021_s1 + $0x20] sm:$0xff]  ;;  %v3876_v24 = vld [vmem:[%s7021_s1 + $0x1b8] sm:$0xff] }
 0x37a   :  { %1659 = vmatpush.msrb.mxu1 %v3800_v59  ;;  %1695 = vmatpush.msra.mxu3 %v3811_v60  ;;  %v5787_v59 = vld [vmem:[%s7020_s0 + $0x32] sm:$0xff]  ;;  %v1730_v60 = vld [vmem:[%s7021_s1 + $0x88] sm:$0xff] }
 0x37b   :  { %3851 = vmatmul.msk.f32.gmra.mxu2 %vm108_vm0, %v5680_v19 }
 0x37c   :  { %1660 = vmatpush.msrb.mxu1 %v3799_v62  ;;  %1696 = vmatpush.msra.mxu3 %v3810_v63  ;;  %v1727_v62 = vld [vmem:[%s7021_s1 + $0x70] sm:$0xff]  ;;  %v1728_v63 = vld [vmem:[%s7021_s1 + $0x78] sm:$0xff] }
 0x37d   :  { %1953 = vmatpush.msra.mxu2 %v3883_v21  ;;  %v3878_v21 = vld [vmem:[%s7021_s1 + $0x1c8] sm:$0xff] }
 0x37e   :  { %1661 = vmatpush.msrb.mxu1 %v3798_v1  ;;  %1697 = vmatpush.msra.mxu3 %v3809_v2  ;;  %v3886_v1 = vld [vmem:[%s7021_s1 + $0x208] sm:$0xff]  ;;  %v3955_v2 = vld [vmem:[%s7021_s1 + $0x370] sm:$0xff] }
 0x37f   :  { %1954 = vmatpush.msra.mxu2 %v3881_v23  ;;  %v1716_v23 = vld [vmem:[%s7021_s1 + $0x18] sm:$0xff] }
 0x380   :  { %1662 = vmatpush.msrb.mxu1 %v3797_v4  ;;  %1698 = vmatpush.msra.mxu3 %v3808_v5  ;;  %v1726_v4 = vld [vmem:[%s7021_s1 + $0x68] sm:$0xff]  ;;  %v3884_v5 = vld [vmem:[%s7021_s1 + $0x1f8] sm:$0xff] }
 0x381   :  { %1955 = vmatpush.msra.mxu2 %v3879_v25  ;;  %v3945_v25 = vld [vmem:[%s7021_s1 + $0x320] sm:$0xff] }
 0x382   :  { %1663 = vmatpush.msrb.mxu1 %v3796_v9  ;;  %1699 = vmatpush.msra.mxu3 %v3807_v10  ;;  %v3882_v9 = vld [vmem:[%s7021_s1 + $0x1e8] sm:$0xff]  ;;  %v3951_v10 = vld [vmem:[%s7021_s1 + $0x350] sm:$0xff] }
 0x383   :  { %1956 = vmatpush.msra.mxu2 %v3877_v26  ;;  %v1713_v26 = vld [vmem:[%s7021_s1] sm:$0xff] }
 0x384   :  { %1664 = vmatpush.msrb.mxu1 %v3795_v13  ;;  %1700 = vmatpush.msra.mxu3 %v3806_v14  ;;  %v3949_v13 = vld [vmem:[%s7021_s1 + $0x340] sm:$0xff]  ;;  %v1719_v14 = vld [vmem:[%s7021_s1 + $0x30] sm:$0xff] }
 0x385   :  { %3852 = vmatmul.msk.f32.gmra.mxu2 %vm108_vm0, %v5708_v27 }
 0x386   :  { %1957 = vmatpush.msra.mxu2 %v3875_v28  ;;  %v1714_v28 = vld [vmem:[%s7021_s1 + $0x8] sm:$0xff] }
 0x388   :  { %1958 = vmatpush.msra.mxu2 %v3873_v29  ;;  %v3817_v29 = vld [vmem:[%s7020_s0 + $0x20] sm:$0xff] }
 0x38a   :  { %1959 = vmatpush.msra.mxu2 %v3871_v31  ;;  %v3928_v31 = vld [vmem:[%s7021_s1 + $0x2f8] sm:$0xff] }
 0x38c   :  { %1960 = vmatpush.msra.mxu2 %v3869_v35  ;;  %v3926_v35 = vld [vmem:[%s7021_s1 + $0x2e8] sm:$0xff] }
 0x38d   :  { %3893 = vmatmul.msk.f32.vlgmr.msra.gmra.mxu2 %vm108_vm0, %v5727_v38 }
 0x38e   :  { %2161 = vmatpush.msrb.mxu2 %v3963_v41  ;;  %v3870_v41 = vld [vmem:[%s7021_s1 + $0x188] sm:$0xff] }
 0x390   :  { %2162 = vmatpush.msrb.mxu2 %v3961_v42  ;;  %v3921_v42 = vld [vmem:[%s7021_s1 + $0x2c0] sm:$0xff] }
 0x392   :  { %2163 = vmatpush.msrb.mxu2 %v3959_v52  ;;  %v3960_v52 = vld [vmem:[%s7021_s1 + $0x398] sm:$0xff] }
 0x394   :  { %2164 = vmatpush.msrb.mxu2 %v3957_v56  ;;  %v3913_v56 = vld [vmem:[%s7021_s1 + $0x280] sm:$0xff] }
 0x395   :  { %3894 = vmatmul.msk.f32.gmra.mxu2 %vm108_vm0, %v5735_v40 }
 0x396   :  { %2165 = vmatpush.msrb.mxu2 %v3955_v2  ;;  %v3952_v2 = vld [vmem:[%s7021_s1 + $0x358] sm:$0xff] }
 0x398   :  { %2166 = vmatpush.msrb.mxu2 %v3953_v7  ;;  %v3905_v7 = vld [vmem:[%s7021_s1 + $0x240] sm:$0xff] }
 0x39a   :  { %2167 = vmatpush.msrb.mxu2 %v3951_v10  ;;  %v3948_v10 = vld [vmem:[%s7021_s1 + $0x338] sm:$0xff] }
 0x39c   :  { %2168 = vmatpush.msrb.mxu2 %v3949_v13  ;;  %v3940_v13 = vld [vmem:[%s7020_s0 + $0x3c] sm:$0xf] }
 0x39d   :  { %3895 = vmatmul.msk.f32.gmra.mxu2 %vm108_vm0, %v5787_v59 }
 0x39e   :  { %2169 = vmatpush.msrb.mxu2 %v3947_v22 }
 0x3a0   :  { %2170 = vmatpush.msrb.mxu2 %v3945_v25 }
 0x3a5   :  { %3896 = vmatmul.msk.f32.gmra.mxu2 %vm108_vm0, %v5855_v17 }
 0x3de   :  { %v1441_v32 = vpop.f32.mrf.mxu0 }
 0x3e4   :  { %v1502_v33 = vpop.f32.mrf.mxu2 }
 0x3ee   :  { %v1461_v30 = vpop.f32.mrf.mxu1 }
 0x3ef   :  { %v1462_v36 = vadd.f32 %v1461_v30, %v1441_v32  ;;  %v3927_v30 = vld [vmem:[%s7021_s1 + $0x2f0] sm:$0xff]  ;;  %v3874_v32 = vld [vmem:[%s7021_s1 + $0x1a8] sm:$0xff] }
 0x3f4   :  { %v1522_v34 = vpop.f32.mrf.mxu3 }
 0x3f5   :  { %v1523_v37 = vadd.f32 %v1522_v34, %v1502_v33  ;;  %v3925_v33 = vld [vmem:[%s7021_s1 + $0x2e0] sm:$0xff]  ;;  %v3943_v34 = vld [vmem:[%s7021_s1 + $0x310] sm:$0xff] }
 0x3f6   :  { %2171 = vmatpush.msrb.mxu2 %v3943_v34 }
 0x3f7   :  { %v1525_v39 = vmax.f32 %v1462_v36, %v1523_v37  ;;  %v3872_v36 = vld [vmem:[%s7021_s1 + $0x198] sm:$0xff]  ;;  %v3923_v37 = vld [vmem:[%s7021_s1 + $0x2d0] sm:$0xff] }
 0x3f9   :  { %1527 = vst.msk [vmem:[#allocation3] sm:$0x1f] %vm1526_vm9, %v1525_v39  ;;  %v3941_v39 = vld [vmem:[%s7021_s1 + $0x300] sm:$0xff] }
 0x3fa   :  { %2172 = vmatpush.msrb.mxu2 %v3941_v39 }
 0x400   :  { %v1539_v46 = vld [vmem:[#allocation3 + $0x1] sm:$0x1]  ;;  %v1528_v47 = vld [vmem:[#allocation3] sm:$0x1]  ;;  %v1598_v48 = vld [vmem:[#allocation3 + $0x2] sm:$0x1] }
 0x401   :  { %3782 = vmatmul.msk.f32.vlgmr.msra.gmra.mxu1 %vm1551_vm10, %v1539_v46  ;;  %3783 = vmatmul.msk.f32.vlgmr.msrb.gmra.mxu3 %vm1551_vm10, %v1528_v47  ;;  %v1634_v61 = vld [vmem:[#allocation3 + $0x3] sm:$0x1]  ;;  %v1670_v0 = vld [vmem:[#allocation3 + $0x4] sm:$0x1]  ;;  %v5949_v47 = vld [vmem:[%s7020_s0 + $0x24] sm:$0xff] }
 0x402   :  { %3794 = vmatmul.msk.f32.vlgmr.msra.gmra.mxu0 %vm1551_vm10, %v1598_v48  ;;  %1851 = vmatpush.msra.mxu1 %v1735_v43  ;;  %v3964_v43 = vld [vmem:[%s7021_s1 + $0x3b8] sm:$0xff]  ;;  %v3919_v46 = vld [vmem:[%s7021_s1 + $0x2b0] sm:$0xff] }
 0x403   :  { %1880 = vmatpush.msrb.mxu3 %v1736_v44  ;;  %1978 = vmatpush.msra.mxu0 %v3892_v45  ;;  %v3818_v44 = vld [vmem:[%s7020_s0 + $0x28] sm:$0xff]  ;;  %v3920_v48 = vld [vmem:[%s7021_s1 + $0x2b8] sm:$0xff] }
 0x404   :  { %1852 = vmatpush.msra.mxu1 %v1733_v49  ;;  %v3922_v45 = vld [vmem:[%s7021_s1 + $0x2c8] sm:$0xff]  ;;  %3965 = vmatmul.msk.f32.vlgmr.msrb.gmra.mxu2 %vm108_vm0, %v5949_v47 }
 0x405   :  { %1881 = vmatpush.msrb.mxu3 %v1734_v50  ;;  %1979 = vmatpush.msra.mxu0 %v3890_v51  ;;  %v3962_v49 = vld [vmem:[%s7021_s1 + $0x3a8] sm:$0xff]  ;;  %v3917_v50 = vld [vmem:[%s7021_s1 + $0x2a0] sm:$0xff] }
 0x406   :  { %1853 = vmatpush.msra.mxu1 %v1731_v53  ;;  %v3918_v51 = vld [vmem:[%s7021_s1 + $0x2a8] sm:$0xff]  ;;  %v3916_v53 = vld [vmem:[%s7021_s1 + $0x298] sm:$0xff] }
 0x407   :  { %1882 = vmatpush.msrb.mxu3 %v1732_v54  ;;  %1980 = vmatpush.msra.mxu0 %v3888_v55  ;;  %v3958_v54 = vld [vmem:[%s7021_s1 + $0x388] sm:$0xff]  ;;  %v3819_v55 = vld [vmem:[%s7020_s0 + $0x30] sm:$0xff] }
 0x408   :  { %1854 = vmatpush.msra.mxu1 %v1729_v58  ;;  %v3914_v58 = vld [vmem:[%s7021_s1 + $0x288] sm:$0xff] }
 0x409   :  { %1883 = vmatpush.msrb.mxu3 %v1730_v60  ;;  %3805 = vmatmul.msk.f32.vlgmr.msrb.gmra.mxu1 %vm1551_vm10, %v1634_v61  ;;  %v3956_v60 = vld [vmem:[%s7021_s1 + $0x378] sm:$0xff]  ;;  %v3911_v61 = vld [vmem:[%s7021_s1 + $0x270] sm:$0xff] }
 0x40a   :  { %3816 = vmatmul.msk.f32.vlgmr.msra.gmra.mxu3 %vm1551_vm10, %v1670_v0  ;;  %3853 = vmatmul.msk.f32.vlgmr.msrb.gmra.mxu0 %vm108_vm0, %v5594_v57  ;;  %v1723_v57 = vld [vmem:[%s7021_s1 + $0x50] sm:$0xff]  ;;  %v3954_v0 = vld [vmem:[%s7021_s1 + $0x368] sm:$0xff] }
 0x40b   :  { %1855 = vmatpush.msra.mxu1 %v1727_v62  ;;  %1884 = vmatpush.msrb.mxu3 %v1728_v63  ;;  %v3938_v62 = vld [vmem:[%s7020_s0 + $0x2c] sm:$0xff]  ;;  %v3912_v63 = vld [vmem:[%s7021_s1 + $0x278] sm:$0xff] }
 0x40c   :  { %1981 = vmatpush.msra.mxu0 %v3886_v1  ;;  %v3909_v1 = vld [vmem:[%s7021_s1 + $0x260] sm:$0xff]  ;;  %3966 = vmatmul.msk.f32.gmra.mxu2 %vm108_vm0, %v3938_v62 }
 0x40d   :  { %1856 = vmatpush.msra.mxu1 %v1725_v3  ;;  %1885 = vmatpush.msrb.mxu3 %v1726_v4  ;;  %v3907_v3 = vld [vmem:[%s7021_s1 + $0x250] sm:$0xff]  ;;  %v3820_v4 = vld [vmem:[%s7020_s0 + $0x38] sm:$0xf] }
 0x40e   :  { %1982 = vmatpush.msra.mxu0 %v3884_v5  ;;  %v3908_v5 = vld [vmem:[%s7021_s1 + $0x258] sm:$0xff] }
 0x40f   :  { %1857 = vmatpush.msra.mxu1 %v1723_v57  ;;  %1886 = vmatpush.msrb.mxu3 %v1724_v8  ;;  %v3950_v57 = vld [vmem:[%s7021_s1 + $0x348] sm:$0xff] }
 0x410   :  { %1983 = vmatpush.msra.mxu0 %v3882_v9  ;;  %v3906_v8 = vld [vmem:[%s7021_s1 + $0x248] sm:$0xff]  ;;  %v3939_v9 = vld [vmem:[%s7020_s0 + $0x34] sm:$0xff] }
 0x411   :  { %1858 = vmatpush.msra.mxu1 %v1721_v11  ;;  %1887 = vmatpush.msrb.mxu3 %v1722_v12  ;;  %v3946_v11 = vld [vmem:[%s7021_s1 + $0x328] sm:$0xff] }
 0x412   :  { %3854 = vmatmul.msk.f32.gmra.mxu0 %vm108_vm0, %v5637_v6  ;;  %v1715_v6 = vld [vmem:[%s7021_s1 + $0x10] sm:$0xff]  ;;  %v3901_v12 = vld [vmem:[%s7020_s0 + $0x23] sm:$0xff] }
 0x413   :  { %1859 = vmatpush.msra.mxu1 %v1719_v14  ;;  %1888 = vmatpush.msrb.mxu3 %v1720_v15  ;;  %v3942_v14 = vld [vmem:[%s7021_s1 + $0x308] sm:$0xff] }
 0x414   :  { %1984 = vmatpush.msra.mxu0 %v3880_v16  ;;  %3967 = vmatmul.msk.f32.gmra.mxu2 %vm108_vm0, %v3939_v9  ;;  %v3902_v15 = vld [vmem:[%s7020_s0 + $0x2b] sm:$0xff]  ;;  %v3904_v16 = vld [vmem:[%s7020_s0 + $0x3b] sm:$0xf] }
 0x415   :  { %1860 = vmatpush.msra.mxu1 %v1717_v18  ;;  %1889 = vmatpush.msrb.mxu3 %v1718_v20 }
 0x416   :  { %1985 = vmatpush.msra.mxu0 %v3878_v21 }
 0x417   :  { %1861 = vmatpush.msra.mxu1 %v1715_v6  ;;  %1890 = vmatpush.msrb.mxu3 %v1716_v23 }
 0x418   :  { %1986 = vmatpush.msra.mxu0 %v3876_v24 }
 0x419   :  { %1862 = vmatpush.msra.mxu1 %v1713_v26  ;;  %1891 = vmatpush.msrb.mxu3 %v1714_v28 }
 0x41a   :  { %3857 = vmatmul.msk.f32.vlgmr.msra.gmra.mxu1 %vm108_vm0, %v3817_v29  ;;  %3861 = vmatmul.msk.f32.vlgmr.msrb.gmra.mxu3 %vm108_vm0, %v3817_v29 }
 0x41b   :  { %3855 = vmatmul.msk.f32.gmra.mxu0 %vm108_vm0, %v5680_v19  ;;  %2055 = vmatpush.msrb.mxu1 %v3927_v30  ;;  %v3924_v19 = vld [vmem:[%s7021_s1 + $0x2d8] sm:$0xff] }
 0x41c   :  { %2084 = vmatpush.msra.mxu3 %v3928_v31  ;;  %1987 = vmatpush.msra.mxu0 %v3874_v32 }
 0x41d   :  { %2056 = vmatpush.msrb.mxu1 %v3925_v33  ;;  %3968 = vmatmul.msk.f32.gmra.mxu2 %vm108_vm0, %v3940_v13 }
 0x41e   :  { %2085 = vmatpush.msra.mxu3 %v3926_v35  ;;  %1988 = vmatpush.msra.mxu0 %v3872_v36 }
 0x41f   :  { %2057 = vmatpush.msrb.mxu1 %v3923_v37 }
 0x420   :  { %2086 = vmatpush.msra.mxu3 %v3924_v19  ;;  %1989 = vmatpush.msra.mxu0 %v3870_v41 }
 0x421   :  { %2058 = vmatpush.msrb.mxu1 %v3921_v42 }
 0x422   :  { %2190 = vmatpush.msrb.mxu0 %v3964_v43  ;;  %3858 = vmatmul.msk.f32.gmra.mxu1 %vm108_vm0, %v3818_v44 }
 0x423   :  { %3862 = vmatmul.msk.f32.gmra.mxu3 %vm108_vm0, %v3818_v44  ;;  %3856 = vmatmul.msk.f32.gmra.mxu0 %vm108_vm0, %v5708_v27  ;;  %v3915_v27 = vld [vmem:[%s7021_s1 + $0x290] sm:$0xff] }
 0x424   :  { %2087 = vmatpush.msra.mxu3 %v3922_v45  ;;  %2059 = vmatpush.msrb.mxu1 %v3919_v46 }
 0x425   :  { %2191 = vmatpush.msrb.mxu0 %v3962_v49 }
 0x426   :  { %2088 = vmatpush.msra.mxu3 %v3920_v48  ;;  %2060 = vmatpush.msrb.mxu1 %v3917_v50 }
 0x427   :  { %2192 = vmatpush.msrb.mxu0 %v3960_v52 }
 0x428   :  { %2089 = vmatpush.msra.mxu3 %v3918_v51  ;;  %2061 = vmatpush.msrb.mxu1 %v3915_v27 }
 0x429   :  { %2193 = vmatpush.msrb.mxu0 %v3958_v54 }
 0x42a   :  { %2090 = vmatpush.msra.mxu3 %v3916_v53  ;;  %3859 = vmatmul.msk.f32.gmra.mxu1 %vm108_vm0, %v3819_v55 }
 0x42b   :  { %3863 = vmatmul.msk.f32.gmra.mxu3 %vm108_vm0, %v3819_v55  ;;  %3897 = vmatmul.msk.f32.vlgmr.msra.gmra.mxu0 %vm108_vm0, %v5727_v38  ;;  %v3910_v38 = vld [vmem:[%s7021_s1 + $0x268] sm:$0xff] }
 0x42c   :  { %2062 = vmatpush.msrb.mxu1 %v3913_v56  ;;  %2091 = vmatpush.msra.mxu3 %v3914_v58 }
 0x42d   :  { %2194 = vmatpush.msrb.mxu0 %v3956_v60 }
 0x42e   :  { %2063 = vmatpush.msrb.mxu1 %v3911_v61  ;;  %2092 = vmatpush.msra.mxu3 %v3912_v63 }
 0x42f   :  { %2195 = vmatpush.msrb.mxu0 %v3954_v0 }
 0x430   :  { %2064 = vmatpush.msrb.mxu1 %v3909_v1  ;;  %2093 = vmatpush.msra.mxu3 %v3910_v38 }
 0x431   :  { %2196 = vmatpush.msrb.mxu0 %v3952_v2 }
 0x432   :  { %2065 = vmatpush.msrb.mxu1 %v3907_v3  ;;  %2094 = vmatpush.msra.mxu3 %v3908_v5 }
 0x433   :  { %3860 = vmatmul.msk.f32.gmra.mxu1 %vm108_vm0, %v3820_v4  ;;  %3864 = vmatmul.msk.f32.gmra.mxu3 %vm108_vm0, %v3820_v4 }
 0x434   :  { %3898 = vmatmul.msk.f32.gmra.mxu0 %vm108_vm0, %v5735_v40  ;;  %2066 = vmatpush.msrb.mxu1 %v3905_v7  ;;  %v3944_v40 = vld [vmem:[%s7021_s1 + $0x318] sm:$0xff] }
 0x435   :  { %2197 = vmatpush.msrb.mxu0 %v3950_v57  ;;  %2095 = vmatpush.msra.mxu3 %v3906_v8  ;;  %v2223_v57 = vld [vmem:[%s7022_s2] sm:$0x3] }
 0x437   :  { %2198 = vmatpush.msrb.mxu0 %v3948_v10 }
 0x439   :  { %2199 = vmatpush.msrb.mxu0 %v3946_v11 }
 0x43b   :  { %3929 = vmatmul.msk.f32.vlgmr.msrb.gmra.mxu1 %vm108_vm0, %v3901_v12  ;;  %3933 = vmatmul.msk.f32.vlgmr.msra.gmra.mxu3 %vm108_vm0, %v3901_v12 }
 0x43c   :  { %3899 = vmatmul.msk.f32.gmra.mxu0 %vm108_vm0, %v5787_v59  ;;  %v3903_v59 = vld [vmem:[%s7020_s0 + $0x33] sm:$0xff] }
 0x43d   :  { %2200 = vmatpush.msrb.mxu0 %v3944_v40 }
 0x43f   :  { %2201 = vmatpush.msrb.mxu0 %v3942_v14 }
 0x443   :  { %3930 = vmatmul.msk.f32.gmra.mxu1 %vm108_vm0, %v3902_v15  ;;  %3934 = vmatmul.msk.f32.gmra.mxu3 %vm108_vm0, %v3902_v15 }
 0x444   :  { %3900 = vmatmul.msk.f32.gmra.mxu0 %vm108_vm0, %v5855_v17  ;;  %v1794_v17 = vpop.f32.mrf.mxu2 }
 0x44b   :  { %3931 = vmatmul.msk.f32.gmra.mxu1 %vm108_vm0, %v3903_v59  ;;  %3935 = vmatmul.msk.f32.gmra.mxu3 %vm108_vm0, %v3903_v59 }
 0x44c   :  { %3969 = vmatmul.msk.f32.vlgmr.msrb.gmra.mxu0 %vm108_vm0, %v5949_v47  ;;  %v1797_v18 = vpop.f32.mrf.mxu2 }
 0x453   :  { %3932 = vmatmul.msk.f32.gmra.mxu1 %vm108_vm0, %v3904_v16  ;;  %3936 = vmatmul.msk.f32.gmra.mxu3 %vm108_vm0, %v3904_v16 }
 0x454   :  { %3970 = vmatmul.msk.f32.gmra.mxu0 %vm108_vm0, %v3938_v62  ;;  %v1800_v20 = vpop.f32.mrf.mxu2 }
 0x45c   :  { %3971 = vmatmul.msk.f32.gmra.mxu0 %vm108_vm0, %v3939_v9  ;;  %v1803_v22 = vpop.f32.mrf.mxu2 }
 0x464   :  { %3972 = vmatmul.msk.f32.gmra.mxu0 %vm108_vm0, %v3940_v13  ;;  %v1962_v28 = vpop.f32.mrf.mxu2  ;;  %v2225_v13 = vperm.slane %v2223_v57, 0 }
 0x46c   :  { %v1965_v34 = vpop.f32.mrf.mxu2 }
 0x474   :  { %v1968_v39 = vpop.f32.mrf.mxu2 }
 0x47c   :  { %v1971_v44 = vpop.f32.mrf.mxu2 }
 0x47e   :  { %v1572_v6 = vpop.f32.mrf.mxu1 }
 0x47f   :  { %v1630_v21 = vpop.f32.mrf.mxu0 }
 0x484   :  { %v1595_v23 = vpop.f32.mrf.mxu3 }
 0x485   :  { %v1596_v24 = vadd.f32 %v1595_v23, %v1572_v6 }
 0x486   :  { %v1666_v29 = vpop.f32.mrf.mxu1 }
 0x487   :  { %v6090_v25 = vpop.f32.mrf.mxu0  ;;  %v1633_v26 = vadd.f32 %v1630_v21, %v1596_v24  ;;  %v2174_v49 = vpop.f32.mrf.mxu2  ;;  %v2378_v24 = vld [vmem:[%s7024_s4 + $0x78] sm:$0xff] }
 0x488   :  { %2390 = vmatpush.msra.mxu0 %v2378_v24  ;;  %v4007_v24 = vld [vmem:[%s7024_s4 + $0x138] sm:$0xff] }
 0x489   :  { %v1669_v30 = vadd.f32 %v1666_v29, %v1633_v26  ;;  %v2377_v26 = vld [vmem:[%s7024_s4 + $0x70] sm:$0xff] }
 0x48a   :  { %2391 = vmatpush.msra.mxu0 %v2377_v26  ;;  %v2365_v26 = vld [vmem:[%s7024_s4 + $0x10] sm:$0xff] }
 0x48d   :  { %v1702_v31 = vpop.f32.mrf.mxu3 }
 0x48e   :  { %v1705_v32 = vadd.f32 %v1702_v31, %v1669_v30  ;;  %v2376_v30 = vld [vmem:[%s7024_s4 + $0x68] sm:$0xff] }
 0x48f   :  { %v6092_v33 = vpop.f32.mrf.mxu0  ;;  %v2177_v27 = vpop.f32.mrf.mxu2  ;;  %2392 = vmatpush.msra.mxu0 %v2376_v30  ;;  %v3990_v30 = vld [vmem:[%s7024_s4 + $0xb0] sm:$0xff] }
 0x490   :  { %1707 = vst.msk [vmem:[#allocation4] sm:$0x1] %vm1706_vm11, %v1705_v32 }
 0x497   :  { %v1864_v35 = vpop.f32.mrf.mxu1  ;;  %v2180_v56 = vpop.f32.mrf.mxu2 }
 0x498   :  { %v1829_v36 = vpop.f32.mrf.mxu0  ;;  %v1865_v0 = vadd.f32 %v1864_v35, %v1794_v17 }
 0x49a   :  { %v2003_v4 = vadd.f32 %v1962_v28, %v1865_v0 }
 0x49d   :  { %v6095_v37 = vpop.f32.mrf.mxu3 }
 0x49e   :  { %v1894_v35 = vadd.f32 %v6095_v37, %v6090_v25  ;;  %v2374_v25 = vld [vmem:[%s7024_s4 + $0x58] sm:$0xff] }
 0x49f   :  { %v1867_v19 = vpop.f32.mrf.mxu1 }
 0x4a0   :  { %v1832_v41 = vpop.f32.mrf.mxu0  ;;  %v1868_v61 = vadd.f32 %v1867_v19, %v1797_v18  ;;  %v2183_v9 = vpop.f32.mrf.mxu2 }
 0x4a2   :  { %v2005_v2 = vadd.f32 %v1965_v34, %v1868_v61 }
 0x4a6   :  { %v1896_v42 = vpop.f32.mrf.mxu3 }
 0x4a7   :  { %v1870_v43 = vpop.f32.mrf.mxu1  ;;  %v1897_v31 = vadd.f32 %v1896_v42, %v6092_v33  ;;  %v2245_v33 = vld [vmem:[%s7023_s3] sm:$0xff] }
 0x4a8   :  { %v6097_v45 = vpop.f32.mrf.mxu0  ;;  %v1871_v58 = vadd.f32 %v1870_v43, %v1800_v20 }
 0x4aa   :  { %v2007_v1 = vadd.f32 %v1968_v39, %v1871_v58 }
 0x4ae   :  { %v1899_v46 = vpop.f32.mrf.mxu3 }
 0x4af   :  { %v1900_v28 = vadd.f32 %v1899_v46, %v1829_v36  ;;  %v2375_v36 = vld [vmem:[%s7024_s4 + $0x60] sm:$0xff] }
 0x4b0   :  { %v1873_v47 = vpop.f32.mrf.mxu1  ;;  %2393 = vmatpush.msra.mxu0 %v2375_v36  ;;  %v2529_v36 = vld [vmem:[%s7025_s5 + $0xa0] sm:$0xf] }
 0x4b1   :  { %v1994_v48 = vpop.f32.mrf.mxu0  ;;  %v1874_v38 = vadd.f32 %v1873_v47, %v1803_v22 }
 0x4b2   :  { %v2006_v43 = vadd.f32 %v1994_v48, %v1897_v31  ;;  %2394 = vmatpush.msra.mxu0 %v2374_v25  ;;  %v2363_v31 = vld [vmem:[%s7024_s4] sm:$0xff] }
 0x4b3   :  { %v2009_v5 = vadd.f32 %v1971_v44, %v1874_v38  ;;  %v2525_v25 = vld [vmem:[%s7025_s5 + $0x80] sm:$0xff] }
 0x4b6   :  { %v1902_v50 = vpop.f32.mrf.mxu3 }
 0x4b7   :  { %v1903_v32 = vadd.f32 %v1902_v50, %v1832_v41  ;;  %v2004_v41 = vadd.f32 %v6097_v45, %v1894_v35  ;;  %v2226_v50 = vperm.slane %v2223_v57, 1  ;;  %v2372_v57 = vld [vmem:[%s7024_s4 + $0x48] sm:$0xff]  ;;  %v4006_v35 = vld [vmem:[%s7024_s4 + $0x130] sm:$0xff] }
 0x4b8   :  { %v2068_v51 = vpop.f32.mrf.mxu1 }
 0x4b9   :  { %v1997_v52 = vpop.f32.mrf.mxu0  ;;  %v2109_v10 = vadd.f32 %v2068_v51, %v2003_v4  ;;  %v4000_v4 = vld [vmem:[%s7024_s4 + $0x100] sm:$0xff] }
 0x4ba   :  { %v2008_v34 = vadd.f32 %v1997_v52, %v1900_v28  ;;  %v3991_v28 = vld [vmem:[%s7024_s4 + $0xb8] sm:$0xff] }
 0x4bb   :  { %v2215_v16 = vadd.f32 %v2174_v49, %v2109_v10  ;;  %v2373_v49 = vld [vmem:[%s7024_s4 + $0x50] sm:$0xff]  ;;  %v3997_v10 = vld [vmem:[%s7024_s4 + $0xe8] sm:$0xff] }
 0x4bc   :  { %2395 = vmatpush.msra.mxu0 %v2373_v49  ;;  %v2523_v49 = vld [vmem:[%s7025_s5 + $0x70] sm:$0xff] }
 0x4bd   :  { %v2229_v22 = vadd.f32 %v2225_v13, %v2215_v16  ;;  %v4009_v16 = vld [vmem:[%s7024_s4 + $0x148] sm:$0xff] }
 0x4be   :  { %v6099_v53 = vpop.f32.mrf.mxu3  ;;  %2396 = vmatpush.msra.mxu0 %v2372_v57  ;;  %v2515_v57 = vld [vmem:[%s7025_s5 + $0x30] sm:$0xff] }
 0x4bf   :  { %v2237_v39 = vmax.f32 %v2229_v22, 0.0  ;;  %v2110_v45 = vadd.f32 %v6099_v53, %v2004_v41  ;;  %v2246_v53 = vld [vmem:[%s7023_s3 + $0x8] sm:$0x3f]  ;;  %v2366_v22 = vld [vmem:[%s7024_s4 + $0x18] sm:$0xff]  ;;  %v4030_v41 = vld [vmem:[%s7025_s5 + $0x140] sm:$0xff] }
 0x4c0   :  { %v2071_v54 = vpop.f32.mrf.mxu1 }
 0x4c1   :  { %v2000_v55 = vpop.f32.mrf.mxu0  ;;  %v2111_v7 = vadd.f32 %v2071_v54, %v2005_v2  ;;  %v3979_v2 = vld [vmem:[%s7023_s3 + $0x10] sm:$0xff] }
 0x4c2   :  { %v2010_v44 = vadd.f32 %v2000_v55, %v1903_v32  ;;  %v3989_v32 = vld [vmem:[%s7024_s4 + $0xa8] sm:$0xff] }
 0x4c3   :  { %v2217_v14 = vadd.f32 %v2177_v27, %v2111_v7  ;;  %v3980_v7 = vld [vmem:[%s7023_s3 + $0x18] sm:$0x3f]  ;;  %s3437_s3 = sshll.u32 %s4239_s28, 4  ;;  %s3438_s3 = int_to_ptr.vmem [resolvable:$true] %s3437_s3 }
 0x4c5   :  { %v2231_v20 = vadd.f32 %v2225_v13, %v2217_v14  ;;  %v2368_v14 = vld [vmem:[%s7024_s4 + $0x28] sm:$0xff] }
 0x4c6   :  { %v2100_v62 = vpop.f32.mrf.mxu3 }
 0x4c7   :  { %v2239_v29 = vmax.f32 %v2231_v20, 0.0  ;;  %v2112_v37 = vadd.f32 %v2100_v62, %v2006_v43  ;;  %v3993_v20 = vld [vmem:[%s7024_s4 + $0xc8] sm:$0xff]  ;;  %v2527_v43 = vld [vmem:[%s7025_s5 + $0x90] sm:$0xff] }
 0x4c8   :  { %v2074_v60 = vpop.f32.mrf.mxu1 }
 0x4c9   :  { %v6101_v63 = vpop.f32.mrf.mxu0  ;;  %v2113_v3 = vadd.f32 %v2074_v60, %v2007_v1  ;;  %v4002_v1 = vld [vmem:[%s7024_s4 + $0x110] sm:$0xff] }
 0x4ca   :  { %v2216_v27 = vadd.f32 %v6101_v63, %v2110_v45  ;;  %v4003_v63 = vld [vmem:[%s7024_s4 + $0x118] sm:$0xff]  ;;  %v2521_v45 = vld [vmem:[%s7025_s5 + $0x60] sm:$0xff] }
 0x4cb   :  { %v2219_v11 = vadd.f32 %v2180_v56, %v2113_v3  ;;  %v4004_v56 = vld [vmem:[%s7024_s4 + $0x120] sm:$0xff]  ;;  %v4001_v3 = vld [vmem:[%s7024_s4 + $0x108] sm:$0xff] }
 0x4cc   :  { %v2230_v61 = vadd.f32 %v2226_v50, %v2216_v27 }
 0x4cd   :  { %v2233_v17 = vadd.f32 %v2225_v13, %v2219_v11  ;;  %v2370_v11 = vld [vmem:[%s7024_s4 + $0x38] sm:$0xff] }
 0x4ce   :  { %v2103_v15 = vpop.f32.mrf.mxu3  ;;  %v2238_v38 = vmax.f32 %v2230_v61, 0.0 }
 0x4cf   :  { %v2241_v6 = vmax.f32 %v2233_v17, 0.0  ;;  %v2114_v46 = vadd.f32 %v2103_v15, %v2008_v34  ;;  %v3994_v15 = vld [vmem:[%s7024_s4 + $0xd0] sm:$0xff]  ;;  %v2367_v17 = vld [vmem:[%s7024_s4 + $0x20] sm:$0xff]  ;;  %v2380_v34 = vld [vmem:[%s7024_s4 + $0x88] sm:$0xff] }
 0x4d0   :  { %v2077_v8 = vpop.f32.mrf.mxu1 }
 0x4d1   :  { %v2115_v12 = vadd.f32 %v2077_v8, %v2009_v5  ;;  %v2206_v40 = vpop.f32.mrf.mxu0  ;;  %v3999_v5 = vld [vmem:[%s7024_s4 + $0xf8] sm:$0xff]  ;;  %v3998_v8 = vld [vmem:[%s7024_s4 + $0xf0] sm:$0xff] }
 0x4d2   :  { %v2218_v51 = vadd.f32 %v2206_v40, %v2112_v37  ;;  %v2369_v40 = vld [vmem:[%s7024_s4 + $0x30] sm:$0xff]  ;;  %v4031_v37 = vld [vmem:[%s7025_s5 + $0x148] sm:$0xff] }
 0x4d3   :  { %v2221_v59 = vadd.f32 %v2183_v9, %v2115_v12  ;;  %v2371_v9 = vld [vmem:[%s7024_s4 + $0x40] sm:$0xff] }
 0x4d4   :  { %v2232_v58 = vadd.f32 %v2226_v50, %v2218_v51  ;;  %v3996_v12 = vld [vmem:[%s7024_s4 + $0xe0] sm:$0xff]  ;;  %2397 = vmatpush.msra.mxu0 %v2371_v9  ;;  %v4020_v9 = vld [vmem:[%s7025_s5 + $0xf0] sm:$0xff] }
 0x4d5   :  { %v2235_v18 = vadd.f32 %v2225_v13, %v2221_v59  ;;  %v3995_v13 = vld [vmem:[%s7024_s4 + $0xd8] sm:$0xff]  ;;  %v2383_v59 = vld [vmem:[%s7024_s4 + $0xa0] sm:$0xff] }
 0x4d6   :  { %v2106_v19 = vpop.f32.mrf.mxu3  ;;  %v2240_v0 = vmax.f32 %v2232_v58, 0.0  ;;  %2398 = vmatpush.msra.mxu0 %v2370_v11  ;;  %v2513_v11 = vld [vmem:[%s7025_s5 + $0x20] sm:$0xff] }
 0x4d7   :  { %v2243_v21 = vmax.f32 %v2235_v18, 0.0  ;;  %v2116_v42 = vadd.f32 %v2106_v19, %v2010_v44  ;;  %v2382_v18 = vld [vmem:[%s7024_s4 + $0x98] sm:$0xff]  ;;  %v4005_v19 = vld [vmem:[%s7024_s4 + $0x128] sm:$0xff]  ;;  %v4032_v44 = vld [vmem:[%s7025_s5 + $0x150] sm:$0xf] }
 0x4d8   :  { %2399 = vmatpush.msra.mxu0 %v2369_v40  ;;  %v4018_v40 = vld [vmem:[%s7025_s5 + $0xe0] sm:$0xff] }
 0x4d9   :  { %v2209_v23 = vpop.f32.mrf.mxu0  ;;  %3973 = vmatpush.msk.msra.mxu1 %vm601_vm1, %v2243_v21 }
 0x4da   :  { %v2220_v47 = vadd.f32 %v2209_v23, %v2114_v46  ;;  %2400 = vmatpush.msra.mxu0 %v2368_v14  ;;  %v3992_v23 = vld [vmem:[%s7024_s4 + $0xc0] sm:$0xff]  ;;  %v2511_v14 = vld [vmem:[%s7025_s5 + $0x10] sm:$0xff] }
 0x4db   :  { %2272 = vmatpush.msra.mxu1 %v2241_v6 }
 0x4dc   :  { %v2234_v54 = vadd.f32 %v2226_v50, %v2220_v47  ;;  %2401 = vmatpush.msra.mxu0 %v2367_v17  ;;  %v4029_v47 = vld [vmem:[%s7025_s5 + $0x138] sm:$0xff]  ;;  %v2509_v17 = vld [vmem:[%s7025_s5] sm:$0xff] }
 0x4dd   :  { %2273 = vmatpush.msra.mxu1 %v2239_v29 }
 0x4de   :  { %v2242_v62 = vmax.f32 %v2234_v54, 0.0  ;;  %2402 = vmatpush.msra.mxu0 %v2366_v22  ;;  %v4094_v22 = vld [vmem:[%s7025_s5 + $0x2b0] sm:$0xf] }
 0x4df   :  { %2274 = vmatpush.msra.mxu1 %v2237_v39 }
 0x4e0   :  { %3974 = vmatmul.msk.f32.vlgmr.msra.gmra.mxu1 %vm594_vm2, %v2245_v33  ;;  %2403 = vmatpush.msra.mxu0 %v2365_v26  ;;  %v4092_v26 = vld [vmem:[%s7025_s5 + $0x2a0] sm:$0xff] }
 0x4e1   :  { %3981 = vmatpush.msk.msrb.mxu1 %vm601_vm1, %v2243_v21  ;;  %v2212_v48 = vpop.f32.mrf.mxu0  ;;  %v4008_v21 = vld [vmem:[%s7024_s4 + $0x140] sm:$0xff] }
 0x4e2   :  { %v2222_v52 = vadd.f32 %v2212_v48, %v2116_v42  ;;  %v4028_v42 = vld [vmem:[%s7025_s5 + $0x130] sm:$0xff]  ;;  %v4066_v48 = vld [vmem:[%s7025_s5 + $0x200] sm:$0xf] }
 0x4e3   :  { %2326 = vmatpush.msrb.mxu1 %v2241_v6  ;;  %v2381_v6 = vld [vmem:[%s7024_s4 + $0x90] sm:$0xff] }
 0x4e4   :  { %v2236_v55 = vadd.f32 %v2226_v50, %v2222_v52 }
 0x4e5   :  { %2327 = vmatpush.msrb.mxu1 %v2239_v29  ;;  %v2364_v29 = vld [vmem:[%s7024_s4 + $0x8] sm:$0xff] }
 0x4e6   :  { %v2244_v60 = vmax.f32 %v2236_v55, 0.0  ;;  %2404 = vmatpush.msra.mxu0 %v2364_v29  ;;  %v4050_v29 = vld [vmem:[%s7025_s5 + $0x180] sm:$0xff] }
 0x4e7   :  { %2328 = vmatpush.msrb.mxu1 %v2237_v39  ;;  %v2379_v39 = vld [vmem:[%s7024_s4 + $0x80] sm:$0xff] }
 0x4e8   :  { %3976 = vmatpush.msk.msrb.mxu3 %vm601_vm1, %v2244_v60  ;;  %3984 = vmatpush.msk.msra.mxu2 %vm601_vm1, %v2244_v60 }
 0x4e9   :  { %2457 = vmatpush.msra.mxu1 %v4004_v56  ;;  %2405 = vmatpush.msra.mxu0 %v2363_v31  ;;  %v4090_v31 = vld [vmem:[%s7025_s5 + $0x290] sm:$0xff] }
 0x4ea   :  { %3975 = vmatmul.msk.f32.gmra.mxu1 %vm594_vm2, %v2246_v53  ;;  %2295 = vmatpush.msrb.mxu3 %v2242_v62 }
 0x4eb   :  { %2349 = vmatpush.msra.mxu2 %v2242_v62  ;;  %2458 = vmatpush.msra.mxu1 %v4003_v63  ;;  %v4026_v62 = vld [vmem:[%s7025_s5 + $0x120] sm:$0xff]  ;;  %v4027_v63 = vld [vmem:[%s7025_s5 + $0x128] sm:$0xff] }
 0x4ec   :  { %2296 = vmatpush.msrb.mxu3 %v2240_v0 }
 0x4ed   :  { %2350 = vmatpush.msra.mxu2 %v2240_v0  ;;  %2459 = vmatpush.msra.mxu1 %v4002_v1  ;;  %v2519_v0 = vld [vmem:[%s7025_s5 + $0x50] sm:$0xff] }
 0x4ee   :  { %2297 = vmatpush.msrb.mxu3 %v2238_v38  ;;  %v4064_v1 = vld [vmem:[%s7025_s5 + $0x1f0] sm:$0xff] }
 0x4ef   :  { %2351 = vmatpush.msra.mxu2 %v2238_v38  ;;  %3977 = vmatmul.msk.f32.vlgmr.msrb.gmra.mxu3 %vm594_vm2, %v2245_v33  ;;  %v4033_v33 = vld [vmem:[%s7025_s5 + $0x158] sm:$0xf]  ;;  %v4024_v38 = vld [vmem:[%s7025_s5 + $0x110] sm:$0xff] }
 0x4f0   :  { %3985 = vmatmul.msk.f32.vlgmr.msra.gmra.mxu2 %vm594_vm2, %v3979_v2  ;;  %2460 = vmatpush.msra.mxu1 %v4001_v3  ;;  %v2517_v3 = vld [vmem:[%s7025_s5 + $0x40] sm:$0xff] }
 0x4f1   :  { %2424 = vmatpush.msra.mxu3 %v2383_v59  ;;  %2491 = vmatpush.msrb.mxu2 %v4009_v16  ;;  %v4016_v59 = vld [vmem:[%s7025_s5 + $0xd0] sm:$0xff]  ;;  %v4017_v16 = vld [vmem:[%s7025_s5 + $0xd8] sm:$0xff] }
 0x4f2   :  { %3982 = vmatmul.msk.f32.vlgmr.msrb.gmra.mxu1 %vm594_vm2, %v3979_v2  ;;  %4037 = vmatpush.msk.msrb.mxu0 %vm601_vm1, %v4033_v33  ;;  %v4025_v2 = vld [vmem:[%s7025_s5 + $0x118] sm:$0xff] }
 0x4f3   :  { %2461 = vmatpush.msra.mxu1 %v4000_v4  ;;  %2425 = vmatpush.msra.mxu3 %v2382_v18  ;;  %v4062_v4 = vld [vmem:[%s7025_s5 + $0x1e0] sm:$0xff]  ;;  %v2524_v33 = vld [vmem:[%s7025_s5 + $0x78] sm:$0xff] }
 0x4f4   :  { %2492 = vmatpush.msrb.mxu2 %v4008_v21  ;;  %2596 = vmatpush.msrb.mxu0 %v4031_v37  ;;  %v4054_v18 = vld [vmem:[%s7025_s5 + $0x1a0] sm:$0xff]  ;;  %v4015_v21 = vld [vmem:[%s7025_s5 + $0xc8] sm:$0xff]  ;;  %v4120_v37 = vld [vmem:[%s7025_s5 + $0x350] sm:$0xff] }
 0x4f5   :  { %2462 = vmatpush.msra.mxu1 %v3999_v5  ;;  %2426 = vmatpush.msra.mxu3 %v2381_v6  ;;  %v4022_v5 = vld [vmem:[%s7025_s5 + $0x100] sm:$0xff]  ;;  %v4052_v6 = vld [vmem:[%s7025_s5 + $0x190] sm:$0xff] }
 0x4f6   :  { %2493 = vmatpush.msrb.mxu2 %v4007_v24  ;;  %2597 = vmatpush.msrb.mxu0 %v4029_v47  ;;  %v4013_v24 = vld [vmem:[%s7025_s5 + $0xb8] sm:$0xff]  ;;  %v4059_v47 = vld [vmem:[%s7025_s5 + $0x1c8] sm:$0xff] }
 0x4f7   :  { %3978 = vmatmul.msk.f32.gmra.mxu3 %vm594_vm2, %v2246_v53  ;;  %2463 = vmatpush.msra.mxu1 %v3998_v8  ;;  %v4060_v8 = vld [vmem:[%s7025_s5 + $0x1d0] sm:$0xff] }
 0x4f8   :  { %3986 = vmatmul.msk.f32.gmra.mxu2 %vm594_vm2, %v3980_v7  ;;  %2427 = vmatpush.msra.mxu3 %v2380_v34  ;;  %v4048_v34 = vld [vmem:[%s7025_s5 + $0x170] sm:$0xff] }
 0x4f9   :  { %2464 = vmatpush.msra.mxu1 %v3997_v10  ;;  %2494 = vmatpush.msrb.mxu2 %v4006_v35  ;;  %v4021_v10 = vld [vmem:[%s7025_s5 + $0xf8] sm:$0xff] }
 0x4fa   :  { %3983 = vmatmul.msk.f32.gmra.mxu1 %vm594_vm2, %v3980_v7  ;;  %2428 = vmatpush.msra.mxu3 %v2379_v39  ;;  %v4023_v7 = vld [vmem:[%s7025_s5 + $0x108] sm:$0xff]  ;;  %v4065_v35 = vld [vmem:[%s7025_s5 + $0x1f8] sm:$0xff]  ;;  %v4088_v39 = vld [vmem:[%s7025_s5 + $0x280] sm:$0xff] }
 0x4fb   :  { %2465 = vmatpush.msra.mxu1 %v3996_v12  ;;  %2495 = vmatpush.msrb.mxu2 %v4005_v19  ;;  %v4058_v12 = vld [vmem:[%s7025_s5 + $0x1c0] sm:$0xff]  ;;  %v2526_v19 = vld [vmem:[%s7025_s5 + $0x88] sm:$0xff] }
 0x4fc   :  { %4034 = vmatpush.msk.msrb.mxu3 %vm601_vm1, %v4032_v44  ;;  %2598 = vmatpush.msrb.mxu0 %v4027_v63  ;;  %v4086_v44 = vld [vmem:[%s7025_s5 + $0x270] sm:$0xff]  ;;  %v4051_v63 = vld [vmem:[%s7025_s5 + $0x188] sm:$0xff] }
 0x4fd   :  { %2466 = vmatpush.msra.mxu1 %v3995_v13  ;;  %4040 = vmatpush.msk.msra.mxu2 %vm601_vm1, %v2529_v36  ;;  %v4019_v13 = vld [vmem:[%s7025_s5 + $0xe8] sm:$0xff]  ;;  %v4046_v36 = vld [vmem:[%s7025_s5 + $0x160] sm:$0xff] }
 0x4fe   :  { %2573 = vmatpush.msrb.mxu3 %v4030_v41  ;;  %2599 = vmatpush.msrb.mxu0 %v4025_v2  ;;  %v4061_v41 = vld [vmem:[%s7025_s5 + $0x1d8] sm:$0xff] }
 0x4ff   :  { %2467 = vmatpush.msra.mxu1 %v3994_v15  ;;  %2631 = vmatpush.msra.mxu2 %v2527_v43  ;;  %v4056_v15 = vld [vmem:[%s7025_s5 + $0x1b0] sm:$0xff]  ;;  %v4063_v43 = vld [vmem:[%s7025_s5 + $0x1e8] sm:$0xff] }
 0x500   :  { %2574 = vmatpush.msrb.mxu3 %v4028_v42  ;;  %2600 = vmatpush.msrb.mxu0 %v4023_v7  ;;  %v2522_v42 = vld [vmem:[%s7025_s5 + $0x68] sm:$0xff] }
 0x501   :  { %2468 = vmatpush.msra.mxu1 %v3993_v20  ;;  %2632 = vmatpush.msra.mxu2 %v2525_v25  ;;  %v4014_v20 = vld [vmem:[%s7025_s5 + $0xc0] sm:$0xff]  ;;  %v2510_v7 = vld [vmem:[%s7025_s5 + $0x8] sm:$0xff] }
 0x502   :  { %2575 = vmatpush.msrb.mxu3 %v4026_v62  ;;  %2601 = vmatpush.msrb.mxu0 %v4021_v10  ;;  %v4084_v25 = vld [vmem:[%s7025_s5 + $0x260] sm:$0xff]  ;;  %v2514_v62 = vld [vmem:[%s7025_s5 + $0x28] sm:$0xff] }
 0x503   :  { %2469 = vmatpush.msra.mxu1 %v3992_v23  ;;  %2633 = vmatpush.msra.mxu2 %v2523_v49  ;;  %v4012_v23 = vld [vmem:[%s7025_s5 + $0xb0] sm:$0xff]  ;;  %v4118_v49 = vld [vmem:[%s7025_s5 + $0x340] sm:$0xff] }
 0x504   :  { %2576 = vmatpush.msrb.mxu3 %v4024_v38  ;;  %2602 = vmatpush.msrb.mxu0 %v4019_v13 }
 0x505   :  { %2470 = vmatpush.msra.mxu1 %v3991_v28  ;;  %2634 = vmatpush.msra.mxu2 %v2521_v45  ;;  %v2530_v28 = vld [vmem:[%s7025_s5 + $0xa8] sm:$0xf]  ;;  %v2520_v45 = vld [vmem:[%s7025_s5 + $0x58] sm:$0xff] }
 0x506   :  { %2577 = vmatpush.msrb.mxu3 %v4022_v5  ;;  %2603 = vmatpush.msrb.mxu0 %v4017_v16  ;;  %v4108_v5 = vld [vmem:[%s7025_s5 + $0x2f0] sm:$0xff] }
 0x507   :  { %2471 = vmatpush.msra.mxu1 %v3990_v30  ;;  %2635 = vmatpush.msra.mxu2 %v2519_v0  ;;  %v4067_v30 = vld [vmem:[%s7025_s5 + $0x208] sm:$0xf]  ;;  %v4074_v0 = vld [vmem:[%s7025_s5 + $0x210] sm:$0xff] }
 0x508   :  { %2578 = vmatpush.msrb.mxu3 %v4020_v9  ;;  %2604 = vmatpush.msrb.mxu0 %v4015_v21 }
 0x509   :  { %2472 = vmatpush.msra.mxu1 %v3989_v32  ;;  %2636 = vmatpush.msra.mxu2 %v2517_v3  ;;  %v2528_v32 = vld [vmem:[%s7025_s5 + $0x98] sm:$0xff] }
 0x50a   :  { %2579 = vmatpush.msrb.mxu3 %v4018_v40  ;;  %2605 = vmatpush.msrb.mxu0 %v4013_v24  ;;  %v2512_v3 = vld [vmem:[%s7025_s5 + $0x18] sm:$0xff]  ;;  %v4104_v40 = vld [vmem:[%s7025_s5 + $0x2d0] sm:$0xff] }
 0x50b   :  { %4068 = vmatpush.msk.msrb.mxu1 %vm601_vm1, %v4066_v48  ;;  %2637 = vmatpush.msra.mxu2 %v2515_v57  ;;  %v4082_v48 = vld [vmem:[%s7025_s5 + $0x250] sm:$0xff]  ;;  %v4047_v57 = vld [vmem:[%s7025_s5 + $0x168] sm:$0xff] }
 0x50c   :  { %2580 = vmatpush.msrb.mxu3 %v4016_v59 }
 0x50d   :  { %2713 = vmatpush.msrb.mxu1 %v4064_v1  ;;  %2638 = vmatpush.msra.mxu2 %v2513_v11  ;;  %v4110_v1 = vld [vmem:[%s7025_s5 + $0x300] sm:$0xff] }
 0x50e   :  { %2581 = vmatpush.msrb.mxu3 %v4014_v20 }
 0x50f   :  { %2714 = vmatpush.msrb.mxu1 %v4062_v4  ;;  %2639 = vmatpush.msra.mxu2 %v2511_v14  ;;  %v4049_v4 = vld [vmem:[%s7025_s5 + $0x178] sm:$0xff]  ;;  %v4102_v14 = vld [vmem:[%s7025_s5 + $0x2c0] sm:$0xff] }
 0x510   :  { %2582 = vmatpush.msrb.mxu3 %v4012_v23  ;;  %v4123_v23 = vld [vmem:[%s7025_s5 + $0x368] sm:$0xf] }
 0x511   :  { %2715 = vmatpush.msrb.mxu1 %v4060_v8  ;;  %2640 = vmatpush.msra.mxu2 %v2509_v17  ;;  %v4106_v8 = vld [vmem:[%s7025_s5 + $0x2e0] sm:$0xff] }
 0x513   :  { %2716 = vmatpush.msrb.mxu1 %v4058_v12 }
 0x515   :  { %2717 = vmatpush.msrb.mxu1 %v4056_v15 }
 0x517   :  { %2718 = vmatpush.msrb.mxu1 %v4054_v18 }
 0x519   :  { %2719 = vmatpush.msrb.mxu1 %v4052_v6  ;;  %v4095_v6 = vld [vmem:[%s7025_s5 + $0x2b8] sm:$0xf] }
 0x51b   :  { %2720 = vmatpush.msrb.mxu1 %v4050_v29  ;;  %v4093_v29 = vld [vmem:[%s7025_s5 + $0x2a8] sm:$0xff] }
 0x51d   :  { %2721 = vmatpush.msrb.mxu1 %v4048_v34 }
 0x51f   :  { %2722 = vmatpush.msrb.mxu1 %v4046_v36 }
 0x55d   :  { %v2276_v46 = vpop.f32.mrf.mxu1 }
 0x567   :  { %v2279_v50 = vpop.f32.mrf.mxu1 }
 0x56f   :  { %v2330_v51 = vpop.f32.mrf.mxu1 }
 0x570   :  { %v2359_v52 = vmax.f32 %v2276_v46, %v2330_v51  ;;  %v4122_v46 = vld [vmem:[%s7025_s5 + $0x360] sm:$0xf] }
 0x571   :  { %v4080_v51 = vld [vmem:[%s7025_s5 + $0x240] sm:$0xff] }
 0x572   :  { %2406 = vmatmul.f32.vlgmr.msra.gmra.mxu0 %v2359_v52  ;;  %2473 = vmatmul.f32.vlgmr.msra.gmra.mxu1 %v2359_v52  ;;  %v2299_v27 = vpop.f32.mrf.mxu3  ;;  %v4116_v52 = vld [vmem:[%s7025_s5 + $0x330] sm:$0xff] }
 0x573   :  { %v2353_v54 = vpop.f32.mrf.mxu2  ;;  %4071 = vmatpush.msk.msra.mxu0 %vm601_vm1, %v4067_v30  ;;  %4124 = vmatpush.msk.msra.mxu1 %vm601_vm1, %v4122_v46  ;;  %v4121_v30 = vld [vmem:[%s7025_s5 + $0x358] sm:$0xff]  ;;  %v4085_v46 = vld [vmem:[%s7025_s5 + $0x268] sm:$0xff] }
 0x574   :  { %v2360_v55 = vmax.f32 %v2299_v27, %v2353_v54  ;;  %v2518_v27 = vld [vmem:[%s7025_s5 + $0x48] sm:$0xff] }
 0x575   :  { %2736 = vmatpush.msra.mxu0 %v4065_v35  ;;  %2885 = vmatpush.msra.mxu1 %v4120_v37  ;;  %v4055_v54 = vld [vmem:[%s7025_s5 + $0x1a8] sm:$0xff] }
 0x576   :  { %3987 = vmatmul.msk.f32.vlgmr.msra.gmra.mxu3 %vm734_vm3, %v2360_v55  ;;  %4010 = vmatmul.msk.f32.vlgmr.msrb.gmra.mxu2 %vm734_vm3, %v2360_v55  ;;  %v4078_v55 = vld [vmem:[%s7025_s5 + $0x230] sm:$0xff]  ;;  %v4089_v35 = vld [vmem:[%s7025_s5 + $0x288] sm:$0xff] }
 0x577   :  { %v2333_v56 = vpop.f32.mrf.mxu1  ;;  %4096 = vmatpush.msk.msrb.mxu2 %vm601_vm1, %v4094_v22  ;;  %4043 = vmatpush.msk.msra.mxu3 %vm601_vm1, %v2530_v28 }
 0x578   :  { %v2361_v58 = vmax.f32 %v2279_v50, %v2333_v56  ;;  %2737 = vmatpush.msra.mxu0 %v4063_v43  ;;  %v4057_v50 = vld [vmem:[%s7025_s5 + $0x1b8] sm:$0xff]  ;;  %2886 = vmatpush.msra.mxu1 %v4118_v49  ;;  %v4114_v56 = vld [vmem:[%s7025_s5 + $0x320] sm:$0xff] }
 0x579   :  { %2799 = vmatpush.msrb.mxu2 %v4092_v26  ;;  %2654 = vmatpush.msra.mxu3 %v2528_v32  ;;  %v4119_v32 = vld [vmem:[%s7025_s5 + $0x348] sm:$0xff]  ;;  %v4087_v43 = vld [vmem:[%s7025_s5 + $0x278] sm:$0xff] }
 0x57a   :  { %2409 = vmatmul.f32.gmra.mxu0 %v2361_v58  ;;  %2476 = vmatmul.f32.gmra.mxu1 %v2361_v58  ;;  %v2302_v60 = vpop.f32.mrf.mxu3  ;;  %v2516_v58 = vld [vmem:[%s7025_s5 + $0x38] sm:$0xff] }
 0x57b   :  { %v2356_v53 = vpop.f32.mrf.mxu2  ;;  %2800 = vmatpush.msrb.mxu2 %v4090_v31  ;;  %2655 = vmatpush.msra.mxu3 %v2526_v19  ;;  %v4091_v31 = vld [vmem:[%s7025_s5 + $0x298] sm:$0xff] }
 0x57c   :  { %v2362_v61 = vmax.f32 %v2302_v60, %v2356_v53  ;;  %2738 = vmatpush.msra.mxu0 %v4061_v41  ;;  %2887 = vmatpush.msra.mxu1 %v4116_v52  ;;  %v4053_v60 = vld [vmem:[%s7025_s5 + $0x198] sm:$0xff]  ;;  %v4076_v53 = vld [vmem:[%s7025_s5 + $0x220] sm:$0xff] }
 0x57d   :  { %2801 = vmatpush.msrb.mxu2 %v4088_v39  ;;  %2656 = vmatpush.msra.mxu3 %v2524_v33  ;;  %v4117_v39 = vld [vmem:[%s7025_s5 + $0x338] sm:$0xff] }
 0x57e   :  { %3988 = vmatmul.msk.f32.gmra.mxu3 %vm734_vm3, %v2362_v61  ;;  %4011 = vmatmul.msk.f32.gmra.mxu2 %vm734_vm3, %v2362_v61  ;;  %v4112_v61 = vld [vmem:[%s7025_s5 + $0x310] sm:$0xff]  ;;  %v4113_v33 = vld [vmem:[%s7025_s5 + $0x318] sm:$0xff] }
 0x57f   :  { %2802 = vmatpush.msrb.mxu2 %v4086_v44  ;;  %2657 = vmatpush.msra.mxu3 %v2522_v42  ;;  %v4115_v44 = vld [vmem:[%s7025_s5 + $0x328] sm:$0xff]  ;;  %v4083_v41 = vld [vmem:[%s7025_s5 + $0x258] sm:$0xff] }
 0x580   :  { %2739 = vmatpush.msra.mxu0 %v4059_v47  ;;  %2888 = vmatpush.msra.mxu1 %v4114_v56  ;;  %v4081_v47 = vld [vmem:[%s7025_s5 + $0x248] sm:$0xff]  ;;  %v4079_v49 = vld [vmem:[%s7025_s5 + $0x238] sm:$0xff] }
 0x581   :  { %2803 = vmatpush.msrb.mxu2 %v4084_v25  ;;  %2658 = vmatpush.msra.mxu3 %v2520_v45  ;;  %v4111_v25 = vld [vmem:[%s7025_s5 + $0x308] sm:$0xff] }
 0x582   :  { %2740 = vmatpush.msra.mxu0 %v4057_v50  ;;  %2889 = vmatpush.msra.mxu1 %v4112_v61  ;;  %v4107_v45 = vld [vmem:[%s7025_s5 + $0x2e8] sm:$0xff] }
 0x583   :  { %2804 = vmatpush.msrb.mxu2 %v4082_v48  ;;  %2659 = vmatpush.msra.mxu3 %v2518_v27  ;;  %v4109_v48 = vld [vmem:[%s7025_s5 + $0x2f8] sm:$0xff]  ;;  %v4077_v50 = vld [vmem:[%s7025_s5 + $0x228] sm:$0xff] }
 0x584   :  { %2741 = vmatpush.msra.mxu0 %v4055_v54  ;;  %2890 = vmatpush.msra.mxu1 %v4110_v1  ;;  %v4075_v27 = vld [vmem:[%s7025_s5 + $0x218] sm:$0xff]  ;;  %v4103_v54 = vld [vmem:[%s7025_s5 + $0x2c8] sm:$0xff] }
 0x585   :  { %2805 = vmatpush.msrb.mxu2 %v4080_v51  ;;  %2660 = vmatpush.msra.mxu3 %v2516_v58  ;;  %v4105_v51 = vld [vmem:[%s7025_s5 + $0x2d8] sm:$0xff] }
 0x586   :  { %2742 = vmatpush.msra.mxu0 %v4053_v60  ;;  %2891 = vmatpush.msra.mxu1 %v4108_v5 }
 0x587   :  { %2806 = vmatpush.msrb.mxu2 %v4078_v55  ;;  %2661 = vmatpush.msra.mxu3 %v2514_v62 }
 0x588   :  { %2743 = vmatpush.msra.mxu0 %v4051_v63  ;;  %2892 = vmatpush.msra.mxu1 %v4106_v8 }
 0x589   :  { %2807 = vmatpush.msrb.mxu2 %v4076_v53  ;;  %2662 = vmatpush.msra.mxu3 %v2512_v3 }
 0x58a   :  { %2744 = vmatpush.msra.mxu0 %v4049_v4  ;;  %2893 = vmatpush.msra.mxu1 %v4104_v40 }
 0x58b   :  { %2808 = vmatpush.msrb.mxu2 %v4074_v0  ;;  %2663 = vmatpush.msra.mxu3 %v2510_v7  ;;  %v6631_v7 = vld [vmem:[%s7026_s6] sm:$0x3] }
 0x58c   :  { %2745 = vmatpush.msra.mxu0 %v4047_v57  ;;  %2894 = vmatpush.msra.mxu1 %v4102_v14  ;;  %v3054_v14 = vld [vmem:[%s7028_s8 + $0x78] sm:$0xff] }
 0x5ef   :  { %v2407_v38 = vpop.f32.mrf.mxu0  ;;  %v2474_v2 = vpop.f32.mrf.mxu1 }
 0x5f7   :  { %v2410_v15 = vpop.f32.mrf.mxu0  ;;  %v2477_v59 = vpop.f32.mrf.mxu1 }
 0x5f9   :  { %v2430_v9 = vpop.f32.mrf.mxu3  ;;  %v2497_v10 = vpop.f32.mrf.mxu2 }
 0x5fa   :  { %v2431_v11 = vadd.f32 %v2430_v9, %v2407_v38  ;;  %v2498_v12 = vadd.f32 %v2497_v10, %v2474_v2 }
 0x5fc   :  { %v2503_v13 = vmax.f32 %v2431_v11, %v2498_v12  ;;  %v2931_v11 = vperm.slane %v6631_v7, 0 }
 0x5fe   :  { %2505 = vst.msk [vmem:[#allocation2] sm:$0xff] %vm857_vm4, %v2503_v13 }
 0x601   :  { %v2433_v16 = vpop.f32.mrf.mxu3  ;;  %v2500_v17 = vpop.f32.mrf.mxu2 }
 0x602   :  { %v2434_v18 = vadd.f32 %v2433_v16, %v2410_v15  ;;  %v2501_v20 = vadd.f32 %v2500_v17, %v2477_v59  ;;  %v3053_v15 = vld [vmem:[%s7028_s8 + $0x70] sm:$0xff] }
 0x604   :  { %v2504_v21 = vmax.f32 %v2434_v18, %v2501_v20  ;;  %v3052_v18 = vld [vmem:[%s7028_s8 + $0x68] sm:$0xff] }
 0x605   :  { %v2507_v22 = vld [vmem:[#allocation2] sm:$0xff] }
 0x606   :  { %2506 = vst.msk [vmem:[#allocation2 + $0x8] sm:$0x3f] %vm859_vm5, %v2504_v21  ;;  %4041 = vmatmul.msk.f32.vlgmr.msra.gmra.mxu2 %vm857_vm4, %v2507_v22 }
 0x60d   :  { %v2531_v24 = vld [vmem:[#allocation2 + $0x1] sm:$0xff]  ;;  %v2532_v34 = vld [vmem:[#allocation2 + $0x9] sm:$0x3]  ;;  %v2758_v37 = vld [vmem:[#allocation2 + $0xb] sm:$0x3] }
 0x60e   :  { %v2508_v26 = vld [vmem:[#allocation2 + $0x8] sm:$0x3]  ;;  %4035 = vmatmul.msk.f32.vlgmr.msrb.gmra.mxu3 %vm857_vm4, %v2531_v24  ;;  %4038 = vmatmul.msk.f32.vlgmr.msrb.gmra.mxu0 %vm857_vm4, %v2531_v24  ;;  %v2672_v19 = vld [vmem:[#allocation2 + $0xa] sm:$0x3]  ;;  %v2844_v52 = vld [vmem:[#allocation2 + $0xc] sm:$0x3] }
 0x60f   :  { %v2671_v28 = vld [vmem:[#allocation2 + $0x2] sm:$0xff]  ;;  %4042 = vmatmul.msk.f32.gmra.mxu2 %vm857_vm4, %v2508_v26  ;;  %4099 = vmatpush.msk.msrb.mxu3 %vm601_vm1, %v4095_v6  ;;  %v3050_v24 = vld [vmem:[%s7028_s8 + $0x58] sm:$0xff] }
 0x610   :  { %4069 = vmatmul.msk.f32.vlgmr.msrb.gmra.mxu1 %vm857_vm4, %v2671_v28  ;;  %4127 = vmatpush.msk.msrb.mxu0 %vm601_vm1, %v4123_v23  ;;  %v2757_v36 = vld [vmem:[#allocation2 + $0x3] sm:$0xff] }
 0x611   :  { %2822 = vmatpush.msrb.mxu3 %v4093_v29  ;;  %v2843_v42 = vld [vmem:[#allocation2 + $0x4] sm:$0xff] }
 0x612   :  { %2908 = vmatpush.msrb.mxu0 %v4121_v30  ;;  %v2943_v23 = vld [vmem:[%s7027_s7] sm:$0x1f]  ;;  %v4154_v30 = vld [vmem:[%s7028_s8 + $0x110] sm:$0xff] }
 0x613   :  { %2823 = vmatpush.msrb.mxu3 %v4091_v31  ;;  %v3048_v31 = vld [vmem:[%s7028_s8 + $0x48] sm:$0xff] }
 0x614   :  { %2909 = vmatpush.msrb.mxu0 %v4119_v32 }
 0x615   :  { %2824 = vmatpush.msrb.mxu3 %v4089_v35  ;;  %v4153_v35 = vld [vmem:[%s7028_s8 + $0x108] sm:$0xff] }
 0x616   :  { %4036 = vmatmul.msk.f32.gmra.mxu3 %vm857_vm4, %v2532_v34  ;;  %4039 = vmatmul.msk.f32.gmra.mxu0 %vm857_vm4, %v2532_v34 }
 0x617   :  { %4097 = vmatmul.msk.f32.vlgmr.msrb.gmra.mxu2 %vm857_vm4, %v2757_v36  ;;  %2910 = vmatpush.msrb.mxu0 %v4117_v39 }
 0x618   :  { %4070 = vmatmul.msk.f32.gmra.mxu1 %vm857_vm4, %v2672_v19  ;;  %2825 = vmatpush.msrb.mxu3 %v4087_v43  ;;  %v4152_v43 = vld [vmem:[%s7028_s8 + $0x100] sm:$0xff] }
 0x619   :  { %2911 = vmatpush.msrb.mxu0 %v4115_v44 }
 0x61a   :  { %2826 = vmatpush.msrb.mxu3 %v4085_v46  ;;  %v4151_v46 = vld [vmem:[%s7028_s8 + $0xf8] sm:$0xff] }
 0x61b   :  { %2912 = vmatpush.msrb.mxu0 %v4113_v33 }
 0x61c   :  { %2827 = vmatpush.msrb.mxu3 %v4083_v41 }
 0x61d   :  { %2913 = vmatpush.msrb.mxu0 %v4111_v25  ;;  %v4150_v25 = vld [vmem:[%s7028_s8 + $0xf0] sm:$0xff] }
 0x61e   :  { %4044 = vmatmul.msk.f32.vlgmr.msra.gmra.mxu3 %vm857_vm4, %v2507_v22  ;;  %4072 = vmatmul.msk.f32.vlgmr.msra.gmra.mxu0 %vm857_vm4, %v2671_v28  ;;  %v3051_v22 = vld [vmem:[%s7028_s8 + $0x60] sm:$0xff]  ;;  %v3049_v28 = vld [vmem:[%s7028_s8 + $0x50] sm:$0xff] }
 0x61f   :  { %4098 = vmatmul.msk.f32.gmra.mxu2 %vm857_vm4, %v2758_v37  ;;  %2828 = vmatpush.msrb.mxu3 %v4081_v47  ;;  %v2932_v47 = vperm.slane %v6631_v7, 1  ;;  %v4141_v7 = vld [vmem:[%s7028_s8 + $0xa8] sm:$0xff] }
 0x620   :  { %4125 = vmatmul.msk.f32.vlgmr.msra.gmra.mxu1 %vm857_vm4, %v2843_v42  ;;  %2914 = vmatpush.msrb.mxu0 %v4109_v48 }
 0x621   :  { %2829 = vmatpush.msrb.mxu3 %v4079_v49  ;;  %v4149_v49 = vld [vmem:[%s7028_s8 + $0xe8] sm:$0xff] }
 0x622   :  { %2915 = vmatpush.msrb.mxu0 %v4107_v45 }
 0x623   :  { %2830 = vmatpush.msrb.mxu3 %v4077_v50  ;;  %v4148_v50 = vld [vmem:[%s7028_s8 + $0xe0] sm:$0xff] }
 0x624   :  { %2916 = vmatpush.msrb.mxu0 %v4105_v51 }
 0x625   :  { %2831 = vmatpush.msrb.mxu3 %v4075_v27 }
 0x626   :  { %4045 = vmatmul.msk.f32.gmra.mxu3 %vm857_vm4, %v2508_v26  ;;  %4073 = vmatmul.msk.f32.gmra.mxu0 %vm857_vm4, %v2672_v19  ;;  %v4155_v26 = vld [vmem:[%s7028_s8 + $0x118] sm:$0xff] }
 0x627   :  { %2917 = vmatpush.msrb.mxu0 %v4103_v54  ;;  %v4147_v54 = vld [vmem:[%s7028_s8 + $0xd8] sm:$0xff] }
 0x628   :  { %4126 = vmatmul.msk.f32.gmra.mxu1 %vm857_vm4, %v2844_v52 }
 0x629   :  { %3062 = vmatpush.msra.mxu0 %v3054_v14  ;;  %v4156_v14 = vld [vmem:[%s7028_s8 + $0x120] sm:$0xff] }
 0x62b   :  { %3063 = vmatpush.msra.mxu0 %v3053_v15  ;;  %v4170_v15 = vld [vmem:[%s7029_s9 + $0x98] sm:$0xff] }
 0x62d   :  { %3064 = vmatpush.msra.mxu0 %v3052_v18 }
 0x62e   :  { %4100 = vmatmul.msk.f32.vlgmr.msrb.gmra.mxu3 %vm857_vm4, %v2757_v36  ;;  %4128 = vmatmul.msk.f32.vlgmr.msrb.gmra.mxu0 %vm857_vm4, %v2843_v42  ;;  %v4134_v36 = vld [vmem:[%s7027_s7 + $0x8] sm:$0x1f] }
 0x62f   :  { %3065 = vmatpush.msra.mxu0 %v3051_v22  ;;  %v4164_v22 = vld [vmem:[%s7029_s9 + $0x68] sm:$0xff] }
 0x631   :  { %3066 = vmatpush.msra.mxu0 %v3050_v24 }
 0x633   :  { %3067 = vmatpush.msra.mxu0 %v3049_v28 }
 0x635   :  { %3068 = vmatpush.msra.mxu0 %v3048_v31  ;;  %v3174_v31 = vld [vmem:[%s7029_s9 + $0x48] sm:$0xff] }
 0x636   :  { %4101 = vmatmul.msk.f32.gmra.mxu3 %vm857_vm4, %v2758_v37  ;;  %4129 = vmatmul.msk.f32.gmra.mxu0 %vm857_vm4, %v2844_v52 }
 0x689   :  { %v2642_v55 = vpop.f32.mrf.mxu2 }
 0x68b   :  { %v2607_v56 = vpop.f32.mrf.mxu0 }
 0x68d   :  { %v2724_v58 = vpop.f32.mrf.mxu1 }
 0x691   :  { %v2584_v60 = vpop.f32.mrf.mxu3 }
 0x692   :  { %v2645_v53 = vpop.f32.mrf.mxu2  ;;  %v2643_v63 = vadd.f32 %v2642_v55, %v2584_v60  ;;  %v4145_v60 = vld [vmem:[%s7028_s8 + $0xc8] sm:$0xff] }
 0x693   :  { %v2610_v61 = vpop.f32.mrf.mxu0 }
 0x694   :  { %v2753_v3 = vadd.f32 %v2724_v58, %v2643_v63  ;;  %v3047_v58 = vld [vmem:[%s7028_s8 + $0x40] sm:$0xff]  ;;  %v3045_v63 = vld [vmem:[%s7028_s8 + $0x30] sm:$0xff] }
 0x695   :  { %v2727_v62 = vpop.f32.mrf.mxu1  ;;  %3069 = vmatpush.msra.mxu0 %v3047_v58  ;;  %v4189_v58 = vld [vmem:[%s7029_s9 + $0x118] sm:$0xff] }
 0x699   :  { %v2587_v0 = vpop.f32.mrf.mxu3 }
 0x69a   :  { %v2810_v1 = vpop.f32.mrf.mxu2  ;;  %v2646_v2 = vadd.f32 %v2645_v53, %v2587_v0  ;;  %v3046_v53 = vld [vmem:[%s7028_s8 + $0x38] sm:$0xff] }
 0x69b   :  { %v2747_v4 = vpop.f32.mrf.mxu0  ;;  %v2839_v5 = vadd.f32 %v2810_v1, %v2753_v3  ;;  %v4143_v0 = vld [vmem:[%s7028_s8 + $0xb8] sm:$0xff]  ;;  %v3057_v1 = vld [vmem:[%s7028_s8 + $0x90] sm:$0xff]  ;;  %3070 = vmatpush.msra.mxu0 %v3046_v53  ;;  %v3043_v3 = vld [vmem:[%s7028_s8 + $0x20] sm:$0xff] }
 0x69c   :  { %v2755_v8 = vadd.f32 %v2727_v62, %v2646_v2  ;;  %v3058_v62 = vld [vmem:[%s7028_s8 + $0x98] sm:$0xff]  ;;  %v4142_v2 = vld [vmem:[%s7028_s8 + $0xb0] sm:$0xff] }
 0x69d   :  { %v2896_v38 = vpop.f32.mrf.mxu1  ;;  %3071 = vmatpush.msra.mxu0 %v3045_v63  ;;  %v4197_v53 = vld [vmem:[%s7029_s9 + $0x150] sm:$0xff]  ;;  %v3166_v63 = vld [vmem:[%s7029_s9 + $0x8] sm:$0xff] }
 0x69e   :  { %v2925_v10 = vadd.f32 %v2896_v38, %v2839_v5  ;;  %v3044_v38 = vld [vmem:[%s7028_s8 + $0x28] sm:$0xff]  ;;  %v3041_v5 = vld [vmem:[%s7028_s8 + $0x10] sm:$0xff] }
 0x69f   :  { %3072 = vmatpush.msra.mxu0 %v3044_v38  ;;  %v4187_v38 = vld [vmem:[%s7029_s9 + $0x108] sm:$0xff] }
 0x6a0   :  { %v2935_v59 = vadd.f32 %v2931_v11, %v2925_v10  ;;  %v4159_v10 = vld [vmem:[%s7028_s8 + $0x138] sm:$0xff] }
 0x6a1   :  { %v2665_v57 = vpop.f32.mrf.mxu3  ;;  %3073 = vmatpush.msra.mxu0 %v3043_v3  ;;  %v4195_v3 = vld [vmem:[%s7029_s9 + $0x140] sm:$0xff] }
 0x6a2   :  { %v2813_v9 = vpop.f32.mrf.mxu2  ;;  %v2939_v6 = vmax.f32 %v2935_v59, 0.0  ;;  %v2666_v29 = vadd.f32 %v2665_v57, %v2607_v56  ;;  %v4146_v56 = vld [vmem:[%s7028_s8 + $0xd0] sm:$0xff]  ;;  %v3040_v57 = vld [vmem:[%s7028_s8 + $0x8] sm:$0xff] }
 0x6a3   :  { %v2841_v12 = vadd.f32 %v2813_v9, %v2755_v8  ;;  %v2750_v16 = vpop.f32.mrf.mxu0  ;;  %v4140_v8 = vld [vmem:[%s7028_s8 + $0xa0] sm:$0xff]  ;;  %v4169_v59 = vld [vmem:[%s7029_s9 + $0x90] sm:$0xff] }
 0x6a4   :  { %v2754_v19 = vadd.f32 %v2747_v4, %v2666_v29  ;;  %v3042_v4 = vld [vmem:[%s7028_s8 + $0x18] sm:$0xff]  ;;  %v3039_v9 = vld [vmem:[%s7028_s8] sm:$0xff] }
 0x6a5   :  { %v2899_v40 = vpop.f32.mrf.mxu1  ;;  %3074 = vmatpush.msra.mxu0 %v3042_v4  ;;  %v4186_v4 = vld [vmem:[%s7029_s9 + $0x100] sm:$0xff] }
 0x6a6   :  { %v2927_v13 = vadd.f32 %v2899_v40, %v2841_v12  ;;  %v3056_v12 = vld [vmem:[%s7028_s8 + $0x88] sm:$0xff]  ;;  %v3055_v40 = vld [vmem:[%s7028_s8 + $0x80] sm:$0xff] }
 0x6a7   :  { %3075 = vmatpush.msra.mxu0 %v3041_v5  ;;  %v4173_v5 = vld [vmem:[%s7029_s9 + $0xa0] sm:$0xff] }
 0x6a8   :  { %v2937_v17 = vadd.f32 %v2931_v11, %v2927_v13  ;;  %v4158_v11 = vld [vmem:[%s7028_s8 + $0x130] sm:$0xff]  ;;  %v4157_v13 = vld [vmem:[%s7028_s8 + $0x128] sm:$0xff] }
 0x6a9   :  { %v2668_v21 = vpop.f32.mrf.mxu3  ;;  %3076 = vmatpush.msra.mxu0 %v3040_v57  ;;  %v4184_v57 = vld [vmem:[%s7029_s9 + $0xf0] sm:$0xff] }
 0x6aa   :  { %v2941_v20 = vmax.f32 %v2937_v17, 0.0  ;;  %v2669_v39 = vadd.f32 %v2668_v21, %v2610_v61  ;;  %v4144_v61 = vld [vmem:[%s7028_s8 + $0xc0] sm:$0xff]  ;;  %v4165_v21 = vld [vmem:[%s7029_s9 + $0x70] sm:$0xff] }
 0x6ab   :  { %v2919_v32 = vpop.f32.mrf.mxu0  ;;  %3077 = vmatpush.msra.mxu0 %v3039_v9  ;;  %v4167_v17 = vld [vmem:[%s7029_s9 + $0x80] sm:$0xff]  ;;  %v3358_v9 = vld [vmem:[%s7031_s11 + $0x68] sm:$0xff] }
 0x6ac   :  { %4130 = vmatpush.msk.msra.mxu2 %vm1306_vm6, %v2941_v20  ;;  %v2756_v33 = vadd.f32 %v2750_v16, %v2669_v39  ;;  %v4168_v16 = vld [vmem:[%s7029_s9 + $0x88] sm:$0xff]  ;;  %v4203_v39 = vld [vmem:[%s7029_s9 + $0x180] sm:$0xff] }
 0x6ae   :  { %2968 = vmatpush.msra.mxu2 %v2939_v6 }
 0x6af   :  { %4131 = vmatmul.msk.f32.vlgmr.msra.gmra.mxu2 %vm1302_vm7, %v2943_v23 }
 0x6b0   :  { %4135 = vmatpush.msk.msrb.mxu2 %vm1306_vm6, %v2941_v20  ;;  %v4166_v20 = vld [vmem:[%s7029_s9 + $0x78] sm:$0xff] }
 0x6b1   :  { %v2833_v34 = vpop.f32.mrf.mxu3 }
 0x6b2   :  { %3012 = vmatpush.msrb.mxu2 %v2939_v6  ;;  %v2840_v44 = vadd.f32 %v2833_v34, %v2754_v19  ;;  %v4163_v6 = vld [vmem:[%s7029_s9 + $0x60] sm:$0xff]  ;;  %v4182_v34 = vld [vmem:[%s7029_s9 + $0xe8] sm:$0xff] }
 0x6b3   :  { %v2922_v48 = vpop.f32.mrf.mxu0  ;;  %3252 = vmatpush.msrb.mxu0 %v4182_v34  ;;  %v4181_v19 = vld [vmem:[%s7029_s9 + $0xe0] sm:$0xff]  ;;  %v3346_v34 = vld [vmem:[%s7031_s11 + $0x8] sm:$0xff] }
 0x6b4   :  { %3122 = vmatpush.msra.mxu2 %v4155_v26  ;;  %v2926_v37 = vadd.f32 %v2919_v32, %v2840_v44  ;;  %v4162_v26 = vld [vmem:[%s7029_s9 + $0x58] sm:$0xff]  ;;  %v4204_v32 = vld [vmem:[%s7029_s9 + $0x188] sm:$0xff] }
 0x6b5   :  { %3253 = vmatpush.msrb.mxu0 %v4181_v19  ;;  %v4180_v44 = vld [vmem:[%s7029_s9 + $0xd8] sm:$0xff]  ;;  %v3398_v19 = vld [vmem:[%s7033_s13 + $0x48] sm:$0xff] }
 0x6b6   :  { %3123 = vmatpush.msra.mxu2 %v4154_v30  ;;  %v2936_v52 = vadd.f32 %v2932_v47, %v2926_v37  ;;  %v4193_v37 = vld [vmem:[%s7029_s9 + $0x138] sm:$0xff] }
 0x6b7   :  { %4136 = vmatmul.msk.f32.vlgmr.msrb.gmra.mxu2 %vm1302_vm7, %v4134_v36  ;;  %3254 = vmatpush.msrb.mxu0 %v4180_v44  ;;  %v3395_v44 = vld [vmem:[%s7033_s13 + $0x30] sm:$0xff] }
 0x6b8   :  { %3124 = vmatpush.msra.mxu2 %v4153_v35  ;;  %v2940_v55 = vmax.f32 %v2936_v52, 0.0  ;;  %v3173_v35 = vld [vmem:[%s7029_s9 + $0x40] sm:$0xff] }
 0x6b9   :  { %v2836_v41 = vpop.f32.mrf.mxu3  ;;  %v4199_v52 = vld [vmem:[%s7029_s9 + $0x160] sm:$0xff] }
 0x6ba   :  { %3125 = vmatpush.msra.mxu2 %v4152_v43  ;;  %v2842_v42 = vadd.f32 %v2836_v41, %v2756_v33  ;;  %v4202_v43 = vld [vmem:[%s7029_s9 + $0x178] sm:$0xff]  ;;  %v4201_v33 = vld [vmem:[%s7029_s9 + $0x170] sm:$0xff] }
 0x6bb   :  { %v4179_v41 = vld [vmem:[%s7029_s9 + $0xd0] sm:$0xff] }
 0x6bc   :  { %3126 = vmatpush.msra.mxu2 %v4151_v46  ;;  %v2928_v45 = vadd.f32 %v2922_v48, %v2842_v42  ;;  %v3171_v46 = vld [vmem:[%s7029_s9 + $0x30] sm:$0xff]  ;;  %v3170_v42 = vld [vmem:[%s7029_s9 + $0x28] sm:$0xff]  ;;  %3255 = vmatpush.msrb.mxu0 %v4179_v41 }
 0x6bd   :  { %v4178_v48 = vld [vmem:[%s7029_s9 + $0xc8] sm:$0xff] }
 0x6be   :  { %3127 = vmatpush.msra.mxu2 %v4150_v25  ;;  %v2938_v51 = vadd.f32 %v2932_v47, %v2928_v45  ;;  %v4161_v25 = vld [vmem:[%s7029_s9 + $0x50] sm:$0xff]  ;;  %v4200_v47 = vld [vmem:[%s7029_s9 + $0x168] sm:$0xff]  ;;  %3256 = vmatpush.msrb.mxu0 %v4178_v48 }
 0x6bf   :  { %v4191_v45 = vld [vmem:[%s7029_s9 + $0x128] sm:$0xff] }
 0x6c0   :  { %3128 = vmatpush.msra.mxu2 %v4149_v49  ;;  %v2942_v27 = vmax.f32 %v2938_v51, 0.0  ;;  %v4192_v49 = vld [vmem:[%s7029_s9 + $0x130] sm:$0xff]  ;;  %v3169_v51 = vld [vmem:[%s7029_s9 + $0x20] sm:$0xff] }
 0x6c2   :  { %3129 = vmatpush.msra.mxu2 %v4148_v50  ;;  %4132 = vmatpush.msk.msra.mxu3 %vm1306_vm6, %v2942_v27  ;;  %v4190_v50 = vld [vmem:[%s7029_s9 + $0x120] sm:$0xff] }
 0x6c3   :  { %4137 = vmatpush.msk.msrb.mxu1 %vm1306_vm6, %v2942_v27  ;;  %v3168_v27 = vld [vmem:[%s7029_s9 + $0x18] sm:$0xff] }
 0x6c4   :  { %3130 = vmatpush.msra.mxu2 %v4147_v54  ;;  %2988 = vmatpush.msra.mxu3 %v2940_v55  ;;  %v4177_v54 = vld [vmem:[%s7029_s9 + $0xc0] sm:$0xff] }
 0x6c5   :  { %3032 = vmatpush.msrb.mxu1 %v2940_v55  ;;  %4133 = vmatmul.msk.f32.vlgmr.msra.gmra.mxu3 %vm1302_vm7, %v2943_v23  ;;  %v4198_v55 = vld [vmem:[%s7029_s9 + $0x158] sm:$0xff] }
 0x6c6   :  { %4138 = vmatmul.msk.f32.vlgmr.msrb.gmra.mxu1 %vm1302_vm7, %v4134_v36  ;;  %3131 = vmatpush.msra.mxu2 %v4146_v56  ;;  %v3172_v36 = vld [vmem:[%s7029_s9 + $0x38] sm:$0xff] }
 0x6c7   :  { %3094 = vmatpush.msrb.mxu3 %v3058_v62  ;;  %3154 = vmatpush.msra.mxu1 %v4159_v10  ;;  %v4176_v56 = vld [vmem:[%s7029_s9 + $0xb8] sm:$0xff]  ;;  %v4188_v62 = vld [vmem:[%s7029_s9 + $0x110] sm:$0xff] }
 0x6c8   :  { %3132 = vmatpush.msra.mxu2 %v4145_v60  ;;  %3257 = vmatpush.msrb.mxu0 %v4177_v54  ;;  %v3167_v60 = vld [vmem:[%s7029_s9 + $0x10] sm:$0xff] }
 0x6c9   :  { %3095 = vmatpush.msrb.mxu3 %v3057_v1  ;;  %3155 = vmatpush.msra.mxu1 %v4158_v11  ;;  %v4174_v1 = vld [vmem:[%s7029_s9 + $0xa8] sm:$0xff] }
 0x6ca   :  { %3133 = vmatpush.msra.mxu2 %v4144_v61  ;;  %v4175_v61 = vld [vmem:[%s7029_s9 + $0xb0] sm:$0xff]  ;;  %3258 = vmatpush.msrb.mxu0 %v4176_v56 }
 0x6cb   :  { %3096 = vmatpush.msrb.mxu3 %v3056_v12  ;;  %3156 = vmatpush.msra.mxu1 %v4157_v13  ;;  %v3391_v56 = vld [vmem:[%s7033_s13 + $0x10] sm:$0xff] }
 0x6cc   :  { %3134 = vmatpush.msra.mxu2 %v4143_v0  ;;  %v4196_v0 = vld [vmem:[%s7029_s9 + $0x148] sm:$0xff]  ;;  %3259 = vmatpush.msrb.mxu0 %v4175_v61 }
 0x6cd   :  { %3097 = vmatpush.msrb.mxu3 %v3055_v40  ;;  %3157 = vmatpush.msra.mxu1 %v4156_v14 }
 0x6ce   :  { %3135 = vmatpush.msra.mxu2 %v4142_v2  ;;  %v3165_v2 = vld [vmem:[%s7029_s9] sm:$0xff]  ;;  %3260 = vmatpush.msrb.mxu0 %v4174_v1 }
 0x6cf   :  { %3195 = vmatpush.msra.mxu3 %v4170_v15  ;;  %3218 = vmatpush.msrb.mxu1 %v3174_v31  ;;  %v3348_v31 = vld [vmem:[%s7031_s11 + $0x18] sm:$0xff] }
 0x6d0   :  { %3136 = vmatpush.msra.mxu2 %v4141_v7  ;;  %v4185_v7 = vld [vmem:[%s7029_s9 + $0xf8] sm:$0xff]  ;;  %3261 = vmatpush.msrb.mxu0 %v4173_v5 }
 0x6d1   :  { %3196 = vmatpush.msra.mxu3 %v4169_v59  ;;  %3219 = vmatpush.msrb.mxu1 %v3173_v35  ;;  %v3345_v35 = vld [vmem:[%s7031_s11] sm:$0xff] }
 0x6d2   :  { %3137 = vmatpush.msra.mxu2 %v4140_v8  ;;  %v3359_v8 = vld [vmem:[%s7031_s11 + $0x70] sm:$0xff] }
 0x6d3   :  { %3197 = vmatpush.msra.mxu3 %v4168_v16  ;;  %3220 = vmatpush.msrb.mxu1 %v3172_v36  ;;  %v3397_v36 = vld [vmem:[%s7033_s13 + $0x40] sm:$0xff] }
 0x6d4   :  { %3322 = vmatpush.msrb.mxu2 %v4204_v32  ;;  %v3347_v32 = vld [vmem:[%s7031_s11 + $0x10] sm:$0xff] }
 0x6d5   :  { %3198 = vmatpush.msra.mxu3 %v4167_v17  ;;  %3221 = vmatpush.msrb.mxu1 %v3171_v46 }
 0x6d6   :  { %3323 = vmatpush.msrb.mxu2 %v4203_v39  ;;  %v3399_v39 = vld [vmem:[%s7033_s13 + $0x50] sm:$0xf] }
 0x6d7   :  { %3199 = vmatpush.msra.mxu3 %v4166_v20  ;;  %3222 = vmatpush.msrb.mxu1 %v3170_v42  ;;  %v3392_v42 = vld [vmem:[%s7033_s13 + $0x18] sm:$0xff] }
 0x6d8   :  { %3324 = vmatpush.msrb.mxu2 %v4202_v43  ;;  %v3396_v43 = vld [vmem:[%s7033_s13 + $0x38] sm:$0xff] }
 0x6d9   :  { %3200 = vmatpush.msra.mxu3 %v4165_v21  ;;  %3223 = vmatpush.msrb.mxu1 %v3169_v51  ;;  %v3357_v21 = vld [vmem:[%s7031_s11 + $0x60] sm:$0xff] }
 0x6da   :  { %3325 = vmatpush.msrb.mxu2 %v4201_v33  ;;  %v3394_v33 = vld [vmem:[%s7033_s13 + $0x28] sm:$0xff] }
 0x6db   :  { %3201 = vmatpush.msra.mxu3 %v4164_v22  ;;  %3224 = vmatpush.msrb.mxu1 %v3168_v27  ;;  %v3356_v22 = vld [vmem:[%s7031_s11 + $0x58] sm:$0xff] }
 0x6dc   :  { %3326 = vmatpush.msrb.mxu2 %v4200_v47 }
 0x6dd   :  { %3202 = vmatpush.msra.mxu3 %v4163_v6  ;;  %3225 = vmatpush.msrb.mxu1 %v3167_v60  ;;  %v3355_v6 = vld [vmem:[%s7031_s11 + $0x50] sm:$0xff]  ;;  %v3389_v60 = vld [vmem:[%s7033_s13] sm:$0xff] }
 0x6de   :  { %3327 = vmatpush.msrb.mxu2 %v4199_v52  ;;  %v4210_v52 = vld [vmem:[%s7030_s10] ss:$0 sm:$0xff] }
 0x6df   :  { %3203 = vmatpush.msra.mxu3 %v4162_v26  ;;  %3226 = vmatpush.msrb.mxu1 %v3166_v63  ;;  %v3352_v26 = vld [vmem:[%s7031_s11 + $0x38] sm:$0xff] }
 0x6e0   :  { %3328 = vmatpush.msrb.mxu2 %v4198_v55 }
 0x6e1   :  { %3204 = vmatpush.msra.mxu3 %v4161_v25  ;;  %3227 = vmatpush.msrb.mxu1 %v3165_v2 }
 0x6e2   :  { %3329 = vmatpush.msrb.mxu2 %v4197_v53  ;;  %v4211_v53 = vld [vmem:[%s7032_s12] ss:$0 sm:$0xff] }
 0x6e4   :  { %3330 = vmatpush.msrb.mxu2 %v4196_v0  ;;  %v4212_v0 = vld [vmem:[%s7034_s14] ss:$0 sm:$0xff] }
 0x6e6   :  { %3331 = vmatpush.msrb.mxu2 %v4195_v3 }
 0x732   :  { %v2970_v18 = vpop.f32.mrf.mxu2 }
 0x73a   :  { %v3014_v23 = vpop.f32.mrf.mxu2 }
 0x73b   :  { %v3037_v24 = vmax.f32 %v2970_v18, %v3014_v23  ;;  %v3354_v23 = vld [vmem:[%s7031_s11 + $0x48] sm:$0xff] }
 0x73d   :  { %3138 = vmatmul.f32.vlgmr.msra.gmra.mxu2 %v3037_v24  ;;  %3078 = vmatmul.f32.vlgmr.msra.gmra.mxu0 %v3037_v24  ;;  %v3353_v24 = vld [vmem:[%s7031_s11 + $0x40] sm:$0xff] }
 0x73e   :  { %4207 = vmatpush.msk.msra.mxu0 %vm601_vm1, %v3399_v39 }
 0x740   :  { %3416 = vmatpush.msra.mxu0 %v3398_v19 }
 0x742   :  { %3417 = vmatpush.msra.mxu0 %v3397_v36 }
 0x743   :  { %v3034_v28 = vpop.f32.mrf.mxu1 }
 0x744   :  { %3418 = vmatpush.msra.mxu0 %v3396_v43 }
 0x746   :  { %3419 = vmatpush.msra.mxu0 %v3395_v44 }
 0x748   :  { %v2990_v29 = vpop.f32.mrf.mxu3  ;;  %3420 = vmatpush.msra.mxu0 %v3394_v33 }
 0x749   :  { %v3038_v30 = vmax.f32 %v2990_v29, %v3034_v28  ;;  %v3351_v28 = vld [vmem:[%s7031_s11 + $0x30] sm:$0xff]  ;;  %v3350_v29 = vld [vmem:[%s7031_s11 + $0x28] sm:$0xff] }
 0x74b   :  { %4139 = vmatmul.msk.f32.vlgmr.msrb.gmra.mxu3 %vm1420_vm8, %v3038_v30  ;;  %4160 = vmatmul.msk.f32.vlgmr.msra.gmra.mxu1 %vm1420_vm8, %v3038_v30  ;;  %v3349_v30 = vld [vmem:[%s7031_s11 + $0x20] sm:$0xff] }
 0x74c   :  { %3287 = vmatpush.msrb.mxu3 %v4193_v37  ;;  %3369 = vmatpush.msra.mxu1 %v3359_v8  ;;  %v3393_v37 = vld [vmem:[%s7033_s13 + $0x20] sm:$0xff] }
 0x74d   :  { %3421 = vmatpush.msra.mxu0 %v3393_v37 }
 0x74e   :  { %3288 = vmatpush.msrb.mxu3 %v4192_v49  ;;  %3370 = vmatpush.msra.mxu1 %v3358_v9 }
 0x74f   :  { %3422 = vmatpush.msra.mxu0 %v3392_v42 }
 0x750   :  { %3289 = vmatpush.msrb.mxu3 %v4191_v45  ;;  %3371 = vmatpush.msra.mxu1 %v3357_v21 }
 0x751   :  { %3423 = vmatpush.msra.mxu0 %v3391_v56 }
 0x752   :  { %3290 = vmatpush.msrb.mxu3 %v4190_v50  ;;  %3372 = vmatpush.msra.mxu1 %v3356_v22 }
 0x754   :  { %3291 = vmatpush.msrb.mxu3 %v4189_v58  ;;  %3373 = vmatpush.msra.mxu1 %v3355_v6  ;;  %v3390_v58 = vld [vmem:[%s7033_s13 + $0x8] sm:$0xff]  ;;  %s3439_s13 = sshll.u32 %s7035_s15, 4  ;;  %s3440_s13 = int_to_ptr.hbm [resolvable:$true] %s3439_s13 }
 0x755   :  { %3424 = vmatpush.msra.mxu0 %v3390_v58 }
 0x756   :  { %3292 = vmatpush.msrb.mxu3 %v4188_v62  ;;  %3374 = vmatpush.msra.mxu1 %v3354_v23 }
 0x757   :  { %3425 = vmatpush.msra.mxu0 %v3389_v60 }
 0x758   :  { %3293 = vmatpush.msrb.mxu3 %v4187_v38  ;;  %3375 = vmatpush.msra.mxu1 %v3353_v24 }
 0x75a   :  { %3294 = vmatpush.msrb.mxu3 %v4186_v4  ;;  %3376 = vmatpush.msra.mxu1 %v3352_v26 }
 0x75c   :  { %3295 = vmatpush.msrb.mxu3 %v4185_v7  ;;  %3377 = vmatpush.msra.mxu1 %v3351_v28 }
 0x75e   :  { %3296 = vmatpush.msrb.mxu3 %v4184_v57  ;;  %3378 = vmatpush.msra.mxu1 %v3350_v29 }
 0x760   :  { %3379 = vmatpush.msra.mxu1 %v3349_v30 }
 0x762   :  { %3380 = vmatpush.msra.mxu1 %v3348_v31 }
 0x764   :  { %3381 = vmatpush.msra.mxu1 %v3347_v32 }
 0x766   :  { %3382 = vmatpush.msra.mxu1 %v3346_v34 }
 0x768   :  { %3383 = vmatpush.msra.mxu1 %v3345_v35 }
 0x7ba   :  { %v3079_v11 = vpop.f32.mrf.mxu0 }
 0x7c0   :  { %v3139_v40 = vpop.f32.mrf.mxu2 }
 0x7c8   :  { %v3159_v10 = vpop.f32.mrf.mxu1 }
 0x7c9   :  { %v3160_v14 = vadd.f32 %v3159_v10, %v3139_v40 }
 0x7ce   :  { %v3099_v12 = vpop.f32.mrf.mxu3 }
 0x7cf   :  { %v3100_v13 = vadd.f32 %v3099_v12, %v3079_v11 }
 0x7d1   :  { %v3162_v15 = vmax.f32 %v3100_v13, %v3160_v14 }
 0x7d3   :  { %3163 = vst.msk [vmem:[#allocation3] sm:$0x1f] %vm1526_vm9, %v3162_v15 }
 0x7da   :  { %v3175_v59 = vld [vmem:[#allocation3 + $0x1] sm:$0x1]  ;;  %v3164_v16 = vld [vmem:[#allocation3] sm:$0x1]  ;;  %v3302_v17 = vld [vmem:[#allocation3 + $0x4] sm:$0x1] }
 0x7db   :  { %4171 = vmatmul.msk.f32.vlgmr.msra.gmra.mxu3 %vm1551_vm10, %v3175_v59  ;;  %4172 = vmatmul.msk.f32.vlgmr.msrb.gmra.mxu1 %vm1551_vm10, %v3164_v16  ;;  %v3232_v18 = vld [vmem:[#allocation3 + $0x2] sm:$0x1]  ;;  %v3267_v20 = vld [vmem:[#allocation3 + $0x3] sm:$0x1] }
 0x7dc   :  { %4205 = vmatmul.msk.f32.vlgmr.msrb.gmra.mxu2 %vm1551_vm10, %v3302_v17  ;;  %4183 = vmatmul.msk.f32.vlgmr.msrb.gmra.mxu0 %vm1551_vm10, %v3232_v18 }
 0x7e3   :  { %4194 = vmatmul.msk.f32.vlgmr.msrb.gmra.mxu3 %vm1551_vm10, %v3267_v20 }
 0x858   :  { %v3229_v41 = vpop.f32.mrf.mxu1 }
 0x859   :  { %v3263_v47 = vpop.f32.mrf.mxu0 }
 0x85e   :  { %v3206_v46 = vpop.f32.mrf.mxu3 }
 0x85f   :  { %v3230_v25 = vadd.f32 %v3229_v41, %v3206_v46  ;;  %v3333_v50 = vpop.f32.mrf.mxu2 }
 0x861   :  { %v3266_v48 = vadd.f32 %v3263_v47, %v3230_v25 }
 0x866   :  { %v3298_v49 = vpop.f32.mrf.mxu3 }
 0x867   :  { %v3301_v45 = vadd.f32 %v3298_v49, %v3266_v48 }
 0x869   :  { %v3336_v51 = vadd.f32 %v3333_v50, %v3301_v45 }
 0x86b   :  { %3337 = vst.msk [vmem:[#allocation4 + $0x1] sm:$0x1] %vm1706_vm11, %v3336_v51 }
 0x872   :  { %v3338_v27 = vld [vmem:[#allocation4] sm:$0x3] }
 0x873   :  { %v3343_v54 = vadd.f32 %v4210_v52, %v3338_v27 }
 0x875   :  { %v3344_v55 = vmax.f32 %v3343_v54, 0.0 }
 0x877   :  { %4206 = vmatmul.msk.f32.vlgmr.msra.gmra.mxu1 %vm3364_vm12, %v3344_v55 }
 0x8f4   :  { %v3385_v61 = vpop.f32.mrf.mxu1 }
 0x8f5   :  { %v3386_v62 = vadd.f32 %v4211_v53, %v3385_v61 }
 0x8f7   :  { %v3388_v63 = vmax.f32 %v3386_v62, 0.0 }
 0x8f9   :  { %4208 = vmatmul.msk.f32.vlgmr.msra.gmra.mxu0 %vm857_vm4, %v3388_v63 }
 0x976   :  { %v3427_v1 = vpop.f32.mrf.mxu0 }
 0x977   :  { %v3428_v38 = vadd.f32 %v4212_v0, %v3427_v1 }
 0x979   :  { %3431 = vst.msk [vmem:[#allocation5] sm:$0x3] %vm3430_vm13, %v3428_v38 }
 0x97a   :  { %3442 = dma.vmem_to_hbm [thread:$0]  %s3438_s3, 32, %s3440_s13, [#allocation6]  }
 0x97b   :  { %4237 = dma.done.wait [#allocation6], 32  }
 0x97c   :  { %4238 = vsyncadd [#allocation6], 4294967264 }
 0x97d   :  { %3447 = vsyncpa [#allocation6], 1 }

</bundles_post_ra>
